<compile_context>
chip_gen: v7x
topology: tpu7x:2x2x1
jax: 0.10.0
libtpu: 0.0.40
codegen_flags: <defaults>
</compile_context>

<pallas_src>
from functools import partial

import numpy as np

import jax
import jax.numpy as jnp
from jax.experimental import pallas as pl
from jax.experimental.pallas import tpu as pltpu


# Fixed FEMNIST-CNN geometry (input must be (B, 3, 32, 32) so the flatten is 250).
_H0, _W0, _C0 = 32, 32, 3
_KH = 5                      # conv kernel size
_OC1, _OH1 = 6, 28           # conv1 output: 28x28x6
_P1 = 14                     # after 2x2 pool
_OC2, _OH2 = 10, 10          # conv2 output: 10x10x10
_P2 = 5                      # after 2x2 pool
_K1 = _W0 * _C0              # 96  conv1 matmul K (input lane width = W*C)
_NP = 128                    # per-parity padded output lane width (vreg aligned)
_NCP = 128                   # padded class lanes for a lane-dense output store
_TB_MAX = 128                # max batch tile (sweep 64-256 if tuning further)


# --------------------------------- kernel -----------------------------------

def _cnn_femnist_kernel(x_ref, c1_ref, b1_ref, c2_ref, b2_ref,
                        w1_ref, bfc1_ref, w2_ref, bfc2_ref,
                        o_ref, acc1_ref, acc2_ref, h1_ref, h2_ref):
    f32, bf16 = jnp.float32, jnp.bfloat16
    tb = x_ref.shape[1]

    # ---------------- conv1 (5x5, 3->6) + bias + ReLU + 2x2 max-pool ---------
    # One matmul per kernel row against a merged banded weight matrix: even
    # output columns in lanes [0,128), odd in [128,256).  Accumulate in VMEM.
    for ki in range(_KH):
        xk = x_ref[pl.ds(ki, _OH1), :, :].reshape(_OH1 * tb, _K1)
        d = jnp.dot(xk, c1_ref[ki], preferred_element_type=f32)
        if ki == 0:
            acc1_ref[...] = d
        else:
            acc1_ref[...] += d
    a = acc1_ref[...].reshape(_P1, 2, tb, 2 * _NP)
    rmax = jnp.maximum(a[:, 0], a[:, 1])                    # row-pair max
    pooled = jnp.maximum(rmax[..., :_NP], rmax[..., _NP:])  # even/odd col max
    # max-pool commutes with the monotone (+bias, ReLU) epilogue.
    h1_ref[...] = jnp.maximum(pooled + b1_ref[...], 0.0).astype(bf16)

    # ---------------- conv2 (5x5, 6->10) + bias + ReLU + 2x2 max-pool --------
    for ki in range(_KH):
        hk = h1_ref[pl.ds(ki, _OH2), :, :].reshape(_OH2 * tb, _NP)
        d = jnp.dot(hk, c2_ref[ki], preferred_element_type=f32)
        if ki == 0:
            acc2_ref[...] = d
        else:
            acc2_ref[...] += d
    a = acc2_ref[...].reshape(_P2, 2, tb, 2 * _NP)
    rmax = jnp.maximum(a[:, 0], a[:, 1])
    pooled = jnp.maximum(rmax[..., :_NP], rmax[..., _NP:])
    h2_ref[...] = jnp.maximum(pooled + b2_ref[...], 0.0).astype(bf16)

    # ------------------------------- fc1 + ReLU ------------------------------
    # fc1 weights pre-permuted to PyTorch's NCHW view(-1, 250) flatten order,
    # applied as one small matmul per pooled row (rows >= 50 of w1 are zero).
    z = jnp.dot(h2_ref[0], w1_ref[0], preferred_element_type=f32)
    for h in range(1, _P2):
        z = z + jnp.dot(h2_ref[h], w1_ref[h], preferred_element_type=f32)
    z = jnp.maximum(z + bfc1_ref[...], 0.0)

    # TODO(synk): Dropout(0.2) before fc2 is the identity in eval/inference
    # mode; training-mode stochastic masking is not applied here.

    # --------------------------- fc2 + log-softmax ---------------------------
    # Classes padded to 128 lanes; padded biases are -1e30 so the pads neither
    # win the max nor contribute to the exp-sum.
    logits = jnp.dot(z.astype(bf16), w2_ref[...],
                     preferred_element_type=f32) + bfc2_ref[...]
    m = jnp.max(logits, axis=-1, keepdims=True)
    s = jnp.sum(jnp.exp(logits - m), axis=-1, keepdims=True)
    o_ref[...] = (logits - m - jnp.log(s)).astype(o_ref.dtype)


# ------------------------ parameter packing (once) ---------------------------

def init_params(key, code_length=64, num_classes=10):
    """Parameters in the original PyTorch layouts."""
    ks = jax.random.split(key, 8)
    s = 0.1
    return {
        "conv1_w": s * jax.random.normal(ks[0], (6, 3, 5, 5), jnp.float32),
        "conv1_b": s * jax.random.normal(ks[1], (6,), jnp.float32),
        "conv2_w": s * jax.random.normal(ks[2], (10, 6, 5, 5), jnp.float32),
        "conv2_b": s * jax.random.normal(ks[3], (10,), jnp.float32),
        "fc1_w": s * jax.random.normal(ks[4], (code_length, 250), jnp.float32),
        "fc1_b": s * jax.random.normal(ks[5], (code_length,), jnp.float32),
        "fc2_w": s * jax.random.normal(ks[6], (num_classes, code_length), jnp.float32),
        "fc2_b": s * jax.random.normal(ks[7], (num_classes,), jnp.float32),
    }


def pack_params(params):
    """One-time (outside jit) conversion of PyTorch-layout params into the
    kernel's banded / pre-permuted / padded bf16 layouts."""
    w1 = np.asarray(params["conv1_w"], np.float32)   # (6, 3, 5, 5)
    b1 = np.asarray(params["conv1_b"], np.float32)
    w2 = np.asarray(params["conv2_w"], np.float32)   # (10, 6, 5, 5)
    b2 = np.asarray(params["conv2_b"], np.float32)
    fw1 = np.asarray(params["fc1_w"], np.float32)    # (code, 250)
    fb1 = np.asarray(params["fc1_b"], np.float32)
    fw2 = np.asarray(params["fc2_w"], np.float32)    # (ncls, code)
    fb2 = np.asarray(params["fc2_b"], np.float32)
    code = fw1.shape[0]
    ncls = fw2.shape[0]

    def band(w, in_w, half_cols, k_rows):
        # Merged even/odd banded (Toeplitz) weights:
        #   out[ki, col*C + c, parity*_NP + j*OC + oc] = w[oc, c, ki, kj]
        #   with col = 2*j + parity + kj
        oc_n, c_in, kh, kw = w.shape
        out = np.zeros((kh, k_rows, 2 * _NP), np.float32)
        for ki in range(kh):
            for parity in range(2):
                base = parity * _NP
                for j in range(half_cols):
                    for kj in range(kw):
                        col = 2 * j + parity + kj
                        if col < in_w:
                            out[ki, col * c_in:(col + 1) * c_in,
                                base + j * oc_n: base + (j + 1) * oc_n] = \
                                w[:, :, ki, kj].T
        return out

    c1 = band(w1, _W0, _P1, _K1)          # (5, 96, 256)
    c2 = band(w2, _P1, _P2, _NP)          # (5, 128, 256); rows >= 84 are zero

    b1p = np.zeros((1, _NP), np.float32)
    b1p[0, :_P1 * _OC1] = np.tile(b1, _P1)            # lane = j*6 + oc
    b2p = np.zeros((1, _NP), np.float32)
    b2p[0, :_P2 * _OC2] = np.tile(b2, _P2)            # lane = j*10 + oc

    # fc1: PyTorch flatten order k = c*25 + h*5 + w ; kernel lane order = w*10 + c.
    w1h = np.transpose(fw1.reshape(code, _OC2, _P2, _P2), (2, 3, 1, 0))  # (h,w,c,n)
    w1h = np.ascontiguousarray(w1h).reshape(_P2, _P2 * _OC2, code)
    w1p = np.zeros((_P2, _NP, code), np.float32)
    w1p[:, :_P2 * _OC2, :] = w1h                                         # (5,128,code)

    w2p = np.zeros((code, _NCP), np.float32)
    w2p[:, :ncls] = fw2.T
    bfc2p = np.full((1, _NCP), -1e30, np.float32)      # pad lanes can't win softmax
    bfc2p[0, :ncls] = fb2

    bf = lambda a: jnp.asarray(a, jnp.bfloat16)
    f32 = lambda a: jnp.asarray(a, jnp.float32)
    return {
        "c1": bf(c1), "b1": f32(b1p),
        "c2": bf(c2), "b2": f32(b2p),
        "w1": bf(w1p), "bfc1": f32(fb1[None, :]),
        "w2": bf(w2p), "bfc2": f32(bfc2p),
    }


# ------------------------------- forward pass --------------------------------

def _round_up(v, m):
    return ((v + m - 1) // m) * m


def _pick_tile(b):
    # Batch tile: multiple of 16 (bf16 sublane packing), capped at _TB_MAX so
    # large batches keep >= 2 "parallel" grid steps (v7x megacore, pipelining).
    return min(_TB_MAX, max(16, _round_up(b, 16)))


@partial(jax.jit, static_argnames=("num_classes",))
def cnn_femnist_forward(x_nchw, packed, num_classes=10):
    b = x_nchw.shape[0]
    if x_nchw.shape[1:] != (_C0, _H0, _W0):
        raise ValueError(f"expected (B, 3, 32, 32) input, got {x_nchw.shape}")
    tb = _pick_tile(b)
    bp = _round_up(b, tb)

    x = x_nchw.astype(jnp.bfloat16)          # halve input HBM traffic
    if bp != b:
        x = jnp.pad(x, ((0, bp - b), (0, 0), (0, 0), (0, 0)))
    # Layout adapter (fused with the bf16 cast by XLA): NCHW -> (H, B, W*C) so
    # inside the kernel batch is the sublane dim and (W, C) is the lane dim.
    # TODO(synk): a caller supplying the (H, B, W*C) bf16 layout directly would
    # avoid this extra (half-width) HBM pass entirely.
    x = jnp.transpose(x, (2, 0, 3, 1)).reshape(_H0, bp, _K1)

    code = packed["w1"].shape[-1]
    zero3 = lambda i: (0, 0, 0)
    zero2 = lambda i: (0, 0)

    out = pl.pallas_call(
        _cnn_femnist_kernel,
        out_shape=jax.ShapeDtypeStruct((bp, _NCP), jnp.float32),
        grid=(bp // tb,),
        in_specs=[
            pl.BlockSpec((_H0, tb, _K1), lambda i: (0, i, 0)),   # image tile
            pl.BlockSpec((_KH, _K1, 2 * _NP), zero3),            # conv1 bands (even|odd)
            pl.BlockSpec((1, _NP), zero2),                       # conv1 bias (tiled, padded)
            pl.BlockSpec((_KH, _NP, 2 * _NP), zero3),            # conv2 bands (even|odd)
            pl.BlockSpec((1, _NP), zero2),                       # conv2 bias (tiled, padded)
            pl.BlockSpec((_P2, _NP, code), zero3),               # fc1 (per pooled row)
            pl.BlockSpec((1, code), zero2),                      # fc1 bias
            pl.BlockSpec((code, _NCP), zero2),                   # fc2 (classes padded)
            pl.BlockSpec((1, _NCP), zero2),                      # fc2 bias (pads = -1e30)
        ],
        out_specs=pl.BlockSpec((tb, _NCP), lambda i: (i, 0)),
        scratch_shapes=[
            pltpu.VMEM((_OH1 * tb, 2 * _NP), jnp.float32),       # conv1 accumulator
            pltpu.VMEM((_OH2 * tb, 2 * _NP), jnp.float32),       # conv2 accumulator
            pltpu.VMEM((_P1, tb, _NP), jnp.bfloat16),            # pooled conv1 acts
            pltpu.VMEM((_P2, tb, _NP), jnp.bfloat16),            # pooled conv2 acts
        ],
        compiler_params=pltpu.CompilerParams(
            dimension_semantics=("parallel",)),
    )(x, packed["c1"], packed["b1"], packed["c2"], packed["b2"],
      packed["w1"], packed["bfc1"], packed["w2"], packed["bfc2"])
    return out[:b, :num_classes]


# --------------------------- pure-JAX reference -------------------------------

def reference_forward(x, params):
    x = x.astype(jnp.float32)

    def conv(h, w, bias):
        y = jax.lax.conv_general_dilated(
            h, w, window_strides=(1, 1), padding="VALID",
            dimension_numbers=("NCHW", "OIHW", "NCHW"))
        return y + bias[None, :, None, None]

    def pool(h):
        return jax.lax.reduce_window(h, -jnp.inf, jax.lax.max,
                                     (1, 1, 2, 2), (1, 1, 2, 2), "VALID")

    h = pool(jax.nn.relu(conv(x, params["conv1_w"], params["conv1_b"])))
    h = pool(jax.nn.relu(conv(h, params["conv2_w"], params["conv2_b"])))
    feat = h.reshape(h.shape[0], -1)                      # NCHW flatten -> (B, 250)
    z = jax.nn.relu(feat @ params["fc1_w"].T + params["fc1_b"])
    logits = z @ params["fc2_w"].T + params["fc2_b"]
    return jax.nn.log_softmax(logits, axis=-1)


# ----------------------------------- main -------------------------------------

if __name__ == "__main__":
    key = jax.random.PRNGKey(0)
    k_x, k_p, k_x2 = jax.random.split(key, 3)

    # Input must be 32x32x3 so the flatten yields 10*5*5 = 250.
    params = init_params(k_p, code_length=64, num_classes=10)
    packed = pack_params(params)

    # ---- small-batch check (batch=2) ----
    x = jax.random.normal(k_x, (2, 3, 32, 32), jnp.float32)
    out = jax.block_until_ready(cnn_femnist_forward(x, packed))
    assert out.shape == (2, 10), out.shape
    assert bool(jnp.all(jnp.isfinite(out)))
    # log-softmax rows exponentiate-sum to ~1
    assert bool(jnp.allclose(jnp.sum(jnp.exp(out), axis=1), 1.0, atol=1e-4))
    ref = reference_forward(x, params)
    # bf16 matmul operands (f32 accumulation) set an error floor of ~1e-2 on the
    # log-probs; packing/permutation bugs would show up as O(1) errors.
    err = float(jnp.max(jnp.abs(out - ref)))
    assert err < 5e-2, f"mismatch vs reference: {err}"

    # ---- multi-tile / padded-batch check (exercises grid > 1 and padding) ----
    x2 = jax.random.normal(k_x2, (160, 3, 32, 32), jnp.float32)
    out2 = jax.block_until_ready(cnn_femnist_forward(x2, packed))
    assert out2.shape == (160, 10), out2.shape
    ref2 = reference_forward(x2, params)
    err2 = float(jnp.max(jnp.abs(out2 - ref2)))
    assert err2 < 1e-1, f"mismatch vs reference (multi-tile): {err2}"

    print("KERNEL_OK")
</pallas_src>

<mosaic_0001>
module attributes {stable_mosaic.version = 11 : i64} {
  func.func @_cnn_femnist_kernel(%arg0: i32, %arg1: memref<32x16x96xbf16, #tpu.memory_space<vmem>>, %arg2: memref<5x96x256xbf16, #tpu.memory_space<vmem>>, %arg3: memref<1x128xf32, #tpu.memory_space<vmem>>, %arg4: memref<5x128x256xbf16, #tpu.memory_space<vmem>>, %arg5: memref<1x128xf32, #tpu.memory_space<vmem>>, %arg6: memref<5x128x64xbf16, #tpu.memory_space<vmem>>, %arg7: memref<1x64xf32, #tpu.memory_space<vmem>>, %arg8: memref<64x128xbf16, #tpu.memory_space<vmem>>, %arg9: memref<1x128xf32, #tpu.memory_space<vmem>>, %arg10: memref<16x128xf32, #tpu.memory_space<vmem>>, %arg11: memref<448x256xf32, #tpu.memory_space<vmem>>, %arg12: memref<160x256xf32, #tpu.memory_space<vmem>>, %arg13: memref<14x16x128xbf16, #tpu.memory_space<vmem>>, %arg14: memref<5x16x128xbf16, #tpu.memory_space<vmem>>) attributes {dimension_semantics = [#tpu.dimension_semantics<parallel>], iteration_bounds = array<i64: 1>, scalar_prefetch = 0 : i64, scratch_operands = 4 : i64, tpu.core_type = #tpu.core_type<tc>, window_params = [{transform_indices = @transform_0, window_bounds = array<i64: 32, 16, 96>}, {pipeline_mode = #tpu.pipeline_mode<synchronous>, transform_indices = @transform_1, window_bounds = array<i64: 5, 96, 256>}, {pipeline_mode = #tpu.pipeline_mode<synchronous>, transform_indices = @transform_2, window_bounds = array<i64: 1, 128>}, {pipeline_mode = #tpu.pipeline_mode<synchronous>, transform_indices = @transform_3, window_bounds = array<i64: 5, 128, 256>}, {pipeline_mode = #tpu.pipeline_mode<synchronous>, transform_indices = @transform_4, window_bounds = array<i64: 1, 128>}, {pipeline_mode = #tpu.pipeline_mode<synchronous>, transform_indices = @transform_5, window_bounds = array<i64: 5, 128, 64>}, {pipeline_mode = #tpu.pipeline_mode<synchronous>, transform_indices = @transform_6, window_bounds = array<i64: 1, 64>}, {pipeline_mode = #tpu.pipeline_mode<synchronous>, transform_indices = @transform_7, window_bounds = array<i64: 64, 128>}, {pipeline_mode = #tpu.pipeline_mode<synchronous>, transform_indices = @transform_8, window_bounds = array<i64: 1, 128>}, {transform_indices = @transform_9, window_bounds = array<i64: 16, 128>}]} {
    %c0 = arith.constant 0 : index
    %c0_0 = arith.constant 0 : index
    %c0_1 = arith.constant 0 : index
    %0 = vector.load %arg1[%c0, %c0_0, %c0_1] : memref<32x16x96xbf16, #tpu.memory_space<vmem>>, vector<28x16x96xbf16>
    %1 = vector.shape_cast %0 : vector<28x16x96xbf16> to vector<448x96xbf16>
    %c0_2 = arith.constant 0 : index
    %c0_3 = arith.constant 0 : index
    %c0_4 = arith.constant 0 : index
    %2 = vector.load %arg2[%c0_2, %c0_3, %c0_4] : memref<5x96x256xbf16, #tpu.memory_space<vmem>>, vector<1x96x256xbf16>
    %3 = vector.shape_cast %2 : vector<1x96x256xbf16> to vector<96x256xbf16>
    %cst = arith.constant dense<0.000000e+00> : vector<448x256xf32>
    %4 = tpu.matmul %1, %3, %cst {dimension_numbers = #tpu.dot_dimension_numbers<[1], [0], [0], [1], [0, 0, 1, 1], [], []>} : vector<448x96xbf16>, vector<96x256xbf16>, vector<448x256xf32> -> vector<448x256xf32>
    %c0_5 = arith.constant 0 : index
    %c0_6 = arith.constant 0 : index
    %5 = vector.load %arg11[%c0_5, %c0_6] : memref<448x256xf32, #tpu.memory_space<vmem>>, vector<448x256xf32>
    tpu.vector_store %arg11[%c0_5, %c0_6], %4 {strides = array<i32>} : memref<448x256xf32, #tpu.memory_space<vmem>>, vector<448x256xf32>,
    %c1 = arith.constant 1 : index
    %c0_7 = arith.constant 0 : index
    %c0_8 = arith.constant 0 : index
    %6 = vector.load %arg1[%c1, %c0_7, %c0_8] : memref<32x16x96xbf16, #tpu.memory_space<vmem>>, vector<28x16x96xbf16>
    %7 = vector.shape_cast %6 : vector<28x16x96xbf16> to vector<448x96xbf16>
    %c1_9 = arith.constant 1 : index
    %c0_10 = arith.constant 0 : index
    %c0_11 = arith.constant 0 : index
    %8 = vector.load %arg2[%c1_9, %c0_10, %c0_11] : memref<5x96x256xbf16, #tpu.memory_space<vmem>>, vector<1x96x256xbf16>
    %9 = vector.shape_cast %8 : vector<1x96x256xbf16> to vector<96x256xbf16>
    %cst_12 = arith.constant dense<0.000000e+00> : vector<448x256xf32>
    %10 = tpu.matmul %7, %9, %cst_12 {dimension_numbers = #tpu.dot_dimension_numbers<[1], [0], [0], [1], [0, 0, 1, 1], [], []>} : vector<448x96xbf16>, vector<96x256xbf16>, vector<448x256xf32> -> vector<448x256xf32>
    %c0_13 = arith.constant 0 : index
    %c0_14 = arith.constant 0 : index
    %11 = vector.load %arg11[%c0_13, %c0_14] : memref<448x256xf32, #tpu.memory_space<vmem>>, vector<448x256xf32>
    %12 = arith.addf %11, %10 : vector<448x256xf32>
    %c0_15 = arith.constant 0 : index
    %c0_16 = arith.constant 0 : index
    %13 = vector.load %arg11[%c0_15, %c0_16] : memref<448x256xf32, #tpu.memory_space<vmem>>, vector<448x256xf32>
    tpu.vector_store %arg11[%c0_15, %c0_16], %12 {strides = array<i32>} : memref<448x256xf32, #tpu.memory_space<vmem>>, vector<448x256xf32>,
    %c2 = arith.constant 2 : index
    %c0_17 = arith.constant 0 : index
    %c0_18 = arith.constant 0 : index
    %14 = vector.load %arg1[%c2, %c0_17, %c0_18] : memref<32x16x96xbf16, #tpu.memory_space<vmem>>, vector<28x16x96xbf16>
    %15 = vector.shape_cast %14 : vector<28x16x96xbf16> to vector<448x96xbf16>
    %c2_19 = arith.constant 2 : index
    %c0_20 = arith.constant 0 : index
    %c0_21 = arith.constant 0 : index
    %16 = vector.load %arg2[%c2_19, %c0_20, %c0_21] : memref<5x96x256xbf16, #tpu.memory_space<vmem>>, vector<1x96x256xbf16>
    %17 = vector.shape_cast %16 : vector<1x96x256xbf16> to vector<96x256xbf16>
    %cst_22 = arith.constant dense<0.000000e+00> : vector<448x256xf32>
    %18 = tpu.matmul %15, %17, %cst_22 {dimension_numbers = #tpu.dot_dimension_numbers<[1], [0], [0], [1], [0, 0, 1, 1], [], []>} : vector<448x96xbf16>, vector<96x256xbf16>, vector<448x256xf32> -> vector<448x256xf32>
    %c0_23 = arith.constant 0 : index
    %c0_24 = arith.constant 0 : index
    %19 = vector.load %arg11[%c0_23, %c0_24] : memref<448x256xf32, #tpu.memory_space<vmem>>, vector<448x256xf32>
    %20 = arith.addf %19, %18 : vector<448x256xf32>
    %c0_25 = arith.constant 0 : index
    %c0_26 = arith.constant 0 : index
    %21 = vector.load %arg11[%c0_25, %c0_26] : memref<448x256xf32, #tpu.memory_space<vmem>>, vector<448x256xf32>
    tpu.vector_store %arg11[%c0_25, %c0_26], %20 {strides = array<i32>} : memref<448x256xf32, #tpu.memory_space<vmem>>, vector<448x256xf32>,
    %c3 = arith.constant 3 : index
    %c0_27 = arith.constant 0 : index
    %c0_28 = arith.constant 0 : index
    %22 = vector.load %arg1[%c3, %c0_27, %c0_28] : memref<32x16x96xbf16, #tpu.memory_space<vmem>>, vector<28x16x96xbf16>
    %23 = vector.shape_cast %22 : vector<28x16x96xbf16> to vector<448x96xbf16>
    %c3_29 = arith.constant 3 : index
    %c0_30 = arith.constant 0 : index
    %c0_31 = arith.constant 0 : index
    %24 = vector.load %arg2[%c3_29, %c0_30, %c0_31] : memref<5x96x256xbf16, #tpu.memory_space<vmem>>, vector<1x96x256xbf16>
    %25 = vector.shape_cast %24 : vector<1x96x256xbf16> to vector<96x256xbf16>
    %cst_32 = arith.constant dense<0.000000e+00> : vector<448x256xf32>
    %26 = tpu.matmul %23, %25, %cst_32 {dimension_numbers = #tpu.dot_dimension_numbers<[1], [0], [0], [1], [0, 0, 1, 1], [], []>} : vector<448x96xbf16>, vector<96x256xbf16>, vector<448x256xf32> -> vector<448x256xf32>
    %c0_33 = arith.constant 0 : index
    %c0_34 = arith.constant 0 : index
    %27 = vector.load %arg11[%c0_33, %c0_34] : memref<448x256xf32, #tpu.memory_space<vmem>>, vector<448x256xf32>
    %28 = arith.addf %27, %26 : vector<448x256xf32>
    %c0_35 = arith.constant 0 : index
    %c0_36 = arith.constant 0 : index
    %29 = vector.load %arg11[%c0_35, %c0_36] : memref<448x256xf32, #tpu.memory_space<vmem>>, vector<448x256xf32>
    tpu.vector_store %arg11[%c0_35, %c0_36], %28 {strides = array<i32>} : memref<448x256xf32, #tpu.memory_space<vmem>>, vector<448x256xf32>,
    %c4 = arith.constant 4 : index
    %c0_37 = arith.constant 0 : index
    %c0_38 = arith.constant 0 : index
    %30 = vector.load %arg1[%c4, %c0_37, %c0_38] : memref<32x16x96xbf16, #tpu.memory_space<vmem>>, vector<28x16x96xbf16>
    %31 = vector.shape_cast %30 : vector<28x16x96xbf16> to vector<448x96xbf16>
    %c4_39 = arith.constant 4 : index
    %c0_40 = arith.constant 0 : index
    %c0_41 = arith.constant 0 : index
    %32 = vector.load %arg2[%c4_39, %c0_40, %c0_41] : memref<5x96x256xbf16, #tpu.memory_space<vmem>>, vector<1x96x256xbf16>
    %33 = vector.shape_cast %32 : vector<1x96x256xbf16> to vector<96x256xbf16>
    %cst_42 = arith.constant dense<0.000000e+00> : vector<448x256xf32>
    %34 = tpu.matmul %31, %33, %cst_42 {dimension_numbers = #tpu.dot_dimension_numbers<[1], [0], [0], [1], [0, 0, 1, 1], [], []>} : vector<448x96xbf16>, vector<96x256xbf16>, vector<448x256xf32> -> vector<448x256xf32>
    %c0_43 = arith.constant 0 : index
    %c0_44 = arith.constant 0 : index
    %35 = vector.load %arg11[%c0_43, %c0_44] : memref<448x256xf32, #tpu.memory_space<vmem>>, vector<448x256xf32>
    %36 = arith.addf %35, %34 : vector<448x256xf32>
    %c0_45 = arith.constant 0 : index
    %c0_46 = arith.constant 0 : index
    %37 = vector.load %arg11[%c0_45, %c0_46] : memref<448x256xf32, #tpu.memory_space<vmem>>, vector<448x256xf32>
    tpu.vector_store %arg11[%c0_45, %c0_46], %36 {strides = array<i32>} : memref<448x256xf32, #tpu.memory_space<vmem>>, vector<448x256xf32>,
    %c0_47 = arith.constant 0 : index
    %c0_48 = arith.constant 0 : index
    %38 = vector.load %arg11[%c0_47, %c0_48] : memref<448x256xf32, #tpu.memory_space<vmem>>, vector<448x256xf32>
    %39 = vector.shape_cast %38 : vector<448x256xf32> to vector<14x2x16x256xf32>
    %40 = vector.extract_strided_slice %39 {offsets = [0, 0, 0, 0], sizes = [14, 1, 16, 256], strides = [1, 1, 1, 1]} : vector<14x2x16x256xf32> to vector<14x1x16x256xf32>
    %41 = vector.shape_cast %40 : vector<14x1x16x256xf32> to vector<14x16x256xf32>
    %42 = vector.extract_strided_slice %39 {offsets = [0, 1, 0, 0], sizes = [14, 1, 16, 256], strides = [1, 1, 1, 1]} : vector<14x2x16x256xf32> to vector<14x1x16x256xf32>
    %43 = vector.shape_cast %42 : vector<14x1x16x256xf32> to vector<14x16x256xf32>
    %44 = arith.maximumf %41, %43 : vector<14x16x256xf32>
    %45 = vector.extract_strided_slice %44 {offsets = [0, 0, 0], sizes = [14, 16, 128], strides = [1, 1, 1]} : vector<14x16x256xf32> to vector<14x16x128xf32>
    %46 = vector.extract_strided_slice %44 {offsets = [0, 0, 128], sizes = [14, 16, 128], strides = [1, 1, 1]} : vector<14x16x256xf32> to vector<14x16x128xf32>
    %47 = arith.maximumf %45, %46 : vector<14x16x128xf32>
    %c0_49 = arith.constant 0 : index
    %c0_50 = arith.constant 0 : index
    %48 = vector.load %arg3[%c0_49, %c0_50] : memref<1x128xf32, #tpu.memory_space<vmem>>, vector<1x128xf32>
    %49 = vector.shape_cast %48 : vector<1x128xf32> to vector<1x1x128xf32>
    %50 = vector.broadcast %49 : vector<1x1x128xf32> to vector<14x16x128xf32>
    %51 = arith.addf %47, %50 : vector<14x16x128xf32>
    %cst_51 = arith.constant 0.000000e+00 : f32
    %52 = vector.broadcast %cst_51 : f32 to vector<14x16x128xf32>
    %53 = arith.maximumf %51, %52 : vector<14x16x128xf32>
    %54 = arith.truncf %53 : vector<14x16x128xf32> to vector<14x16x128xbf16>
    %c0_52 = arith.constant 0 : index
    %c0_53 = arith.constant 0 : index
    %c0_54 = arith.constant 0 : index
    %55 = vector.load %arg13[%c0_52, %c0_53, %c0_54] : memref<14x16x128xbf16, #tpu.memory_space<vmem>>, vector<14x16x128xbf16>
    tpu.vector_store %arg13[%c0_52, %c0_53, %c0_54], %54 {strides = array<i32>} : memref<14x16x128xbf16, #tpu.memory_space<vmem>>, vector<14x16x128xbf16>,
    %c0_55 = arith.constant 0 : index
    %c0_56 = arith.constant 0 : index
    %c0_57 = arith.constant 0 : index
    %56 = vector.load %arg13[%c0_55, %c0_56, %c0_57] : memref<14x16x128xbf16, #tpu.memory_space<vmem>>, vector<10x16x128xbf16>
    %57 = vector.shape_cast %56 : vector<10x16x128xbf16> to vector<160x128xbf16>
    %c0_58 = arith.constant 0 : index
    %c0_59 = arith.constant 0 : index
    %c0_60 = arith.constant 0 : index
    %58 = vector.load %arg4[%c0_58, %c0_59, %c0_60] : memref<5x128x256xbf16, #tpu.memory_space<vmem>>, vector<1x128x256xbf16>
    %59 = vector.shape_cast %58 : vector<1x128x256xbf16> to vector<128x256xbf16>
    %cst_61 = arith.constant dense<0.000000e+00> : vector<160x256xf32>
    %60 = tpu.matmul %57, %59, %cst_61 {dimension_numbers = #tpu.dot_dimension_numbers<[1], [0], [0], [1], [0, 0, 1, 1], [], []>} : vector<160x128xbf16>, vector<128x256xbf16>, vector<160x256xf32> -> vector<160x256xf32>
    %c0_62 = arith.constant 0 : index
    %c0_63 = arith.constant 0 : index
    %61 = vector.load %arg12[%c0_62, %c0_63] : memref<160x256xf32, #tpu.memory_space<vmem>>, vector<160x256xf32>
    tpu.vector_store %arg12[%c0_62, %c0_63], %60 {strides = array<i32>} : memref<160x256xf32, #tpu.memory_space<vmem>>, vector<160x256xf32>,
    %c1_64 = arith.constant 1 : index
    %c0_65 = arith.constant 0 : index
    %c0_66 = arith.constant 0 : index
    %62 = vector.load %arg13[%c1_64, %c0_65, %c0_66] : memref<14x16x128xbf16, #tpu.memory_space<vmem>>, vector<10x16x128xbf16>
    %63 = vector.shape_cast %62 : vector<10x16x128xbf16> to vector<160x128xbf16>
    %c1_67 = arith.constant 1 : index
    %c0_68 = arith.constant 0 : index
    %c0_69 = arith.constant 0 : index
    %64 = vector.load %arg4[%c1_67, %c0_68, %c0_69] : memref<5x128x256xbf16, #tpu.memory_space<vmem>>, vector<1x128x256xbf16>
    %65 = vector.shape_cast %64 : vector<1x128x256xbf16> to vector<128x256xbf16>
    %cst_70 = arith.constant dense<0.000000e+00> : vector<160x256xf32>
    %66 = tpu.matmul %63, %65, %cst_70 {dimension_numbers = #tpu.dot_dimension_numbers<[1], [0], [0], [1], [0, 0, 1, 1], [], []>} : vector<160x128xbf16>, vector<128x256xbf16>, vector<160x256xf32> -> vector<160x256xf32>
    %c0_71 = arith.constant 0 : index
    %c0_72 = arith.constant 0 : index
    %67 = vector.load %arg12[%c0_71, %c0_72] : memref<160x256xf32, #tpu.memory_space<vmem>>, vector<160x256xf32>
    %68 = arith.addf %67, %66 : vector<160x256xf32>
    %c0_73 = arith.constant 0 : index
    %c0_74 = arith.constant 0 : index
    %69 = vector.load %arg12[%c0_73, %c0_74] : memref<160x256xf32, #tpu.memory_space<vmem>>, vector<160x256xf32>
    tpu.vector_store %arg12[%c0_73, %c0_74], %68 {strides = array<i32>} : memref<160x256xf32, #tpu.memory_space<vmem>>, vector<160x256xf32>,
    %c2_75 = arith.constant 2 : index
    %c0_76 = arith.constant 0 : index
    %c0_77 = arith.constant 0 : index
    %70 = vector.load %arg13[%c2_75, %c0_76, %c0_77] : memref<14x16x128xbf16, #tpu.memory_space<vmem>>, vector<10x16x128xbf16>
    %71 = vector.shape_cast %70 : vector<10x16x128xbf16> to vector<160x128xbf16>
    %c2_78 = arith.constant 2 : index
    %c0_79 = arith.constant 0 : index
    %c0_80 = arith.constant 0 : index
    %72 = vector.load %arg4[%c2_78, %c0_79, %c0_80] : memref<5x128x256xbf16, #tpu.memory_space<vmem>>, vector<1x128x256xbf16>
    %73 = vector.shape_cast %72 : vector<1x128x256xbf16> to vector<128x256xbf16>
    %cst_81 = arith.constant dense<0.000000e+00> : vector<160x256xf32>
    %74 = tpu.matmul %71, %73, %cst_81 {dimension_numbers = #tpu.dot_dimension_numbers<[1], [0], [0], [1], [0, 0, 1, 1], [], []>} : vector<160x128xbf16>, vector<128x256xbf16>, vector<160x256xf32> -> vector<160x256xf32>
    %c0_82 = arith.constant 0 : index
    %c0_83 = arith.constant 0 : index
    %75 = vector.load %arg12[%c0_82, %c0_83] : memref<160x256xf32, #tpu.memory_space<vmem>>, vector<160x256xf32>
    %76 = arith.addf %75, %74 : vector<160x256xf32>
    %c0_84 = arith.constant 0 : index
    %c0_85 = arith.constant 0 : index
    %77 = vector.load %arg12[%c0_84, %c0_85] : memref<160x256xf32, #tpu.memory_space<vmem>>, vector<160x256xf32>
    tpu.vector_store %arg12[%c0_84, %c0_85], %76 {strides = array<i32>} : memref<160x256xf32, #tpu.memory_space<vmem>>, vector<160x256xf32>,
    %c3_86 = arith.constant 3 : index
    %c0_87 = arith.constant 0 : index
    %c0_88 = arith.constant 0 : index
    %78 = vector.load %arg13[%c3_86, %c0_87, %c0_88] : memref<14x16x128xbf16, #tpu.memory_space<vmem>>, vector<10x16x128xbf16>
    %79 = vector.shape_cast %78 : vector<10x16x128xbf16> to vector<160x128xbf16>
    %c3_89 = arith.constant 3 : index
    %c0_90 = arith.constant 0 : index
    %c0_91 = arith.constant 0 : index
    %80 = vector.load %arg4[%c3_89, %c0_90, %c0_91] : memref<5x128x256xbf16, #tpu.memory_space<vmem>>, vector<1x128x256xbf16>
    %81 = vector.shape_cast %80 : vector<1x128x256xbf16> to vector<128x256xbf16>
    %cst_92 = arith.constant dense<0.000000e+00> : vector<160x256xf32>
    %82 = tpu.matmul %79, %81, %cst_92 {dimension_numbers = #tpu.dot_dimension_numbers<[1], [0], [0], [1], [0, 0, 1, 1], [], []>} : vector<160x128xbf16>, vector<128x256xbf16>, vector<160x256xf32> -> vector<160x256xf32>
    %c0_93 = arith.constant 0 : index
    %c0_94 = arith.constant 0 : index
    %83 = vector.load %arg12[%c0_93, %c0_94] : memref<160x256xf32, #tpu.memory_space<vmem>>, vector<160x256xf32>
    %84 = arith.addf %83, %82 : vector<160x256xf32>
    %c0_95 = arith.constant 0 : index
    %c0_96 = arith.constant 0 : index
    %85 = vector.load %arg12[%c0_95, %c0_96] : memref<160x256xf32, #tpu.memory_space<vmem>>, vector<160x256xf32>
    tpu.vector_store %arg12[%c0_95, %c0_96], %84 {strides = array<i32>} : memref<160x256xf32, #tpu.memory_space<vmem>>, vector<160x256xf32>,
    %c4_97 = arith.constant 4 : index
    %c0_98 = arith.constant 0 : index
    %c0_99 = arith.constant 0 : index
    %86 = vector.load %arg13[%c4_97, %c0_98, %c0_99] : memref<14x16x128xbf16, #tpu.memory_space<vmem>>, vector<10x16x128xbf16>
    %87 = vector.shape_cast %86 : vector<10x16x128xbf16> to vector<160x128xbf16>
    %c4_100 = arith.constant 4 : index
    %c0_101 = arith.constant 0 : index
    %c0_102 = arith.constant 0 : index
    %88 = vector.load %arg4[%c4_100, %c0_101, %c0_102] : memref<5x128x256xbf16, #tpu.memory_space<vmem>>, vector<1x128x256xbf16>
    %89 = vector.shape_cast %88 : vector<1x128x256xbf16> to vector<128x256xbf16>
    %cst_103 = arith.constant dense<0.000000e+00> : vector<160x256xf32>
    %90 = tpu.matmul %87, %89, %cst_103 {dimension_numbers = #tpu.dot_dimension_numbers<[1], [0], [0], [1], [0, 0, 1, 1], [], []>} : vector<160x128xbf16>, vector<128x256xbf16>, vector<160x256xf32> -> vector<160x256xf32>
    %c0_104 = arith.constant 0 : index
    %c0_105 = arith.constant 0 : index
    %91 = vector.load %arg12[%c0_104, %c0_105] : memref<160x256xf32, #tpu.memory_space<vmem>>, vector<160x256xf32>
    %92 = arith.addf %91, %90 : vector<160x256xf32>
    %c0_106 = arith.constant 0 : index
    %c0_107 = arith.constant 0 : index
    %93 = vector.load %arg12[%c0_106, %c0_107] : memref<160x256xf32, #tpu.memory_space<vmem>>, vector<160x256xf32>
    tpu.vector_store %arg12[%c0_106, %c0_107], %92 {strides = array<i32>} : memref<160x256xf32, #tpu.memory_space<vmem>>, vector<160x256xf32>,
    %c0_108 = arith.constant 0 : index
    %c0_109 = arith.constant 0 : index
    %94 = vector.load %arg12[%c0_108, %c0_109] : memref<160x256xf32, #tpu.memory_space<vmem>>, vector<160x256xf32>
    %95 = vector.shape_cast %94 : vector<160x256xf32> to vector<5x2x16x256xf32>
    %96 = vector.extract_strided_slice %95 {offsets = [0, 0, 0, 0], sizes = [5, 1, 16, 256], strides = [1, 1, 1, 1]} : vector<5x2x16x256xf32> to vector<5x1x16x256xf32>
    %97 = vector.shape_cast %96 : vector<5x1x16x256xf32> to vector<5x16x256xf32>
    %98 = vector.extract_strided_slice %95 {offsets = [0, 1, 0, 0], sizes = [5, 1, 16, 256], strides = [1, 1, 1, 1]} : vector<5x2x16x256xf32> to vector<5x1x16x256xf32>
    %99 = vector.shape_cast %98 : vector<5x1x16x256xf32> to vector<5x16x256xf32>
    %100 = arith.maximumf %97, %99 : vector<5x16x256xf32>
    %101 = vector.extract_strided_slice %100 {offsets = [0, 0, 0], sizes = [5, 16, 128], strides = [1, 1, 1]} : vector<5x16x256xf32> to vector<5x16x128xf32>
    %102 = vector.extract_strided_slice %100 {offsets = [0, 0, 128], sizes = [5, 16, 128], strides = [1, 1, 1]} : vector<5x16x256xf32> to vector<5x16x128xf32>
    %103 = arith.maximumf %101, %102 : vector<5x16x128xf32>
    %c0_110 = arith.constant 0 : index
    %c0_111 = arith.constant 0 : index
    %104 = vector.load %arg5[%c0_110, %c0_111] : memref<1x128xf32, #tpu.memory_space<vmem>>, vector<1x128xf32>
    %105 = vector.shape_cast %104 : vector<1x128xf32> to vector<1x1x128xf32>
    %106 = vector.broadcast %105 : vector<1x1x128xf32> to vector<5x16x128xf32>
    %107 = arith.addf %103, %106 : vector<5x16x128xf32>
    %cst_112 = arith.constant 0.000000e+00 : f32
    %108 = vector.broadcast %cst_112 : f32 to vector<5x16x128xf32>
    %109 = arith.maximumf %107, %108 : vector<5x16x128xf32>
    %110 = arith.truncf %109 : vector<5x16x128xf32> to vector<5x16x128xbf16>
    %c0_113 = arith.constant 0 : index
    %c0_114 = arith.constant 0 : index
    %c0_115 = arith.constant 0 : index
    %111 = vector.load %arg14[%c0_113, %c0_114, %c0_115] : memref<5x16x128xbf16, #tpu.memory_space<vmem>>, vector<5x16x128xbf16>
    tpu.vector_store %arg14[%c0_113, %c0_114, %c0_115], %110 {strides = array<i32>} : memref<5x16x128xbf16, #tpu.memory_space<vmem>>, vector<5x16x128xbf16>,
    %c0_116 = arith.constant 0 : index
    %c0_117 = arith.constant 0 : index
    %c0_118 = arith.constant 0 : index
    %112 = vector.load %arg14[%c0_116, %c0_117, %c0_118] : memref<5x16x128xbf16, #tpu.memory_space<vmem>>, vector<1x16x128xbf16>
    %113 = vector.shape_cast %112 : vector<1x16x128xbf16> to vector<16x128xbf16>
    %c0_119 = arith.constant 0 : index
    %c0_120 = arith.constant 0 : index
    %c0_121 = arith.constant 0 : index
    %114 = vector.load %arg6[%c0_119, %c0_120, %c0_121] : memref<5x128x64xbf16, #tpu.memory_space<vmem>>, vector<1x128x64xbf16>
    %115 = vector.shape_cast %114 : vector<1x128x64xbf16> to vector<128x64xbf16>
    %cst_122 = arith.constant dense<0.000000e+00> : vector<16x64xf32>
    %116 = tpu.matmul %113, %115, %cst_122 {dimension_numbers = #tpu.dot_dimension_numbers<[1], [0], [0], [1], [0, 0, 1, 1], [], []>} : vector<16x128xbf16>, vector<128x64xbf16>, vector<16x64xf32> -> vector<16x64xf32>
    %c1_123 = arith.constant 1 : index
    %c0_124 = arith.constant 0 : index
    %c0_125 = arith.constant 0 : index
    %117 = vector.load %arg14[%c1_123, %c0_124, %c0_125] : memref<5x16x128xbf16, #tpu.memory_space<vmem>>, vector<1x16x128xbf16>
    %118 = vector.shape_cast %117 : vector<1x16x128xbf16> to vector<16x128xbf16>
    %c1_126 = arith.constant 1 : index
    %c0_127 = arith.constant 0 : index
    %c0_128 = arith.constant 0 : index
    %119 = vector.load %arg6[%c1_126, %c0_127, %c0_128] : memref<5x128x64xbf16, #tpu.memory_space<vmem>>, vector<1x128x64xbf16>
    %120 = vector.shape_cast %119 : vector<1x128x64xbf16> to vector<128x64xbf16>
    %cst_129 = arith.constant dense<0.000000e+00> : vector<16x64xf32>
    %121 = tpu.matmul %118, %120, %cst_129 {dimension_numbers = #tpu.dot_dimension_numbers<[1], [0], [0], [1], [0, 0, 1, 1], [], []>} : vector<16x128xbf16>, vector<128x64xbf16>, vector<16x64xf32> -> vector<16x64xf32>
    %122 = arith.addf %116, %121 : vector<16x64xf32>
    %c2_130 = arith.constant 2 : index
    %c0_131 = arith.constant 0 : index
    %c0_132 = arith.constant 0 : index
    %123 = vector.load %arg14[%c2_130, %c0_131, %c0_132] : memref<5x16x128xbf16, #tpu.memory_space<vmem>>, vector<1x16x128xbf16>
    %124 = vector.shape_cast %123 : vector<1x16x128xbf16> to vector<16x128xbf16>
    %c2_133 = arith.constant 2 : index
    %c0_134 = arith.constant 0 : index
    %c0_135 = arith.constant 0 : index
    %125 = vector.load %arg6[%c2_133, %c0_134, %c0_135] : memref<5x128x64xbf16, #tpu.memory_space<vmem>>, vector<1x128x64xbf16>
    %126 = vector.shape_cast %125 : vector<1x128x64xbf16> to vector<128x64xbf16>
    %cst_136 = arith.constant dense<0.000000e+00> : vector<16x64xf32>
    %127 = tpu.matmul %124, %126, %cst_136 {dimension_numbers = #tpu.dot_dimension_numbers<[1], [0], [0], [1], [0, 0, 1, 1], [], []>} : vector<16x128xbf16>, vector<128x64xbf16>, vector<16x64xf32> -> vector<16x64xf32>
    %128 = arith.addf %122, %127 : vector<16x64xf32>
    %c3_137 = arith.constant 3 : index
    %c0_138 = arith.constant 0 : index
    %c0_139 = arith.constant 0 : index
    %129 = vector.load %arg14[%c3_137, %c0_138, %c0_139] : memref<5x16x128xbf16, #tpu.memory_space<vmem>>, vector<1x16x128xbf16>
    %130 = vector.shape_cast %129 : vector<1x16x128xbf16> to vector<16x128xbf16>
    %c3_140 = arith.constant 3 : index
    %c0_141 = arith.constant 0 : index
    %c0_142 = arith.constant 0 : index
    %131 = vector.load %arg6[%c3_140, %c0_141, %c0_142] : memref<5x128x64xbf16, #tpu.memory_space<vmem>>, vector<1x128x64xbf16>
    %132 = vector.shape_cast %131 : vector<1x128x64xbf16> to vector<128x64xbf16>
    %cst_143 = arith.constant dense<0.000000e+00> : vector<16x64xf32>
    %133 = tpu.matmul %130, %132, %cst_143 {dimension_numbers = #tpu.dot_dimension_numbers<[1], [0], [0], [1], [0, 0, 1, 1], [], []>} : vector<16x128xbf16>, vector<128x64xbf16>, vector<16x64xf32> -> vector<16x64xf32>
    %134 = arith.addf %128, %133 : vector<16x64xf32>
    %c4_144 = arith.constant 4 : index
    %c0_145 = arith.constant 0 : index
    %c0_146 = arith.constant 0 : index
    %135 = vector.load %arg14[%c4_144, %c0_145, %c0_146] : memref<5x16x128xbf16, #tpu.memory_space<vmem>>, vector<1x16x128xbf16>
    %136 = vector.shape_cast %135 : vector<1x16x128xbf16> to vector<16x128xbf16>
    %c4_147 = arith.constant 4 : index
    %c0_148 = arith.constant 0 : index
    %c0_149 = arith.constant 0 : index
    %137 = vector.load %arg6[%c4_147, %c0_148, %c0_149] : memref<5x128x64xbf16, #tpu.memory_space<vmem>>, vector<1x128x64xbf16>
    %138 = vector.shape_cast %137 : vector<1x128x64xbf16> to vector<128x64xbf16>
    %cst_150 = arith.constant dense<0.000000e+00> : vector<16x64xf32>
    %139 = tpu.matmul %136, %138, %cst_150 {dimension_numbers = #tpu.dot_dimension_numbers<[1], [0], [0], [1], [0, 0, 1, 1], [], []>} : vector<16x128xbf16>, vector<128x64xbf16>, vector<16x64xf32> -> vector<16x64xf32>
    %140 = arith.addf %134, %139 : vector<16x64xf32>
    %c0_151 = arith.constant 0 : index
    %c0_152 = arith.constant 0 : index
    %141 = vector.load %arg7[%c0_151, %c0_152] : memref<1x64xf32, #tpu.memory_space<vmem>>, vector<1x64xf32>
    %142 = vector.broadcast %141 : vector<1x64xf32> to vector<16x64xf32>
    %143 = arith.addf %140, %142 : vector<16x64xf32>
    %cst_153 = arith.constant 0.000000e+00 : f32
    %144 = vector.broadcast %cst_153 : f32 to vector<16x64xf32>
    %145 = arith.maximumf %143, %144 : vector<16x64xf32>
    %146 = arith.truncf %145 : vector<16x64xf32> to vector<16x64xbf16>
    %c0_154 = arith.constant 0 : index
    %c0_155 = arith.constant 0 : index
    %147 = vector.load %arg8[%c0_154, %c0_155] : memref<64x128xbf16, #tpu.memory_space<vmem>>, vector<64x128xbf16>
    %cst_156 = arith.constant dense<0.000000e+00> : vector<16x128xf32>
    %148 = tpu.matmul %146, %147, %cst_156 {dimension_numbers = #tpu.dot_dimension_numbers<[1], [0], [0], [1], [0, 0, 1, 1], [], []>} : vector<16x64xbf16>, vector<64x128xbf16>, vector<16x128xf32> -> vector<16x128xf32>
    %c0_157 = arith.constant 0 : index
    %c0_158 = arith.constant 0 : index
    %149 = vector.load %arg9[%c0_157, %c0_158] : memref<1x128xf32, #tpu.memory_space<vmem>>, vector<1x128xf32>
    %150 = vector.broadcast %149 : vector<1x128xf32> to vector<16x128xf32>
    %151 = arith.addf %148, %150 : vector<16x128xf32>
    %cst_159 = arith.constant dense<0xFF800000> : vector<16xf32>
    %152 = vector.multi_reduction <maximumf>, %151, %cst_159 [1] : vector<16x128xf32> to vector<16xf32>
    %153 = vector.shape_cast %152 : vector<16xf32> to vector<16x1xf32>
    %154 = vector.broadcast %153 : vector<16x1xf32> to vector<16x128xf32>
    %155 = arith.subf %151, %154 : vector<16x128xf32>
    %156 = math.exp %155 : vector<16x128xf32>
    %cst_160 = arith.constant dense<0.000000e+00> : vector<16xf32>
    %157 = vector.multi_reduction <add>, %156, %cst_160 [1] : vector<16x128xf32> to vector<16xf32>
    %158 = vector.shape_cast %157 : vector<16xf32> to vector<16x1xf32>
    %159 = vector.broadcast %153 : vector<16x1xf32> to vector<16x128xf32>
    %160 = arith.subf %151, %159 : vector<16x128xf32>
    %161 = math.log %158 : vector<16x1xf32>
    %162 = vector.broadcast %161 : vector<16x1xf32> to vector<16x128xf32>
    %163 = arith.subf %160, %162 : vector<16x128xf32>
    %c0_161 = arith.constant 0 : index
    %c0_162 = arith.constant 0 : index
    %164 = vector.load %arg10[%c0_161, %c0_162] : memref<16x128xf32, #tpu.memory_space<vmem>>, vector<16x128xf32>
    tpu.vector_store %arg10[%c0_161, %c0_162], %163 {strides = array<i32>} : memref<16x128xf32, #tpu.memory_space<vmem>>, vector<16x128xf32>,
    return
  }
  func.func @transform_0(%arg0: i32) -> (i32, i32, i32) {
    %c0_i32 = arith.constant 0 : i32
    %c0_i32_0 = arith.constant 0 : i32
    %c0_i32_1 = arith.constant 0 : i32
    return %c0_i32, %arg0, %c0_i32_0 : i32, i32, i32
  }
  func.func @transform_1(%arg0: i32) -> (i32, i32, i32) {
    %c0_i32 = arith.constant 0 : i32
    %c0_i32_0 = arith.constant 0 : i32
    %c0_i32_1 = arith.constant 0 : i32
    %c0_i32_2 = arith.constant 0 : i32
    return %c0_i32, %c0_i32_0, %c0_i32_1 : i32, i32, i32
  }
  func.func @transform_2(%arg0: i32) -> (i32, i32) {
    %c0_i32 = arith.constant 0 : i32
    %c0_i32_0 = arith.constant 0 : i32
    %c0_i32_1 = arith.constant 0 : i32
    return %c0_i32, %c0_i32_0 : i32, i32
  }
  func.func @transform_3(%arg0: i32) -> (i32, i32, i32) {
    %c0_i32 = arith.constant 0 : i32
    %c0_i32_0 = arith.constant 0 : i32
    %c0_i32_1 = arith.constant 0 : i32
    %c0_i32_2 = arith.constant 0 : i32
    return %c0_i32, %c0_i32_0, %c0_i32_1 : i32, i32, i32
  }
  func.func @transform_4(%arg0: i32) -> (i32, i32) {
    %c0_i32 = arith.constant 0 : i32
    %c0_i32_0 = arith.constant 0 : i32
    %c0_i32_1 = arith.constant 0 : i32
    return %c0_i32, %c0_i32_0 : i32, i32
  }
  func.func @transform_5(%arg0: i32) -> (i32, i32, i32) {
    %c0_i32 = arith.constant 0 : i32
    %c0_i32_0 = arith.constant 0 : i32
    %c0_i32_1 = arith.constant 0 : i32
    %c0_i32_2 = arith.constant 0 : i32
    return %c0_i32, %c0_i32_0, %c0_i32_1 : i32, i32, i32
  }
  func.func @transform_6(%arg0: i32) -> (i32, i32) {
    %c0_i32 = arith.constant 0 : i32
    %c0_i32_0 = arith.constant 0 : i32
    %c0_i32_1 = arith.constant 0 : i32
    return %c0_i32, %c0_i32_0 : i32, i32
  }
  func.func @transform_7(%arg0: i32) -> (i32, i32) {
    %c0_i32 = arith.constant 0 : i32
    %c0_i32_0 = arith.constant 0 : i32
    %c0_i32_1 = arith.constant 0 : i32
    return %c0_i32, %c0_i32_0 : i32, i32
  }
  func.func @transform_8(%arg0: i32) -> (i32, i32) {
    %c0_i32 = arith.constant 0 : i32
    %c0_i32_0 = arith.constant 0 : i32
    %c0_i32_1 = arith.constant 0 : i32
    return %c0_i32, %c0_i32_0 : i32, i32
  }
  func.func @transform_9(%arg0: i32) -> (i32, i32) {
    %c0_i32 = arith.constant 0 : i32
    %c0_i32_0 = arith.constant 0 : i32
    return %arg0, %c0_i32 : i32, i32
  }
}

</mosaic_0001>

<bundles_post_ra>
// kernel: cnn_femnist_forward.1
= control target key start
LH: loop header
LB: loop body
LE: loop exit
PB: predicated region body
PF: predicated region fallthrough
CT: control target
= control target key end

     0   :  { %v11614_v1 = vmov 0   ;;  %vm301_vm0 = vcmask 785408   ;;  %vm9676_vm1 = vmmov 0   ;;  %vm7535_vm2 = vcmask 523264   ;;  %s11604_s1 = inlined_call_operand.vmem [shape: bf16[5,96,256], index: 1, kind: input, shape index: {}]   ;;  %s11605_s0 = inlined_call_operand.vmem [shape: bf16[32,16,96], index: 0, kind: input, shape index: {}]   ;;  %s11606_s3 = inlined_call_operand.vmem [shape: bf16[5,128,256], index: 3, kind: input, shape index: {}]   ;;  %s11607_s2 = inlined_call_operand.vmem [shape: f32[1,128], index: 2, kind: input, shape index: {}]   ;;  %s11608_s5 = inlined_call_operand.vmem [shape: bf16[5,128,64], index: 5, kind: input, shape index: {}]   ;;  %s11609_s4 = inlined_call_operand.vmem [shape: f32[1,128], index: 4, kind: input, shape index: {}]   ;;  %s11610_s7 = inlined_call_operand.vmem [shape: bf16[64,128], index: 7, kind: input, shape index: {}]   ;;  %s11611_s6 = inlined_call_operand.vmem [shape: f32[1,64], index: 6, kind: input, shape index: {}]   ;;  %s11612_s8 = inlined_call_operand.vmem [shape: f32[1,128], index: 8, kind: input, shape index: {}]   ;;  %s11613_s9 = inlined_call_operand.vmem [shape: f32[16,128], index: 9, kind: output, shape index: {}]  }
   0x1   :  { %v9260_v0 = vld [vmem:[%s11604_s1 + $0x64] ss:$8 sps:$4 sm:$0xff]   ;;  %1197 = vmatprep.mubr.bf16.mxu0 %v11614_v1  ;;  %418 = vmatprep.mubr.bf16.mxu1 %v11614_v1  ;;  %v9262_v2 = vld [vmem:[%s11604_s1 + $0x60] ss:$8 sps:$4 sm:$0xff]   ;;  %v9263_v3 = vld [vmem:[%s11604_s1 + $0x74] ss:$8 sps:$4 sm:$0xff]  }
   0x2   :  { %1165 = vmatprep.subr.bf16.mxu0 %v9260_v0  ;;  %v9265_v4 = vld [vmem:[%s11604_s1 + $0x70] ss:$8 sps:$4 sm:$0xff]   ;;  %v9266_v5 = vld [vmem:[%s11604_s1 + $0x84] ss:$8 sps:$4 sm:$0xff]   ;;  %v9268_v6 = vld [vmem:[%s11604_s1 + $0x80] ss:$8 sps:$4 sm:$0xff]  }
   0x3   :  { %1166 = vmatpush1.bf16.msra.mxu0 %v9262_v2  ;;  %v9269_v7 = vld [vmem:[%s11604_s1 + $0x94] ss:$8 sps:$4 sm:$0xff]   ;;  %v9271_v8 = vld [vmem:[%s11604_s1 + $0x90] ss:$8 sps:$4 sm:$0xff]   ;;  %v9272_v9 = vld [vmem:[%s11604_s1 + $0xa4] ss:$8 sps:$4 sm:$0xff]  }
   0x4   :  { %1167 = vmatprep.subr.bf16.mxu0 %v9263_v3  ;;  %v9274_v10 = vld [vmem:[%s11604_s1 + $0xa0] ss:$8 sps:$4 sm:$0xff]   ;;  %v9275_v11 = vld [vmem:[%s11604_s1 + $0xb4] ss:$8 sps:$4 sm:$0xff]   ;;  %v9277_v12 = vld [vmem:[%s11604_s1 + $0xb0] ss:$8 sps:$4 sm:$0xff]  }
   0x5   :  { %v9281_v13 = vld [vmem:[%s11604_s1 + $0xc4] ss:$8 sps:$4 sm:$0xff]   ;;  %v9279_v15 = vld [vmem:[%s11604_s1 + $0xc0] ss:$8 sps:$4 sm:$0xff]   ;;  %v9287_v16 = vld [vmem:[%s11604_s1 + $0xd4] ss:$8 sps:$4 sm:$0xff]  }
   0x6   :  { %v9278_v14 = vld [vmem:[%s11605_s0 + $0x8] sm:$0xff]   ;;  %v9285_v17 = vld [vmem:[%s11604_s1 + $0xd0] ss:$8 sps:$4 sm:$0xff]   ;;  %v9300_v21 = vld [vmem:[%s11604_s1 + $0xf4] ss:$8 sps:$4 sm:$0xff]  }
   0x7   :  { %1168 = vmatpush1.bf16.msra.mxu0 %v9265_v4  ;;  %v9294_v18 = vld [vmem:[%s11604_s1 + $0xe4] ss:$8 sps:$4 sm:$0xff]   ;;  %v9282_v19 = vld [vmem:[%s11605_s0 + $0x10] sm:$0xff]   ;;  %v9292_v20 = vld [vmem:[%s11604_s1 + $0xe0] ss:$8 sps:$4 sm:$0xff]  }
   0x8   :  { %1169 = vmatprep.subr.bf16.mxu0 %v9266_v5  ;;  %v9298_v22 = vld [vmem:[%s11604_s1 + $0xf0] ss:$8 sps:$4 sm:$0xff]   ;;  %v9307_v23 = vld [vmem:[%s11604_s1 + $0x104] ss:$8 sps:$4 sm:$0xff]   ;;  %v9305_v25 = vld [vmem:[%s11604_s1 + $0x100] ss:$8 sps:$4 sm:$0xff]  }
   0x9   :  { %v9283_v24 = vld [vmem:[%s11605_s0 + $0x18] sm:$0xff]   ;;  %v9284_v28 = vld [vmem:[%s11605_s0 + $0x20] sm:$0xff]   ;;  %v9288_v29 = vld [vmem:[%s11605_s0 + $0x28] sm:$0xff]  }
   0xa   :  { %v9313_v26 = vld [vmem:[%s11604_s1 + $0x114] ss:$8 sps:$4 sm:$0xff]   ;;  %v9311_v27 = vld [vmem:[%s11604_s1 + $0x110] ss:$8 sps:$4 sm:$0xff]   ;;  %v9320_v31 = vld [vmem:[%s11604_s1 + $0x124] ss:$8 sps:$4 sm:$0xff]  }
   0xb   :  { %1170 = vmatpush1.bf16.msra.mxu0 %v9268_v6  ;;  %v9289_v30 = vld [vmem:[%s11605_s0 + $0x30] sm:$0xff]   ;;  %v9290_v32 = vld [vmem:[%s11605_s0 + $0x38] sm:$0xff]   ;;  %v9291_v33 = vld [vmem:[%s11605_s0 + $0x40] sm:$0xff]  }
   0xc   :  { %1171 = vmatprep.subr.bf16.mxu0 %v9269_v7  ;;  %v9295_v34 = vld [vmem:[%s11605_s0 + $0x48] sm:$0xff]   ;;  %v9296_v35 = vld [vmem:[%s11605_s0 + $0x50] sm:$0xff]   ;;  %v9297_v36 = vld [vmem:[%s11605_s0 + $0x58] sm:$0xff]  }
   0xd   :  { %v9301_v37 = vld [vmem:[%s11605_s0 + $0x60] sm:$0xff]   ;;  %v9302_v38 = vld [vmem:[%s11605_s0 + $0x68] sm:$0xff]   ;;  %v9303_v39 = vld [vmem:[%s11605_s0 + $0x70] sm:$0xff]  }
   0xe   :  { %v9304_v40 = vld [vmem:[%s11605_s0 + $0x78] sm:$0xff]   ;;  %v9308_v41 = vld [vmem:[%s11605_s0 + $0x80] sm:$0xff]   ;;  %v9309_v42 = vld [vmem:[%s11605_s0 + $0x88] sm:$0xff]  }
   0xf   :  { %1172 = vmatpush1.bf16.msra.mxu0 %v9271_v8  ;;  %v9310_v43 = vld [vmem:[%s11605_s0 + $0x90] sm:$0xff]   ;;  %v9314_v44 = vld [vmem:[%s11605_s0 + $0x98] sm:$0xff]   ;;  %v9315_v45 = vld [vmem:[%s11605_s0 + $0xa0] sm:$0xff]  }
  0x10   :  { %1173 = vmatprep.subr.bf16.mxu0 %v9272_v9  ;;  %v9316_v46 = vld [vmem:[%s11605_s0 + $0xa8] sm:$0xff]   ;;  %v9317_v47 = vld [vmem:[%s11605_s0 + $0x10] sm:$0xff]   ;;  %v9321_v52 = vld [vmem:[%s11605_s0 + $0x18] sm:$0xff]  }
  0x11   :  { %v9318_v48 = vld [vmem:[%s11604_s1 + $0x120] ss:$8 sps:$4 sm:$0xff]   ;;  %v9327_v49 = vld [vmem:[%s11604_s1 + $0x134] ss:$8 sps:$4 sm:$0xff]   ;;  %v9325_v50 = vld [vmem:[%s11604_s1 + $0x130] ss:$8 sps:$4 sm:$0xff]  }
  0x12   :  { %v9335_v51 = vld [vmem:[%s11604_s1 + $0x144] ss:$8 sps:$4 sm:$0xff]   ;;  %v9333_v53 = vld [vmem:[%s11604_s1 + $0x140] ss:$8 sps:$4 sm:$0xff]   ;;  %v9343_v54 = vld [vmem:[%s11604_s1 + $0x154] ss:$8 sps:$4 sm:$0xff]  }
  0x13   :  { %1174 = vmatpush1.bf16.msra.mxu0 %v9274_v10  ;;  %v9341_v55 = vld [vmem:[%s11604_s1 + $0x150] ss:$8 sps:$4 sm:$0xff]   ;;  %v9322_v56 = vld [vmem:[%s11605_s0 + $0x20] sm:$0xff]   ;;  %v9323_v59 = vld [vmem:[%s11605_s0 + $0x28] sm:$0xff]  }
  0x14   :  { %1175 = vmatprep.subr.bf16.mxu0 %v9275_v11  ;;  %v9348_v57 = vld [vmem:[%s11604_s1 + $0x160] ss:$8 sps:$4 sm:$0xff]   ;;  %v9350_v58 = vld [vmem:[%s11604_s1 + $0x164] ss:$8 sps:$4 sm:$0xff]   ;;  %v9324_v60 = vld [vmem:[%s11605_s0 + $0x30] sm:$0xff]  }
  0x15   :  { %v9328_v61 = vld [vmem:[%s11605_s0 + $0x38] sm:$0xff]   ;;  %v9329_v62 = vld [vmem:[%s11605_s0 + $0x40] sm:$0xff]   ;;  %v9330_v63 = vld [vmem:[%s11605_s0 + $0x48] sm:$0xff]  }
  0x16   :  { %v9356_v0 = vld [vmem:[%s11604_s1 + $0x170] ss:$8 sps:$4 sm:$0xff]   ;;  %v9358_v2 = vld [vmem:[%s11604_s1 + $0x174] ss:$8 sps:$4 sm:$0xff]   ;;  %v9336_v5 = vld [vmem:[%s11605_s0 + $0x60] sm:$0xff]  }
  0x17   :  { %1176 = vmatpush1.bf16.msra.mxu0 %v9277_v12  ;;  %v9331_v3 = vld [vmem:[%s11605_s0 + $0x50] sm:$0xff]   ;;  %v9332_v4 = vld [vmem:[%s11605_s0 + $0x58] sm:$0xff]   ;;  %v9337_v6 = vld [vmem:[%s11605_s0 + $0x68] sm:$0xff]  }
  0x18   :  { %2168 = vmatprep.subr.bf16.mxu0 %v9281_v13  ;;  %v9338_v7 = vld [vmem:[%s11605_s0 + $0x70] sm:$0xff]   ;;  %v9366_v8 = vld [vmem:[%s11604_s1 + $0x184] ss:$8 sps:$4 sm:$0xff]   ;;  %v9339_v9 = vld [vmem:[%s11605_s0 + $0x78] sm:$0xff]  }
  0x19   :  { %v9340_v10 = vld [vmem:[%s11605_s0 + $0x80] sm:$0xff]   ;;  %v9344_v11 = vld [vmem:[%s11605_s0 + $0x88] sm:$0xff]   ;;  %v9345_v12 = vld [vmem:[%s11605_s0 + $0x90] sm:$0xff]  }
  0x1a   :  { %7782 = vmatmul.mubr.msk.bf16.vlgmr.msra.gmra.mrb[0].mxu0 %vm301_vm0, %v9278_v14  ;;  %v9346_v13 = vld [vmem:[%s11605_s0 + $0x98] sm:$0xff]   ;;  %v9347_v14 = vld [vmem:[%s11605_s0 + $0xa0] sm:$0xff]  }
  0x1b   :  { %2169 = vmatpush1.bf16.msra.mxu0 %v9279_v15  ;;  %1207 = vmatprep.mubr.bf16.mxu0 %v11614_v1  ;;  %v9351_v15 = vld [vmem:[%s11605_s0 + $0xa8] sm:$0xff]  }
  0x1c   :  { %2170 = vmatprep.subr.bf16.mxu0 %v9287_v16  ;;  %v9352_v16 = vld [vmem:[%s11605_s0 + $0xb0] sm:$0xff]  }
  0x1f   :  { %2171 = vmatpush1.bf16.msra.mxu0 %v9285_v17  ;;  %v9353_v17 = vld [vmem:[%s11605_s0 + $0xb8] sm:$0xff]  }
  0x20   :  { %2172 = vmatprep.subr.bf16.mxu0 %v9294_v18  ;;  %v9354_v18 = vld [vmem:[%s11605_s0 + $0xc0] sm:$0xff]  }
  0x22   :  { %7783 = vmatmul.mubr.msk.bf16.gmra.mrb[4].mxu0 %vm301_vm0, %v9282_v19  ;;  %v9355_v19 = vld [vmem:[%s11605_s0 + $0xc8] sm:$0xff]  }
  0x23   :  { %1217 = vmatprep.mubr.bf16.mxu0 %v11614_v1  ;;  %2173 = vmatpush1.bf16.msra.mxu0 %v9292_v20  ;;  %v9359_v20 = vld [vmem:[%s11605_s0 + $0xd0] sm:$0xff]  }
  0x24   :  { %2174 = vmatprep.subr.bf16.mxu0 %v9300_v21  ;;  %v9360_v21 = vld [vmem:[%s11605_s0 + $0xd8] sm:$0xff]  }
  0x27   :  { %2175 = vmatpush1.bf16.msra.mxu0 %v9298_v22  ;;  %v9361_v22 = vld [vmem:[%s11605_s0 + $0xe0] sm:$0xff]  }
  0x28   :  { %2176 = vmatprep.subr.bf16.mxu0 %v9307_v23  ;;  %v9362_v23 = vld [vmem:[%s11605_s0 + $0xe8] sm:$0xff]  }
  0x2a   :  { %7784 = vmatmul.mubr.msk.bf16.gmra.mrb[8].mxu0 %vm301_vm0, %v9283_v24  ;;  %v9363_v24 = vld [vmem:[%s11605_s0 + $0x18] sm:$0xff]  }
  0x2b   :  { %1227 = vmatprep.mubr.bf16.mxu0 %v11614_v1  ;;  %2177 = vmatpush1.bf16.msra.mxu0 %v9305_v25  ;;  %v9364_v25 = vld [vmem:[%s11604_s1 + $0x180] ss:$8 sps:$4 sm:$0xff]  }
  0x2c   :  { %2178 = vmatprep.subr.bf16.mxu0 %v9313_v26  ;;  %v9373_v26 = vld [vmem:[%s11604_s1 + $0x194] ss:$8 sps:$4 sm:$0xff]  }
  0x2f   :  { %2179 = vmatpush1.bf16.msra.mxu0 %v9311_v27  ;;  %v9371_v27 = vld [vmem:[%s11604_s1 + $0x190] ss:$8 sps:$4 sm:$0xff]  }
  0x30   :  { %3171 = vmatprep.subr.bf16.mxu0 %v9320_v31  ;;  %v9389_v31 = vld [vmem:[%s11604_s1 + $0x1b4] ss:$8 sps:$4 sm:$0xff]  }
  0x32   :  { %7785 = vmatmul.mubr.msk.bf16.gmra.mrb[12].mxu0 %vm301_vm0, %v9284_v28  ;;  %v9381_v28 = vld [vmem:[%s11604_s1 + $0x1a4] ss:$8 sps:$4 sm:$0xff]  }
  0x33   :  { %1237 = vmatprep.mubr.bf16.mxu0 %v11614_v1 }
  0x3a   :  { %7786 = vmatmul.mubr.msk.bf16.gmra.mrb[16].mxu0 %vm301_vm0, %v9288_v29  ;;  %v9367_v29 = vld [vmem:[%s11605_s0 + $0x20] sm:$0xff]  }
  0x3b   :  { %1247 = vmatprep.mubr.bf16.mxu0 %v11614_v1 }
  0x42   :  { %7787 = vmatmul.mubr.msk.bf16.gmra.mrb[20].mxu0 %vm301_vm0, %v9289_v30  ;;  %v9379_v30 = vld [vmem:[%s11604_s1 + $0x1a0] ss:$8 sps:$4 sm:$0xff]  }
  0x43   :  { %1257 = vmatprep.mubr.bf16.mxu0 %v11614_v1 }
  0x4a   :  { %7788 = vmatmul.mubr.msk.bf16.gmra.mrb[24].mxu0 %vm301_vm0, %v9290_v32  ;;  %v9387_v32 = vld [vmem:[%s11604_s1 + $0x1b0] ss:$8 sps:$4 sm:$0xff]  }
  0x4b   :  { %1267 = vmatprep.mubr.bf16.mxu0 %v11614_v1 }
  0x52   :  { %7789 = vmatmul.mubr.msk.bf16.gmra.mrb[28].mxu0 %vm301_vm0, %v9291_v33  ;;  %v9393_v33 = vld [vmem:[%s11604_s1 + $0x4] ss:$8 sps:$4 sm:$0xff]  }
  0x53   :  { %1277 = vmatprep.mubr.bf16.mxu0 %v11614_v1  ;;  %386 = vmatprep.subr.bf16.mxu1 %v9393_v33  ;;  %v9418_v33 = vld [vmem:[%s11605_s0 + $0xc0] sm:$0xff]  }
  0x5a   :  { %7790 = vmatmul.mubr.msk.bf16.gmra.mrb[32].mxu0 %vm301_vm0, %v9295_v34  ;;  %v9368_v34 = vld [vmem:[%s11605_s0 + $0x28] sm:$0xff]  }
  0x5b   :  { %1287 = vmatprep.mubr.bf16.mxu0 %v11614_v1 }
  0x62   :  { %7791 = vmatmul.mubr.msk.bf16.gmra.mrb[36].mxu0 %vm301_vm0, %v9296_v35  ;;  %v9396_v35 = vld [vmem:[%s11604_s1] ss:$8 sps:$4 sm:$0xff]  }
  0x63   :  { %1297 = vmatprep.mubr.bf16.mxu0 %v11614_v1  ;;  %387 = vmatpush1.bf16.msra.mxu1 %v9396_v35  ;;  %v9420_v35 = vld [vmem:[%s11605_s0 + $0xc8] sm:$0xff]  }
  0x6a   :  { %7792 = vmatmul.mubr.msk.bf16.gmra.mrb[40].mxu0 %vm301_vm0, %v9297_v36  ;;  %v9397_v36 = vld [vmem:[%s11604_s1 + $0x14] ss:$8 sps:$4 sm:$0xff]  }
  0x6b   :  { %1307 = vmatprep.mubr.bf16.mxu0 %v11614_v1  ;;  %388 = vmatprep.subr.bf16.mxu1 %v9397_v36  ;;  %v9454_v36 = vld [vmem:[%s11605_s0 + $0x88] sm:$0xff]  }
  0x72   :  { %7793 = vmatmul.mubr.msk.bf16.gmra.mrb[44].mxu0 %vm301_vm0, %v9301_v37  ;;  %v9400_v37 = vld [vmem:[%s11604_s1 + $0x1c0] ss:$8 sps:$4 sm:$0xff]  }
  0x73   :  { %1317 = vmatprep.mubr.bf16.mxu0 %v11614_v1 }
  0x7a   :  { %7794 = vmatmul.mubr.msk.bf16.gmra.mrb[48].mxu0 %vm301_vm0, %v9302_v38  ;;  %v9399_v38 = vld [vmem:[%s11604_s1 + $0x10] ss:$8 sps:$4 sm:$0xff]  }
  0x7b   :  { %1327 = vmatprep.mubr.bf16.mxu0 %v11614_v1  ;;  %389 = vmatpush1.bf16.msra.mxu1 %v9399_v38  ;;  %v9456_v38 = vld [vmem:[%s11605_s0 + $0x90] sm:$0xff]  }
  0x82   :  { %7795 = vmatmul.mubr.msk.bf16.gmra.mrb[52].mxu0 %vm301_vm0, %v9303_v39  ;;  %v9402_v39 = vld [vmem:[%s11604_s1 + $0x1c4] ss:$8 sps:$4 sm:$0xff]  }
  0x83   :  { %1337 = vmatprep.mubr.bf16.mxu0 %v11614_v1 }
  0x8a   :  { %7796 = vmatmul.mubr.msk.bf16.gmra.mrb[56].mxu0 %vm301_vm0, %v9304_v40  ;;  %v9403_v40 = vld [vmem:[%s11604_s1 + $0x24] ss:$8 sps:$4 sm:$0xff]  }
  0x8b   :  { %1347 = vmatprep.mubr.bf16.mxu0 %v11614_v1  ;;  %390 = vmatprep.subr.bf16.mxu1 %v9403_v40  ;;  %v9458_v40 = vld [vmem:[%s11605_s0 + $0x98] sm:$0xff]  }
  0x92   :  { %7797 = vmatmul.mubr.msk.bf16.gmra.mrb[60].mxu0 %vm301_vm0, %v9308_v41  ;;  %v9369_v41 = vld [vmem:[%s11605_s0 + $0x30] sm:$0xff]  }
  0x93   :  { %1357 = vmatprep.mubr.bf16.mxu0 %v11614_v1 }
  0x9a   :  { %7798 = vmatmul.mubr.msk.bf16.gmra.mrb[64].mxu0 %vm301_vm0, %v9309_v42  ;;  %v9406_v42 = vld [vmem:[%s11604_s1 + $0x20] ss:$8 sps:$4 sm:$0xff]  }
  0x9b   :  { %1367 = vmatprep.mubr.bf16.mxu0 %v11614_v1  ;;  %391 = vmatpush1.bf16.msra.mxu1 %v9406_v42  ;;  %v9460_v42 = vld [vmem:[%s11605_s0 + $0xa0] sm:$0xff]  }
  0xa2   :  { %7799 = vmatmul.mubr.msk.bf16.gmra.mrb[68].mxu0 %vm301_vm0, %v9310_v43  ;;  %v9407_v43 = vld [vmem:[%s11604_s1 + $0x34] ss:$8 sps:$4 sm:$0xff]  }
  0xa3   :  { %1377 = vmatprep.mubr.bf16.mxu0 %v11614_v1  ;;  %392 = vmatprep.subr.bf16.mxu1 %v9407_v43  ;;  %v9431_v43 = vld [vmem:[%s11605_s0 + $0xe8] sm:$0xff]  }
  0xaa   :  { %7800 = vmatmul.mubr.msk.bf16.gmra.mrb[72].mxu0 %vm301_vm0, %v9314_v44  ;;  %v9409_v44 = vld [vmem:[%s11604_s1 + $0x30] ss:$8 sps:$4 sm:$0xff]  }
  0xab   :  { %1387 = vmatprep.mubr.bf16.mxu0 %v11614_v1  ;;  %393 = vmatpush1.bf16.msra.mxu1 %v9409_v44  ;;  %v9462_v44 = vld [vmem:[%s11605_s0 + $0xa8] sm:$0xff]  }
  0xb2   :  { %7801 = vmatmul.mubr.msk.bf16.gmra.mrb[76].mxu0 %vm301_vm0, %v9315_v45  ;;  %v9410_v45 = vld [vmem:[%s11604_s1 + $0x44] ss:$8 sps:$4 sm:$0xff]  }
  0xb3   :  { %1397 = vmatprep.mubr.bf16.mxu0 %v11614_v1  ;;  %394 = vmatprep.subr.bf16.mxu1 %v9410_v45  ;;  %v9433_v45 = vld [vmem:[%s11605_s0 + $0xf0] sm:$0xff]  }
  0xba   :  { %7802 = vmatmul.mubr.msk.bf16.gmra.mrb[80].mxu0 %vm301_vm0, %v9316_v46  ;;  %v9370_v46 = vld [vmem:[%s11605_s0 + $0x38] sm:$0xff]  }
  0xbb   :  { %2200 = vmatprep.mubr.bf16.mxu0 %v11614_v1 }
  0xc2   :  { %7918 = vmatmul.mubr.msk.bf16.vlgmr.msra.gmra.mrb[0].mxu0 %vm301_vm0, %v9317_v47  ;;  %v9413_v47 = vld [vmem:[%s11604_s1 + $0x40] ss:$8 sps:$4 sm:$0xff]  }
  0xc3   :  { %3172 = vmatpush1.bf16.msra.mxu0 %v9318_v48  ;;  %2210 = vmatprep.mubr.bf16.mxu0 %v11614_v1  ;;  %v9414_v48 = vld [vmem:[%s11604_s1 + $0x54] ss:$8 sps:$4 sm:$0xff]  }
  0xc4   :  { %3173 = vmatprep.subr.bf16.mxu0 %v9327_v49  ;;  %395 = vmatpush1.bf16.msra.mxu1 %v9413_v47  ;;  %v9416_v49 = vld [vmem:[%s11604_s1 + $0x50] ss:$8 sps:$4 sm:$0xff]   ;;  %v9435_v47 = vld [vmem:[%s11605_s0 + $0x20] sm:$0xff]  }
  0xc5   :  { %396 = vmatprep.subr.bf16.mxu1 %v9414_v48  ;;  %v9466_v48 = vld [vmem:[%s11605_s0 + $0xb8] sm:$0xff]  }
  0xc7   :  { %3174 = vmatpush1.bf16.msra.mxu0 %v9325_v50  ;;  %v9374_v50 = vld [vmem:[%s11605_s0 + $0x40] sm:$0xff]  }
  0xc8   :  { %3175 = vmatprep.subr.bf16.mxu0 %v9335_v51  ;;  %v9417_v51 = vld [vmem:[%s11605_s0] sm:$0xff]   ;;  %397 = vmatpush1.bf16.msra.mxu1 %v9416_v49  ;;  %v9437_v49 = vld [vmem:[%s11605_s0 + $0x28] sm:$0xff]  }
  0xca   :  { %7919 = vmatmul.mubr.msk.bf16.gmra.mrb[4].mxu0 %vm301_vm0, %v9321_v52  ;;  %v9662_v52 = vld [vmem:[%s11604_s1 + $0x64] ss:$8 sps:$4 sm:$0xff]  }
  0xcb   :  { %2220 = vmatprep.mubr.bf16.mxu0 %v11614_v1  ;;  %3176 = vmatpush1.bf16.msra.mxu0 %v9333_v53  ;;  %v9663_v53 = vld [vmem:[%s11604_s1 + $0x60] ss:$8 sps:$4 sm:$0xff]  }
  0xcc   :  { %3177 = vmatprep.subr.bf16.mxu0 %v9343_v54  ;;  %8637 = vmatprep.subr.bf16.mxu1 %v9662_v52  ;;  %v9664_v54 = vld [vmem:[%s11604_s1 + $0x74] ss:$8 sps:$4 sm:$0xff]   ;;  %v9470_v52 = vld [vmem:[%s11605_s0 + $0xc8] sm:$0xff]  }
  0xcd   :  { %7646 = vmatmul.mubr.msk.bf16.vlgmr.msra.gmra.mrb[0].mxu1 %vm301_vm0, %v9417_v51  ;;  %v9439_v51 = vld [vmem:[%s11605_s0 + $0x30] sm:$0xff]  }
  0xce   :  { %428 = vmatprep.mubr.bf16.mxu1 %v11614_v1  ;;  %8643 = vmatpush1.bf16.msra.mxu1 %v9663_v53  ;;  %v9441_v53 = vld [vmem:[%s11605_s0 + $0x38] sm:$0xff]  }
  0xcf   :  { %3178 = vmatpush1.bf16.msra.mxu0 %v9341_v55  ;;  %8638 = vmatprep.subr.bf16.mxu1 %v9664_v54  ;;  %v9375_v55 = vld [vmem:[%s11605_s0 + $0x48] sm:$0xff]   ;;  %v9472_v54 = vld [vmem:[%s11605_s0 + $0xd0] sm:$0xff]  }
  0xd0   :  { %3179 = vmatprep.subr.bf16.mxu0 %v9350_v58  ;;  %v9666_v58 = vld [vmem:[%s11604_s1 + $0x84] ss:$8 sps:$4 sm:$0xff]  }
  0xd2   :  { %7920 = vmatmul.mubr.msk.bf16.gmra.mrb[8].mxu0 %vm301_vm0, %v9322_v56  ;;  %v9419_v56 = vld [vmem:[%s11605_s0 + $0x8] sm:$0xff]  }
  0xd3   :  { %2230 = vmatprep.mubr.bf16.mxu0 %v11614_v1  ;;  %3180 = vmatpush1.bf16.msra.mxu0 %v9348_v57  ;;  %v9665_v57 = vld [vmem:[%s11604_s1 + $0x70] ss:$8 sps:$4 sm:$0xff]  }
  0xd4   :  { %3181 = vmatprep.subr.bf16.mxu0 %v9358_v2  ;;  %8644 = vmatpush1.bf16.msra.mxu1 %v9665_v57  ;;  %v9423_v2 = vld [vmem:[%s11604_s1 + $0x1d0] ss:$8 sps:$4 sm:$0xff]   ;;  %v9445_v57 = vld [vmem:[%s11605_s0 + $0x48] sm:$0xff]  }
  0xd5   :  { %8639 = vmatprep.subr.bf16.mxu1 %v9666_v58  ;;  %7647 = vmatmul.mubr.msk.bf16.gmra.mrb[4].mxu1 %vm301_vm0, %v9419_v56  ;;  %v9474_v56 = vld [vmem:[%s11605_s0 + $0xd8] sm:$0xff]   ;;  %v9476_v58 = vld [vmem:[%s11605_s0 + $0xb0] sm:$0xff]  }
  0xd6   :  { %438 = vmatprep.mubr.bf16.mxu1 %v11614_v1 }
  0xd7   :  { %3182 = vmatpush1.bf16.msra.mxu0 %v9356_v0  ;;  %v9670_v0 = vld [vmem:[%s11604_s1 + $0xa4] ss:$8 sps:$4 sm:$0xff]  }
  0xd8   :  { %4174 = vmatprep.subr.bf16.mxu0 %v9366_v8  ;;  %v9673_v8 = vld [vmem:[%s11604_s1 + $0xb0] ss:$8 sps:$4 sm:$0xff]  }
  0xda   :  { %7921 = vmatmul.mubr.msk.bf16.gmra.mrb[12].mxu0 %vm301_vm0, %v9323_v59  ;;  %v9667_v59 = vld [vmem:[%s11604_s1 + $0x80] ss:$8 sps:$4 sm:$0xff]  }
  0xdb   :  { %2240 = vmatprep.mubr.bf16.mxu0 %v11614_v1  ;;  %8645 = vmatpush1.bf16.msra.mxu1 %v9667_v59  ;;  %v9447_v59 = vld [vmem:[%s11605_s0 + $0x50] sm:$0xff]  }
  0xe2   :  { %7922 = vmatmul.mubr.msk.bf16.gmra.mrb[16].mxu0 %vm301_vm0, %v9324_v60  ;;  %v9668_v60 = vld [vmem:[%s11604_s1 + $0x94] ss:$8 sps:$4 sm:$0xff]  }
  0xe3   :  { %2250 = vmatprep.mubr.bf16.mxu0 %v11614_v1  ;;  %8640 = vmatprep.subr.bf16.mxu1 %v9668_v60  ;;  %v9478_v60 = vld [vmem:[%s11605_s0 + $0xb8] sm:$0xff]  }
  0xea   :  { %7923 = vmatmul.mubr.msk.bf16.gmra.mrb[20].mxu0 %vm301_vm0, %v9328_v61  ;;  %v9376_v61 = vld [vmem:[%s11605_s0 + $0x50] sm:$0xff]  }
  0xeb   :  { %2260 = vmatprep.mubr.bf16.mxu0 %v11614_v1 }
  0xf2   :  { %7924 = vmatmul.mubr.msk.bf16.gmra.mrb[24].mxu0 %vm301_vm0, %v9329_v62  ;;  %v9421_v62 = vld [vmem:[%s11605_s0 + $0x10] sm:$0xff]  }
  0xf3   :  { %2270 = vmatprep.mubr.bf16.mxu0 %v11614_v1  ;;  %7648 = vmatmul.mubr.msk.bf16.gmra.mrb[8].mxu1 %vm301_vm0, %v9421_v62  ;;  %v9480_v62 = vld [vmem:[%s11605_s0 + $0xc0] sm:$0xff]  }
  0xf4   :  { %448 = vmatprep.mubr.bf16.mxu1 %v11614_v1 }
  0xfa   :  { %7925 = vmatmul.mubr.msk.bf16.gmra.mrb[28].mxu0 %vm301_vm0, %v9330_v63  ;;  %v9669_v63 = vld [vmem:[%s11604_s1 + $0x90] ss:$8 sps:$4 sm:$0xff]  }
  0xfb   :  { %2280 = vmatprep.mubr.bf16.mxu0 %v11614_v1  ;;  %8646 = vmatpush1.bf16.msra.mxu1 %v9669_v63  ;;  %v9451_v63 = vld [vmem:[%s11605_s0 + $0x60] sm:$0xff]  }
  0xfc   :  { %8641 = vmatprep.subr.bf16.mxu1 %v9670_v0  ;;  %v9482_v0 = vld [vmem:[%s11605_s0 + $0xc8] sm:$0xff]  }
 0x102   :  { %7926 = vmatmul.mubr.msk.bf16.gmra.mrb[32].mxu0 %vm301_vm0, %v9331_v3  ;;  %v9425_v3 = vld [vmem:[%s11604_s1 + $0x1d4] ss:$8 sps:$4 sm:$0xff]  }
 0x103   :  { %2290 = vmatprep.mubr.bf16.mxu0 %v11614_v1 }
 0x10a   :  { %7927 = vmatmul.mubr.msk.bf16.gmra.mrb[36].mxu0 %vm301_vm0, %v9332_v4  ;;  %v9671_v4 = vld [vmem:[%s11604_s1 + $0xa0] ss:$8 sps:$4 sm:$0xff]  }
 0x10b   :  { %2300 = vmatprep.mubr.bf16.mxu0 %v11614_v1  ;;  %8647 = vmatpush1.bf16.msra.mxu1 %v9671_v4  ;;  %v9486_v4 = vld [vmem:[%s11606_s3] ss:$8 sps:$4 sm:$0xff]  }
 0x112   :  { %7928 = vmatmul.mubr.msk.bf16.gmra.mrb[40].mxu0 %vm301_vm0, %v9336_v5  ;;  %v9672_v5 = vld [vmem:[%s11604_s1 + $0xb4] ss:$8 sps:$4 sm:$0xff]  }
 0x113   :  { %2310 = vmatprep.mubr.bf16.mxu0 %v11614_v1  ;;  %8642 = vmatprep.subr.bf16.mxu1 %v9672_v5  ;;  %v9488_v5 = vld [vmem:[%s11606_s3 + $0x4] ss:$8 sps:$4 sm:$0xff]  }
 0x114   :  { %8648 = vmatpush1.bf16.msra.mxu1 %v9673_v8  ;;  %v9491_v8 = vld [vmem:[%s11606_s3 + $0x14] ss:$8 sps:$4 sm:$0xff]  }
 0x115   :  { %5216 = vmatprep.subr.bf16.mxu1 %v9488_v5 }
 0x11a   :  { %7929 = vmatmul.mubr.msk.bf16.gmra.mrb[44].mxu0 %vm301_vm0, %v9337_v6  ;;  %v9377_v6 = vld [vmem:[%s11605_s0 + $0x58] sm:$0xff]  }
 0x11b   :  { %2320 = vmatprep.mubr.bf16.mxu0 %v11614_v1 }
 0x122   :  { %7930 = vmatmul.mubr.msk.bf16.gmra.mrb[48].mxu0 %vm301_vm0, %v9338_v7  ;;  %v9426_v7 = vld [vmem:[%s11605_s0 + $0x18] sm:$0xff]  }
 0x123   :  { %2330 = vmatprep.mubr.bf16.mxu0 %v11614_v1  ;;  %7649 = vmatmul.mubr.msk.bf16.gmra.mrb[12].mxu1 %vm301_vm0, %v9426_v7  ;;  %v9489_v7 = vld [vmem:[%s11606_s3 + $0x10] ss:$8 sps:$4 sm:$0xff]  }
 0x124   :  { %458 = vmatprep.mubr.bf16.mxu1 %v11614_v1 }
 0x12a   :  { %7931 = vmatmul.mubr.msk.bf16.gmra.mrb[52].mxu0 %vm301_vm0, %v9339_v9  ;;  %v9378_v9 = vld [vmem:[%s11605_s0 + $0x60] sm:$0xff]  }
 0x12b   :  { %2340 = vmatprep.mubr.bf16.mxu0 %v11614_v1 }
 0x132   :  { %7932 = vmatmul.mubr.msk.bf16.gmra.mrb[56].mxu0 %vm301_vm0, %v9340_v10  ;;  %v9428_v10 = vld [vmem:[%s11605_s0 + $0x20] sm:$0xff]  }
 0x133   :  { %2350 = vmatprep.mubr.bf16.mxu0 %v11614_v1  ;;  %7650 = vmatmul.mubr.msk.bf16.gmra.mrb[16].mxu1 %vm301_vm0, %v9428_v10 }
 0x134   :  { %468 = vmatprep.mubr.bf16.mxu1 %v11614_v1 }
 0x13a   :  { %7933 = vmatmul.mubr.msk.bf16.gmra.mrb[60].mxu0 %vm301_vm0, %v9344_v11  ;;  %v9382_v11 = vld [vmem:[%s11605_s0 + $0x68] sm:$0xff]  }
 0x13b   :  { %2360 = vmatprep.mubr.bf16.mxu0 %v11614_v1 }
 0x142   :  { %7934 = vmatmul.mubr.msk.bf16.gmra.mrb[64].mxu0 %vm301_vm0, %v9345_v12  ;;  %v9430_v12 = vld [vmem:[%s11605_s0 + $0x28] sm:$0xff]  }
 0x143   :  { %2370 = vmatprep.mubr.bf16.mxu0 %v11614_v1  ;;  %7651 = vmatmul.mubr.msk.bf16.gmra.mrb[20].mxu1 %vm301_vm0, %v9430_v12  ;;  %v9496_v12 = vld [vmem:[%s11606_s3 + $0x24] ss:$8 sps:$4 sm:$0xff]  }
 0x144   :  { %478 = vmatprep.mubr.bf16.mxu1 %v11614_v1 }
 0x14a   :  { %7935 = vmatmul.mubr.msk.bf16.gmra.mrb[68].mxu0 %vm301_vm0, %v9346_v13  ;;  %v9383_v13 = vld [vmem:[%s11605_s0 + $0x70] sm:$0xff]  }
 0x14b   :  { %2380 = vmatprep.mubr.bf16.mxu0 %v11614_v1 }
 0x152   :  { %7936 = vmatmul.mubr.msk.bf16.gmra.mrb[72].mxu0 %vm301_vm0, %v9347_v14  ;;  %v9432_v14 = vld [vmem:[%s11605_s0 + $0x30] sm:$0xff]  }
 0x153   :  { %2390 = vmatprep.mubr.bf16.mxu0 %v11614_v1  ;;  %7652 = vmatmul.mubr.msk.bf16.gmra.mrb[24].mxu1 %vm301_vm0, %v9432_v14 }
 0x154   :  { %488 = vmatprep.mubr.bf16.mxu1 %v11614_v1 }
 0x15a   :  { %7937 = vmatmul.mubr.msk.bf16.gmra.mrb[76].mxu0 %vm301_vm0, %v9351_v15  ;;  %v9384_v15 = vld [vmem:[%s11605_s0 + $0x78] sm:$0xff]  }
 0x15b   :  { %2400 = vmatprep.mubr.bf16.mxu0 %v11614_v1 }
 0x162   :  { %7938 = vmatmul.mubr.msk.bf16.gmra.mrb[80].mxu0 %vm301_vm0, %v9352_v16  ;;  %v9434_v16 = vld [vmem:[%s11605_s0 + $0x38] sm:$0xff]  }
 0x163   :  { %2410 = vmatprep.mubr.bf16.mxu0 %v11614_v1  ;;  %7653 = vmatmul.mubr.msk.bf16.gmra.mrb[28].mxu1 %vm301_vm0, %v9434_v16 }
 0x164   :  { %498 = vmatprep.mubr.bf16.mxu1 %v11614_v1 }
 0x16a   :  { %7939 = vmatmul.mubr.msk.bf16.gmra.mrb[84].mxu0 %vm301_vm0, %v9353_v17  ;;  %v9385_v17 = vld [vmem:[%s11605_s0 + $0x80] sm:$0xff]  }
 0x16b   :  { %2420 = vmatprep.mubr.bf16.mxu0 %v11614_v1 }
 0x172   :  { %7940 = vmatmul.mubr.msk.bf16.gmra.mrb[88].mxu0 %vm301_vm0, %v9354_v18  ;;  %v9436_v18 = vld [vmem:[%s11605_s0 + $0x40] sm:$0xff]  }
 0x173   :  { %2430 = vmatprep.mubr.bf16.mxu0 %v11614_v1  ;;  %7654 = vmatmul.mubr.msk.bf16.gmra.mrb[32].mxu1 %vm301_vm0, %v9436_v18  ;;  %v9497_v18 = vld [vmem:[%s11606_s3 + $0x30] ss:$8 sps:$4 sm:$0xff]  }
 0x174   :  { %508 = vmatprep.mubr.bf16.mxu1 %v11614_v1 }
 0x17a   :  { %7941 = vmatmul.mubr.msk.bf16.gmra.mrb[92].mxu0 %vm301_vm0, %v9355_v19  ;;  %v9386_v19 = vld [vmem:[%s11605_s0 + $0x88] sm:$0xff]  }
 0x17b   :  { %2440 = vmatprep.mubr.bf16.mxu0 %v11614_v1 }
 0x182   :  { %7942 = vmatmul.mubr.msk.bf16.gmra.mrb[96].mxu0 %vm301_vm0, %v9359_v20  ;;  %v9438_v20 = vld [vmem:[%s11605_s0 + $0x48] sm:$0xff]  }
 0x183   :  { %2450 = vmatprep.mubr.bf16.mxu0 %v11614_v1  ;;  %7655 = vmatmul.mubr.msk.bf16.gmra.mrb[36].mxu1 %vm301_vm0, %v9438_v20 }
 0x184   :  { %518 = vmatprep.mubr.bf16.mxu1 %v11614_v1 }
 0x18a   :  { %7943 = vmatmul.mubr.msk.bf16.gmra.mrb[100].mxu0 %vm301_vm0, %v9360_v21  ;;  %v9390_v21 = vld [vmem:[%s11605_s0 + $0x90] sm:$0xff]  }
 0x18b   :  { %2460 = vmatprep.mubr.bf16.mxu0 %v11614_v1 }
 0x192   :  { %7944 = vmatmul.mubr.msk.bf16.gmra.mrb[104].mxu0 %vm301_vm0, %v9361_v22  ;;  %v9440_v22 = vld [vmem:[%s11605_s0 + $0x50] sm:$0xff]  }
 0x193   :  { %2470 = vmatprep.mubr.bf16.mxu0 %v11614_v1  ;;  %7656 = vmatmul.mubr.msk.bf16.gmra.mrb[40].mxu1 %vm301_vm0, %v9440_v22  ;;  %v9504_v22 = vld [vmem:[%s11606_s3 + $0x44] ss:$8 sps:$4 sm:$0xff]  }
 0x194   :  { %528 = vmatprep.mubr.bf16.mxu1 %v11614_v1 }
 0x19a   :  { %7945 = vmatmul.mubr.msk.bf16.gmra.mrb[108].mxu0 %vm301_vm0, %v9362_v23  ;;  %v9391_v23 = vld [vmem:[%s11605_s0 + $0x98] sm:$0xff]  }
 0x19b   :  { %3203 = vmatprep.mubr.bf16.mxu0 %v11614_v1 }
 0x1a0   :  { %v10565_v10 = vpop.f32.mrb[0].mxu1 }
 0x1a2   :  { %8054 = vmatmul.mubr.msk.bf16.vlgmr.msra.gmra.mrb[0].mxu0 %vm301_vm0, %v9363_v24  ;;  %v9442_v24 = vld [vmem:[%s11605_s0 + $0x58] sm:$0xff]  }
 0x1a3   :  { %4175 = vmatpush1.bf16.msra.mxu0 %v9364_v25  ;;  %3213 = vmatprep.mubr.bf16.mxu0 %v11614_v1  ;;  %v9392_v25 = vld [vmem:[%s11605_s0 + $0xa0] sm:$0xff]  }
 0x1a4   :  { %4176 = vmatprep.subr.bf16.mxu0 %v9373_v26  ;;  %7657 = vmatmul.mubr.msk.bf16.gmra.mrb[44].mxu1 %vm301_vm0, %v9442_v24  ;;  %v9444_v26 = vld [vmem:[%s11605_s0 + $0x60] sm:$0xff]  }
 0x1a5   :  { %538 = vmatprep.mubr.bf16.mxu1 %v11614_v1 }
 0x1a7   :  { %4177 = vmatpush1.bf16.msra.mxu0 %v9371_v27  ;;  %v9395_v27 = vld [vmem:[%s11605_s0 + $0xa8] sm:$0xff]  }
 0x1a8   :  { %4178 = vmatprep.subr.bf16.mxu0 %v9381_v28  ;;  %v9446_v28 = vld [vmem:[%s11605_s0 + $0x68] sm:$0xff]  }
 0x1aa   :  { %8055 = vmatmul.mubr.msk.bf16.gmra.mrb[4].mxu0 %vm301_vm0, %v9367_v29  ;;  %v9405_v29 = vld [vmem:[%s11605_s0 + $0xb0] sm:$0xff]  }
 0x1ab   :  { %3223 = vmatprep.mubr.bf16.mxu0 %v11614_v1  ;;  %4179 = vmatpush1.bf16.msra.mxu0 %v9379_v30  ;;  %v9448_v30 = vld [vmem:[%s11605_s0 + $0x70] sm:$0xff]  }
 0x1ac   :  { %4180 = vmatprep.subr.bf16.mxu0 %v9389_v31  ;;  %7658 = vmatmul.mubr.msk.bf16.gmra.mrb[48].mxu1 %vm301_vm0, %v9444_v26  ;;  %v9412_v31 = vld [vmem:[%s11605_s0 + $0xb8] sm:$0xff]  }
 0x1ad   :  { %548 = vmatprep.mubr.bf16.mxu1 %v11614_v1 }
 0x1af   :  { %4181 = vmatpush1.bf16.msra.mxu0 %v9387_v32  ;;  %v9450_v32 = vld [vmem:[%s11605_s0 + $0x78] sm:$0xff]  }
 0x1b0   :  { %4182 = vmatprep.subr.bf16.mxu0 %v9402_v39  ;;  %v9427_v39 = vld [vmem:[%s11605_s0 + $0xd8] sm:$0xff]  }
 0x1b2   :  { %8056 = vmatmul.mubr.msk.bf16.gmra.mrb[8].mxu0 %vm301_vm0, %v9368_v34  ;;  %v9452_v34 = vld [vmem:[%s11605_s0 + $0x80] sm:$0xff]  }
 0x1b3   :  { %3233 = vmatprep.mubr.bf16.mxu0 %v11614_v1  ;;  %4183 = vmatpush1.bf16.msra.mxu0 %v9400_v37  ;;  %v9422_v37 = vld [vmem:[%s11605_s0 + $0xd0] sm:$0xff]  }
 0x1b4   :  { %4184 = vmatprep.subr.bf16.mxu0 %v9425_v3  ;;  %7659 = vmatmul.mubr.msk.bf16.gmra.mrb[52].mxu1 %vm301_vm0, %v9446_v28  ;;  %v9484_v3 = vld [vmem:[%s11605_s0 + $0xd0] sm:$0xff]  }
 0x1b5   :  { %558 = vmatprep.mubr.bf16.mxu1 %v11614_v1  ;;  %v9505_v28 = vld [vmem:[%s11606_s3 + $0x50] ss:$8 sps:$4 sm:$0xff]  }
 0x1b7   :  { %4185 = vmatpush1.bf16.msra.mxu0 %v9423_v2  ;;  %v9453_v2 = vld [vmem:[%s11605_s0 + $0x68] sm:$0xff]  }
 0x1ba   :  { %8057 = vmatmul.mubr.msk.bf16.gmra.mrb[12].mxu0 %vm301_vm0, %v9369_v41  ;;  %v9429_v41 = vld [vmem:[%s11605_s0 + $0xe0] sm:$0xff]  }
 0x1bb   :  { %3243 = vmatprep.mubr.bf16.mxu0 %v11614_v1 }
 0x1bc   :  { %7660 = vmatmul.mubr.msk.bf16.gmra.mrb[56].mxu1 %vm301_vm0, %v9448_v30 }
 0x1bd   :  { %568 = vmatprep.mubr.bf16.mxu1 %v11614_v1 }
 0x1c2   :  { %8058 = vmatmul.mubr.msk.bf16.gmra.mrb[16].mxu0 %vm301_vm0, %v9370_v46  ;;  %v9464_v46 = vld [vmem:[%s11605_s0 + $0xb0] sm:$0xff]  }
 0x1c3   :  { %3253 = vmatprep.mubr.bf16.mxu0 %v11614_v1 }
 0x1c4   :  { %7661 = vmatmul.mubr.msk.bf16.gmra.mrb[60].mxu1 %vm301_vm0, %v9450_v32  ;;  %v9461_v32 = vld [vmem:[%s11605_s0 + $0x88] sm:$0xff]  }
 0x1c5   :  { %578 = vmatprep.mubr.bf16.mxu1 %v11614_v1 }
 0x1ca   :  { %8059 = vmatmul.mubr.msk.bf16.gmra.mrb[20].mxu0 %vm301_vm0, %v9374_v50  ;;  %v9468_v50 = vld [vmem:[%s11605_s0 + $0xc0] sm:$0xff]  }
 0x1cb   :  { %3263 = vmatprep.mubr.bf16.mxu0 %v11614_v1 }
 0x1cc   :  { %7662 = vmatmul.mubr.msk.bf16.gmra.mrb[64].mxu1 %vm301_vm0, %v9452_v34  ;;  %v9508_v34 = vld [vmem:[%s11606_s3 + $0x60] ss:$8 sps:$4 sm:$0xff]  }
 0x1cd   :  { %588 = vmatprep.mubr.bf16.mxu1 %v11614_v1 }
 0x1d2   :  { %8060 = vmatmul.mubr.msk.bf16.gmra.mrb[24].mxu0 %vm301_vm0, %v9375_v55  ;;  %v9443_v55 = vld [vmem:[%s11605_s0 + $0x40] sm:$0xff]  }
 0x1d3   :  { %3273 = vmatprep.mubr.bf16.mxu0 %v11614_v1 }
 0x1d4   :  { %7663 = vmatmul.mubr.msk.bf16.gmra.mrb[68].mxu1 %vm301_vm0, %v9454_v36  ;;  %v9513_v36 = vld [vmem:[%s11606_s3 + $0x74] ss:$8 sps:$4 sm:$0xff]  }
 0x1d5   :  { %598 = vmatprep.mubr.bf16.mxu1 %v11614_v1 }
 0x1da   :  { %8061 = vmatmul.mubr.msk.bf16.gmra.mrb[28].mxu0 %vm301_vm0, %v9376_v61  ;;  %v9449_v61 = vld [vmem:[%s11605_s0 + $0x58] sm:$0xff]  }
 0x1db   :  { %3283 = vmatprep.mubr.bf16.mxu0 %v11614_v1 }
 0x1dc   :  { %7664 = vmatmul.mubr.msk.bf16.gmra.mrb[72].mxu1 %vm301_vm0, %v9456_v38 }
 0x1dd   :  { %608 = vmatprep.mubr.bf16.mxu1 %v11614_v1 }
 0x1e2   :  { %8062 = vmatmul.mubr.msk.bf16.gmra.mrb[32].mxu0 %vm301_vm0, %v9377_v6  ;;  %v9455_v6 = vld [vmem:[%s11605_s0 + $0x70] sm:$0xff]  }
 0x1e3   :  { %3293 = vmatprep.mubr.bf16.mxu0 %v11614_v1 }
 0x1e4   :  { %7665 = vmatmul.mubr.msk.bf16.gmra.mrb[76].mxu1 %vm301_vm0, %v9458_v40 }
 0x1e5   :  { %618 = vmatprep.mubr.bf16.mxu1 %v11614_v1 }
 0x1ea   :  { %8063 = vmatmul.mubr.msk.bf16.gmra.mrb[36].mxu0 %vm301_vm0, %v9378_v9  ;;  %v9492_v9 = vld [vmem:[%s11605_s0 + $0xd8] sm:$0xff]  }
 0x1eb   :  { %3303 = vmatprep.mubr.bf16.mxu0 %v11614_v1 }
 0x1ec   :  { %7666 = vmatmul.mubr.msk.bf16.gmra.mrb[80].mxu1 %vm301_vm0, %v9460_v42  ;;  %v9463_v42 = vld [vmem:[%s11605_s0 + $0x90] sm:$0xff]  }
 0x1ed   :  { %628 = vmatprep.mubr.bf16.mxu1 %v11614_v1 }
 0x1f2   :  { %8064 = vmatmul.mubr.msk.bf16.gmra.mrb[40].mxu0 %vm301_vm0, %v9382_v11  ;;  %v10568_v11 = vpop.f32.mrb[1].mxu1 }
 0x1f3   :  { %3313 = vmatprep.mubr.bf16.mxu0 %v11614_v1  ;;  %v10576_v14 = vpop.f32.mrb[2].mxu1 }
 0x1f4   :  { %7667 = vmatmul.mubr.msk.bf16.gmra.mrb[84].mxu1 %vm301_vm0, %v9462_v44  ;;  %v10582_v16 = vpop.f32.mrb[3].mxu1 }
 0x1f5   :  { %638 = vmatprep.mubr.bf16.mxu1 %v11614_v1  ;;  %v10595_v20 = vpop.f32.mrb[4].mxu1 }
 0x1fa   :  { %8065 = vmatmul.mubr.msk.bf16.gmra.mrb[44].mxu0 %vm301_vm0, %v9383_v13  ;;  %v9457_v13 = vld [vmem:[%s11605_s0 + $0x78] sm:$0xff]  }
 0x1fb   :  { %3323 = vmatprep.mubr.bf16.mxu0 %v11614_v1 }
 0x1fc   :  { %7668 = vmatmul.mubr.msk.bf16.gmra.mrb[88].mxu1 %vm301_vm0, %v9464_v46 }
 0x1fd   :  { %648 = vmatprep.mubr.bf16.mxu1 %v11614_v1 }
 0x202   :  { %8066 = vmatmul.mubr.msk.bf16.gmra.mrb[48].mxu0 %vm301_vm0, %v9384_v15  ;;  %v9494_v15 = vld [vmem:[%s11606_s3 + $0x20] ss:$8 sps:$4 sm:$0xff]  }
 0x203   :  { %3333 = vmatprep.mubr.bf16.mxu0 %v11614_v1 }
 0x204   :  { %7669 = vmatmul.mubr.msk.bf16.gmra.mrb[92].mxu1 %vm301_vm0, %v9466_v48 }
 0x205   :  { %658 = vmatprep.mubr.bf16.mxu1 %v11614_v1 }
 0x20a   :  { %8067 = vmatmul.mubr.msk.bf16.gmra.mrb[52].mxu0 %vm301_vm0, %v9385_v17  ;;  %v9499_v17 = vld [vmem:[%s11606_s3 + $0x34] ss:$8 sps:$4 sm:$0xff]  }
 0x20b   :  { %3343 = vmatprep.mubr.bf16.mxu0 %v11614_v1 }
 0x20c   :  { %7670 = vmatmul.mubr.msk.bf16.gmra.mrb[96].mxu1 %vm301_vm0, %v9468_v50 }
 0x20d   :  { %668 = vmatprep.mubr.bf16.mxu1 %v11614_v1 }
 0x212   :  { %8068 = vmatmul.mubr.msk.bf16.gmra.mrb[56].mxu0 %vm301_vm0, %v9386_v19  ;;  %v9500_v19 = vld [vmem:[%s11605_s0 + $0xe0] sm:$0xff]  }
 0x213   :  { %3353 = vmatprep.mubr.bf16.mxu0 %v11614_v1 }
 0x214   :  { %7671 = vmatmul.mubr.msk.bf16.gmra.mrb[100].mxu1 %vm301_vm0, %v9470_v52  ;;  %v9467_v52 = vld [vmem:[%s11605_s0 + $0xa0] sm:$0xff]  }
 0x215   :  { %678 = vmatprep.mubr.bf16.mxu1 %v11614_v1 }
 0x21a   :  { %8069 = vmatmul.mubr.msk.bf16.gmra.mrb[60].mxu0 %vm301_vm0, %v9390_v21  ;;  %v10598_v21 = vpop.f32.mrb[5].mxu1 }
 0x21b   :  { %3363 = vmatprep.mubr.bf16.mxu0 %v11614_v1  ;;  %v10606_v24 = vpop.f32.mrb[6].mxu1 }
 0x21c   :  { %7672 = vmatmul.mubr.msk.bf16.gmra.mrb[104].mxu1 %vm301_vm0, %v9472_v54  ;;  %v10612_v26 = vpop.f32.mrb[7].mxu1 }
 0x21d   :  { %688 = vmatprep.mubr.bf16.mxu1 %v11614_v1 }
 0x222   :  { %8070 = vmatmul.mubr.msk.bf16.gmra.mrb[64].mxu0 %vm301_vm0, %v9391_v23  ;;  %v9459_v23 = vld [vmem:[%s11605_s0 + $0x80] sm:$0xff]  }
 0x223   :  { %3373 = vmatprep.mubr.bf16.mxu0 %v11614_v1 }
 0x224   :  { %7673 = vmatmul.mubr.msk.bf16.gmra.mrb[108].mxu1 %vm301_vm0, %v9474_v56 }
 0x225   :  { %1407 = vmatprep.mubr.bf16.mxu1 %v11614_v1 }
 0x22a   :  { %8071 = vmatmul.mubr.msk.bf16.gmra.mrb[68].mxu0 %vm301_vm0, %v9392_v25  ;;  %v9502_v25 = vld [vmem:[%s11606_s3 + $0x40] ss:$8 sps:$4 sm:$0xff]  }
 0x22b   :  { %3383 = vmatprep.mubr.bf16.mxu0 %v11614_v1 }
 0x22c   :  { %7803 = vmatmul.mubr.msk.bf16.vlgmr.msra.gmra.mrb[84].mxu1 %vm301_vm0, %v9476_v58 }
 0x22d   :  { %1417 = vmatprep.mubr.bf16.mxu1 %v11614_v1  ;;  %5217 = vmatpush1.bf16.msra.mxu1 %v9486_v4  ;;  %v9473_v4 = vld [vmem:[%s11605_s0 + $0xb8] sm:$0xff]  }
 0x22e   :  { %5218 = vmatprep.subr.bf16.mxu1 %v9491_v8 }
 0x231   :  { %5219 = vmatpush1.bf16.msra.mxu1 %v9489_v7 }
 0x232   :  { %8072 = vmatmul.mubr.msk.bf16.gmra.mrb[72].mxu0 %vm301_vm0, %v9395_v27  ;;  %5220 = vmatprep.subr.bf16.mxu1 %v9496_v12  ;;  %v9507_v27 = vld [vmem:[%s11606_s3 + $0x54] ss:$8 sps:$4 sm:$0xff]  }
 0x233   :  { %3393 = vmatprep.mubr.bf16.mxu0 %v11614_v1 }
 0x234   :  { %7804 = vmatmul.mubr.msk.bf16.gmra.mrb[88].mxu1 %vm301_vm0, %v9478_v60 }
 0x235   :  { %1427 = vmatprep.mubr.bf16.mxu1 %v11614_v1  ;;  %5221 = vmatpush1.bf16.msra.mxu1 %v9494_v15 }
 0x236   :  { %5222 = vmatprep.subr.bf16.mxu1 %v9499_v17 }
 0x239   :  { %5223 = vmatpush1.bf16.msra.mxu1 %v9497_v18  ;;  %v9477_v18 = vld [vmem:[%s11605_s0 + $0xc8] sm:$0xff]  }
 0x23a   :  { %8073 = vmatmul.mubr.msk.bf16.gmra.mrb[76].mxu0 %vm301_vm0, %v9405_v29  ;;  %5224 = vmatprep.subr.bf16.mxu1 %v9504_v22  ;;  %v10621_v29 = vpop.f32.mrb[8].mxu1 }
 0x23b   :  { %3403 = vmatprep.mubr.bf16.mxu0 %v11614_v1  ;;  %v10624_v30 = vpop.f32.mrb[9].mxu1 }
 0x23c   :  { %7805 = vmatmul.mubr.msk.bf16.gmra.mrb[92].mxu1 %vm301_vm0, %v9480_v62  ;;  %v9471_v62 = vld [vmem:[%s11605_s0 + $0xb0] sm:$0xff]  }
 0x23d   :  { %1437 = vmatprep.mubr.bf16.mxu1 %v11614_v1  ;;  %5225 = vmatpush1.bf16.msra.mxu1 %v9502_v25 }
 0x23e   :  { %5226 = vmatprep.subr.bf16.mxu1 %v9507_v27  ;;  %v9479_v27 = vld [vmem:[%s11605_s0 + $0xd0] sm:$0xff]  }
 0x241   :  { %5227 = vmatpush1.bf16.msra.mxu1 %v9505_v28 }
 0x242   :  { %8074 = vmatmul.mubr.msk.bf16.gmra.mrb[80].mxu0 %vm301_vm0, %v9412_v31  ;;  %v9510_v31 = vld [vmem:[%s11606_s3 + $0x64] ss:$8 sps:$4 sm:$0xff]  }
 0x243   :  { %3413 = vmatprep.mubr.bf16.mxu0 %v11614_v1  ;;  %5228 = vmatprep.subr.bf16.mxu1 %v9510_v31 }
 0x244   :  { %7806 = vmatmul.mubr.msk.bf16.gmra.mrb[96].mxu1 %vm301_vm0, %v9482_v0 }
 0x245   :  { %1447 = vmatprep.mubr.bf16.mxu1 %v11614_v1  ;;  %5229 = vmatpush1.bf16.msra.mxu1 %v9508_v34 }
 0x246   :  { %5230 = vmatprep.subr.bf16.mxu1 %v9513_v36  ;;  %v9481_v36 = vld [vmem:[%s11605_s0 + $0xd8] sm:$0xff]  }
 0x24a   :  { %8075 = vmatmul.mubr.msk.bf16.gmra.mrb[84].mxu0 %vm301_vm0, %v9418_v33  ;;  %v10632_v33 = vpop.f32.mrb[10].mxu1 }
 0x24b   :  { %3423 = vmatprep.mubr.bf16.mxu0 %v11614_v1 }
 0x24c   :  { %7807 = vmatmul.mubr.msk.bf16.gmra.mrb[100].mxu1 %vm301_vm0, %v9484_v3 }
 0x24d   :  { %1457 = vmatprep.mubr.bf16.mxu1 %v11614_v1 }
 0x252   :  { %8076 = vmatmul.mubr.msk.bf16.gmra.mrb[88].mxu0 %vm301_vm0, %v9420_v35  ;;  %v10637_v35 = vpop.f32.mrb[11].mxu1 }
 0x253   :  { %3433 = vmatprep.mubr.bf16.mxu0 %v11614_v1  ;;  %v10646_v38 = vpop.f32.mrb[12].mxu1 }
 0x254   :  { %7808 = vmatmul.mubr.msk.bf16.gmra.mrb[104].mxu1 %vm301_vm0, %v9492_v9  ;;  %v9475_v9 = vld [vmem:[%s11605_s0 + $0xc0] sm:$0xff]  }
 0x255   :  { %1467 = vmatprep.mubr.bf16.mxu1 %v11614_v1 }
 0x25a   :  { %8077 = vmatmul.mubr.msk.bf16.gmra.mrb[92].mxu0 %vm301_vm0, %v9422_v37  ;;  %v9511_v37 = vld [vmem:[%s11606_s3 + $0x70] ss:$8 sps:$4 sm:$0xff]  }
 0x25b   :  { %3443 = vmatprep.mubr.bf16.mxu0 %v11614_v1  ;;  %5231 = vmatpush1.bf16.msra.mxu1 %v9511_v37 }
 0x25c   :  { %7809 = vmatmul.mubr.msk.bf16.gmra.mrb[108].mxu1 %vm301_vm0, %v9500_v19 }
 0x25d   :  { %5248 = vmatprep.mubr.bf16.mxu1 %v11614_v1 }
 0x262   :  { %8078 = vmatmul.mubr.msk.bf16.gmra.mrb[96].mxu0 %vm301_vm0, %v9427_v39  ;;  %v10649_v39 = vpop.f32.mrb[13].mxu1 }
 0x263   :  { %3453 = vmatprep.mubr.bf16.mxu0 %v11614_v1  ;;  %v10651_v40 = vpop.f32.mrb[14].mxu1 }
 0x26a   :  { %8079 = vmatmul.mubr.msk.bf16.gmra.mrb[100].mxu0 %vm301_vm0, %v9429_v41  ;;  %v10653_v41 = vpop.f32.mrb[15].mxu1 }
 0x26b   :  { %3463 = vmatprep.mubr.bf16.mxu0 %v11614_v1 }
 0x272   :  { %8080 = vmatmul.mubr.msk.bf16.gmra.mrb[104].mxu0 %vm301_vm0, %v9431_v43  ;;  %v10659_v43 = vpop.f32.mrb[16].mxu1 }
 0x273   :  { %3473 = vmatprep.mubr.bf16.mxu0 %v11614_v1  ;;  %v10662_v44 = vpop.f32.mrb[17].mxu1 }
 0x27a   :  { %8081 = vmatmul.mubr.msk.bf16.gmra.mrb[108].mxu0 %vm301_vm0, %v9433_v45  ;;  %v10664_v45 = vpop.f32.mrb[18].mxu1 }
 0x27b   :  { %4206 = vmatprep.mubr.bf16.mxu0 %v11614_v1  ;;  %v10666_v46 = vpop.f32.mrb[19].mxu1 }
 0x27c   :  { %v10671_v48 = vpop.f32.mrb[20].mxu1 }
 0x282   :  { %8190 = vmatmul.mubr.msk.bf16.vlgmr.msra.gmra.mrb[0].mxu0 %vm301_vm0, %v9435_v47  ;;  %v9465_v47 = vld [vmem:[%s11605_s0 + $0x98] sm:$0xff]  }
 0x283   :  { %4216 = vmatprep.mubr.bf16.mxu0 %v11614_v1 }
 0x28a   :  { %8191 = vmatmul.mubr.msk.bf16.gmra.mrb[4].mxu0 %vm301_vm0, %v9437_v49  ;;  %v10674_v49 = vpop.f32.mrb[21].mxu1 }
 0x28b   :  { %4226 = vmatprep.mubr.bf16.mxu0 %v11614_v1  ;;  %v10677_v50 = vpop.f32.mrb[22].mxu1 }
 0x292   :  { %8192 = vmatmul.mubr.msk.bf16.gmra.mrb[8].mxu0 %vm301_vm0, %v9439_v51  ;;  %v10679_v51 = vpop.f32.mrb[23].mxu1 }
 0x293   :  { %4236 = vmatprep.mubr.bf16.mxu0 %v11614_v1 }
 0x29a   :  { %8193 = vmatmul.mubr.msk.bf16.gmra.mrb[12].mxu0 %vm301_vm0, %v9441_v53  ;;  %v10685_v53 = vpop.f32.mrb[24].mxu1 }
 0x29b   :  { %4246 = vmatprep.mubr.bf16.mxu0 %v11614_v1  ;;  %v10688_v54 = vpop.f32.mrb[25].mxu1 }
 0x2a2   :  { %8194 = vmatmul.mubr.msk.bf16.gmra.mrb[16].mxu0 %vm301_vm0, %v9443_v55  ;;  %v10690_v55 = vpop.f32.mrb[26].mxu1 }
 0x2a3   :  { %4256 = vmatprep.mubr.bf16.mxu0 %v11614_v1  ;;  %v10692_v56 = vpop.f32.mrb[27].mxu1 }
 0x2a4   :  { %v10697_v58 = vpop.f32.mrb[28].mxu1 }
 0x2aa   :  { %8195 = vmatmul.mubr.msk.bf16.gmra.mrb[20].mxu0 %vm301_vm0, %v9445_v57  ;;  %v9469_v57 = vld [vmem:[%s11605_s0 + $0xa8] sm:$0xff]  }
 0x2ab   :  { %4266 = vmatprep.mubr.bf16.mxu0 %v11614_v1 }
 0x2b2   :  { %8196 = vmatmul.mubr.msk.bf16.gmra.mrb[24].mxu0 %vm301_vm0, %v9447_v59  ;;  %v10700_v59 = vpop.f32.mrb[29].mxu1 }
 0x2b3   :  { %4276 = vmatprep.mubr.bf16.mxu0 %v11614_v1  ;;  %v10703_v60 = vpop.f32.mrb[30].mxu1 }
 0x2ba   :  { %8197 = vmatmul.mubr.msk.bf16.gmra.mrb[28].mxu0 %vm301_vm0, %v9449_v61  ;;  %v10705_v61 = vpop.f32.mrb[31].mxu1 }
 0x2bb   :  { %4286 = vmatprep.mubr.bf16.mxu0 %v11614_v1 }
 0x2c2   :  { %8198 = vmatmul.mubr.msk.bf16.gmra.mrb[32].mxu0 %vm301_vm0, %v9451_v63  ;;  %v10711_v63 = vpop.f32.mrb[32].mxu1 }
 0x2c3   :  { %4296 = vmatprep.mubr.bf16.mxu0 %v11614_v1  ;;  %v10714_v0 = vpop.f32.mrb[33].mxu1 }
 0x2ca   :  { %8199 = vmatmul.mubr.msk.bf16.gmra.mrb[36].mxu0 %vm301_vm0, %v9453_v2  ;;  %v10716_v2 = vpop.f32.mrb[34].mxu1 }
 0x2cb   :  { %4306 = vmatprep.mubr.bf16.mxu0 %v11614_v1  ;;  %v10718_v3 = vpop.f32.mrb[35].mxu1 }
 0x2cc   :  { %v10723_v5 = vpop.f32.mrb[36].mxu1 }
 0x2d2   :  { %8200 = vmatmul.mubr.msk.bf16.gmra.mrb[40].mxu0 %vm301_vm0, %v9455_v6  ;;  %v10726_v6 = vpop.f32.mrb[37].mxu1 }
 0x2d3   :  { %4316 = vmatprep.mubr.bf16.mxu0 %v11614_v1  ;;  %v10729_v7 = vpop.f32.mrb[38].mxu1 }
 0x2d4   :  { %v10731_v8 = vpop.f32.mrb[39].mxu1 }
 0x2d5   :  { %v10737_v12 = vpop.f32.mrb[40].mxu1 }
 0x2da   :  { %8201 = vmatmul.mubr.msk.bf16.gmra.mrb[44].mxu0 %vm301_vm0, %v9457_v13  ;;  %v10740_v13 = vpop.f32.mrb[41].mxu1 }
 0x2db   :  { %4326 = vmatprep.mubr.bf16.mxu0 %v11614_v1  ;;  %v10742_v15 = vpop.f32.mrb[42].mxu1 }
 0x2dc   :  { %v10744_v17 = vpop.f32.mrb[43].mxu1 }
 0x2dd   :  { %v10750_v19 = vpop.f32.mrb[44].mxu1 }
 0x2de   :  { %v10753_v22 = vpop.f32.mrb[45].mxu1 }
 0x2e2   :  { %8202 = vmatmul.mubr.msk.bf16.gmra.mrb[48].mxu0 %vm301_vm0, %v9459_v23  ;;  %v10755_v23 = vpop.f32.mrb[46].mxu1 }
 0x2e3   :  { %4336 = vmatprep.mubr.bf16.mxu0 %v11614_v1  ;;  %v10757_v25 = vpop.f32.mrb[47].mxu1 }
 0x2e4   :  { %v10763_v28 = vpop.f32.mrb[48].mxu1 }
 0x2e5   :  { %v10766_v31 = vpop.f32.mrb[49].mxu1 }
 0x2ea   :  { %8203 = vmatmul.mubr.msk.bf16.gmra.mrb[52].mxu0 %vm301_vm0, %v9461_v32  ;;  %v10768_v32 = vpop.f32.mrb[50].mxu1 }
 0x2eb   :  { %4346 = vmatprep.mubr.bf16.mxu0 %v11614_v1  ;;  %11618 = vst [vmem:[#allocation6_spill] sm:$0xff] %v10768_v32  ;;  %v10770_v34 = vpop.f32.mrb[51].mxu1 }
 0x2ec   :  { %11619 = vst [vmem:[#allocation7_spill] sm:$0xff] %v10770_v34  ;;  %v10776_v37 = vpop.f32.mrb[52].mxu1 }
 0x2ed   :  { %11620 = vst [vmem:[#allocation8_spill] sm:$0xff] %v10776_v37 }
 0x2f2   :  { %8204 = vmatmul.mubr.msk.bf16.gmra.mrb[56].mxu0 %vm301_vm0, %v9463_v42  ;;  %v9516_v42 = vld [vmem:[%s11606_s3 + $0x84] ss:$8 sps:$4 sm:$0xff]  }
 0x2f3   :  { %4356 = vmatprep.mubr.bf16.mxu0 %v11614_v1  ;;  %5497 = vmatprep.subr.bf16.mxu1 %v9516_v42 }
 0x2fa   :  { %8205 = vmatmul.mubr.msk.bf16.gmra.mrb[60].mxu0 %vm301_vm0, %v9465_v47  ;;  %v10782_v47 = vpop.f32.mrb[53].mxu1 }
 0x2fb   :  { %4366 = vmatprep.mubr.bf16.mxu0 %v11614_v1  ;;  %11621 = vst [vmem:[#allocation9_spill] sm:$0xff] %v10782_v47 }
 0x302   :  { %8206 = vmatmul.mubr.msk.bf16.gmra.mrb[64].mxu0 %vm301_vm0, %v9467_v52  ;;  %v10784_v52 = vpop.f32.mrb[54].mxu1 }
 0x303   :  { %4376 = vmatprep.mubr.bf16.mxu0 %v11614_v1  ;;  %11622 = vst [vmem:[#allocation10_spill] sm:$0xff] %v10784_v52  ;;  %v9501_v52 = vld [vmem:[%s11605_s0 + $0xf8] sm:$0xff]  }
 0x30a   :  { %8207 = vmatmul.mubr.msk.bf16.gmra.mrb[68].mxu0 %vm301_vm0, %v9469_v57  ;;  %v10786_v57 = vpop.f32.mrb[55].mxu1 }
 0x30b   :  { %4386 = vmatprep.mubr.bf16.mxu0 %v11614_v1  ;;  %11623 = vst [vmem:[#allocation11_spill] sm:$0xff] %v10786_v57 }
 0x312   :  { %8208 = vmatmul.mubr.msk.bf16.gmra.mrb[72].mxu0 %vm301_vm0, %v9471_v62  ;;  %v9483_v62 = vld [vmem:[%s11605_s0 + $0xe0] sm:$0xff]  }
 0x313   :  { %4396 = vmatprep.mubr.bf16.mxu0 %v11614_v1 }
 0x31a   :  { %8209 = vmatmul.mubr.msk.bf16.gmra.mrb[76].mxu0 %vm301_vm0, %v9473_v4  ;;  %v10792_v4 = vpop.f32.mrb[56].mxu1 }
 0x31b   :  { %4406 = vmatprep.mubr.bf16.mxu0 %v11614_v1  ;;  %11624 = vst [vmem:[#allocation12_spill] sm:$0xff] %v10792_v4 }
 0x322   :  { %8210 = vmatmul.mubr.msk.bf16.gmra.mrb[80].mxu0 %vm301_vm0, %v9475_v9  ;;  %v10795_v9 = vpop.f32.mrb[57].mxu1 }
 0x323   :  { %4416 = vmatprep.mubr.bf16.mxu0 %v11614_v1  ;;  %11625 = vst [vmem:[#allocation13_spill] sm:$0xff] %v10795_v9 }
 0x32a   :  { %8211 = vmatmul.mubr.msk.bf16.gmra.mrb[84].mxu0 %vm301_vm0, %v9477_v18  ;;  %v10797_v18 = vpop.f32.mrb[58].mxu1 }
 0x32b   :  { %4426 = vmatprep.mubr.bf16.mxu0 %v11614_v1  ;;  %11626 = vst [vmem:[#allocation14_spill] sm:$0xff] %v10797_v18 }
 0x332   :  { %8212 = vmatmul.mubr.msk.bf16.gmra.mrb[88].mxu0 %vm301_vm0, %v9479_v27  ;;  %v10799_v27 = vpop.f32.mrb[59].mxu1 }
 0x333   :  { %4436 = vmatprep.mubr.bf16.mxu0 %v11614_v1  ;;  %11627 = vst [vmem:[#allocation15_spill] sm:$0xff] %v10799_v27  ;;  %v10805_v42 = vpop.f32.mrb[60].mxu1  ;;  %v9493_v27 = vld [vmem:[%s11605_s0 + $0xf0] sm:$0xff]  }
 0x334   :  { %11628 = vst [vmem:[#allocation16_spill] sm:$0xff] %v10805_v42 }
 0x33a   :  { %8213 = vmatmul.mubr.msk.bf16.gmra.mrb[92].mxu0 %vm301_vm0, %v9481_v36  ;;  %v9485_v36 = vld [vmem:[%s11605_s0 + $0xe8] sm:$0xff]  }
 0x33b   :  { %4446 = vmatprep.mubr.bf16.mxu0 %v11614_v1 }
 0x342   :  { %8214 = vmatmul.mubr.msk.bf16.gmra.mrb[96].mxu0 %vm301_vm0, %v9483_v62  ;;  %v10808_v62 = vpop.f32.mrb[61].mxu1 }
 0x343   :  { %4456 = vmatprep.mubr.bf16.mxu0 %v11614_v1  ;;  %11629 = vst [vmem:[#allocation17_spill] sm:$0xff] %v10808_v62  ;;  %v10810_v4 = vpop.f32.mrb[62].mxu1 }
 0x344   :  { %11630 = vst [vmem:[#allocation18_spill] sm:$0xff] %v10810_v4  ;;  %v10812_v57 = vpop.f32.mrb[63].mxu1 }
 0x345   :  { %11631 = vst [vmem:[#allocation19_spill] sm:$0xff] %v10812_v57  ;;  %v10818_v18 = vpop.f32.mrb[64].mxu1 }
 0x346   :  { %11632 = vst [vmem:[#allocation20_spill] sm:$0xff] %v10818_v18 }
 0x34a   :  { %8215 = vmatmul.mubr.msk.bf16.gmra.mrb[100].mxu0 %vm301_vm0, %v9485_v36  ;;  %v10821_v36 = vpop.f32.mrb[65].mxu1 }
 0x34b   :  { %4466 = vmatprep.mubr.bf16.mxu0 %v11614_v1  ;;  %11633 = vst [vmem:[#allocation21_spill] sm:$0xff] %v10821_v36  ;;  %v10823_v42 = vpop.f32.mrb[66].mxu1 }
 0x34c   :  { %11634 = vst [vmem:[#allocation22_spill] sm:$0xff] %v10823_v42  ;;  %v10825_v62 = vpop.f32.mrb[67].mxu1 }
 0x34d   :  { %11635 = vst [vmem:[#allocation23_spill] sm:$0xff] %v10825_v62  ;;  %v10835_v42 = vpop.f32.mrb[68].mxu1 }
 0x34e   :  { %11636 = vst [vmem:[#allocation24_spill] sm:$0xff] %v10835_v42  ;;  %v10837_v62 = vpop.f32.mrb[69].mxu1 }
 0x34f   :  { %11637 = vst [vmem:[#allocation25_spill] sm:$0xff] %v10837_v62 }
 0x352   :  { %8216 = vmatmul.mubr.msk.bf16.gmra.mrb[104].mxu0 %vm301_vm0, %v9493_v27 }
 0x353   :  { %4476 = vmatprep.mubr.bf16.mxu0 %v11614_v1 }
 0x355   :  { %v4208_v9 = vpop.f32.mrb[0].mxu0 }
 0x356   :  { %v8649_v4 = vadd.f32 %v4208_v9, %v10565_v10  ;;  %v4210_v57 = vpop.f32.mrb[1].mxu0  ;;  %v10839_v10 = vpop.f32.mrb[70].mxu1 }
 0x357   :  { %v8650_v27 = vadd.f32 %v4210_v57, %v10568_v11  ;;  %v4212_v47 = vpop.f32.mrb[2].mxu0  ;;  %11638 = vst [vmem:[#allocation26_spill] sm:$0xff] %v10839_v10  ;;  %v10841_v37 = vpop.f32.mrb[71].mxu1  ;;  %v10850_v10 = vld [vmem:[%s11607_s2] ss:$0 sm:$0xff] }
 0x358   :  { %v8651_v18 = vadd.f32 %v4212_v47, %v10576_v14  ;;  %v4214_v1 = vpop.f32.mrb[3].mxu0  ;;  %11639 = vst [vmem:[#allocation27_spill] sm:$0xff] %v10841_v37  ;;  %v10852_v37 = vpop.f32.mrb[72].mxu1 }
 0x359   :  { %v8652_v36 = vadd.f32 %v4214_v1, %v10582_v16  ;;  %v10854_v32 = vpop.f32.mrb[73].mxu1 }
 0x35a   :  { %8217 = vmatmul.mubr.msk.bf16.gmra.mrb[108].mxu0 %vm301_vm0, %v9501_v52 }
 0x35d   :  { %v4218_v9 = vpop.f32.mrb[4].mxu0 }
 0x35e   :  { %v8653_v34 = vadd.f32 %v4218_v9, %v10595_v20  ;;  %v4220_v11 = vpop.f32.mrb[5].mxu0 }
 0x35f   :  { %v8654_v57 = vadd.f32 %v4220_v11, %v10598_v21  ;;  %v4222_v14 = vpop.f32.mrb[6].mxu0  ;;  %v10856_v21 = vpop.f32.mrb[74].mxu1 }
 0x360   :  { %v4935_v47 = vmax.f32 %v8649_v4, %v8653_v34  ;;  %v8655_v1 = vadd.f32 %v4222_v14, %v10606_v24  ;;  %v4224_v16 = vpop.f32.mrb[7].mxu0 }
 0x361   :  { %v4936_v52 = vmax.f32 %v8650_v27, %v8654_v57  ;;  %v8656_v42 = vadd.f32 %v4224_v16, %v10612_v26  ;;  %v10859_v27 = vpop.f32.mrb[75].mxu1 }
 0x362   :  { %v4937_v62 = vmax.f32 %v8651_v18, %v8655_v1 }
 0x363   :  { %v4991_v20 = vmax.f32 %v4935_v47, %v4936_v52  ;;  %v4938_v9 = vmax.f32 %v8652_v36, %v8656_v42  ;;  %v10869_v52 = vpop.f32.mrb[76].mxu1 }
 0x365   :  { %v5026_v24 = vadd.f32 %v10850_v10, %v4991_v20  ;;  %v4992_v34 = vmax.f32 %v4937_v62, %v4938_v9  ;;  %v4228_v4 = vpop.f32.mrb[8].mxu0  ;;  %v9514_v62 = vld [vmem:[%s11606_s3 + $0x80] ss:$8 sps:$4 sm:$0xff]   ;;  %v9519_v20 = vld [vmem:[%s11606_s3 + $0x94] ss:$8 sps:$4 sm:$0xff]  }
 0x366   :  { %v8657_v26 = vadd.f32 %v4228_v4, %v10621_v29  ;;  %v4230_v11 = vpop.f32.mrb[9].mxu0  ;;  %v11641_v4 = vmov 0  }
 0x367   :  { %v5027_v57 = vadd.f32 %v10850_v10, %v4992_v34  ;;  %v8658_v18 = vadd.f32 %v4230_v11, %v10624_v30  ;;  %v4232_v14 = vpop.f32.mrb[10].mxu0  ;;  %v5054_v47 = vmax.f32 %v5026_v24, 0.0  ;;  %v10874_v30 = vpop.f32.mrb[77].mxu1  ;;  %v9517_v11 = vld [vmem:[%s11606_s3 + $0x90] ss:$8 sps:$4 sm:$0xff]  }
 0x368   :  { %v8659_v42 = vadd.f32 %v4232_v14, %v10632_v33  ;;  %v4234_v36 = vpop.f32.mrb[11].mxu0  ;;  %v10876_v9 = vpop.f32.mrb[78].mxu1 }
 0x369   :  { %v5055_v1 = vmax.f32 %v5027_v57, 0.0  ;;  %v8660_v16 = vadd.f32 %v4234_v36, %v10637_v35  ;;  %v10878_v24 = vpop.f32.mrb[79].mxu1  ;;  %v9522_v36 = vld [vmem:[%s11606_s3 + $0xa4] ss:$8 sps:$4 sm:$0xff]  }
 0x36a   :  { %11640 = vst [vmem:[#allocation28_spill] sm:$0xff] %v10878_v24  ;;  %v9520_v24 = vld [vmem:[%s11606_s3 + $0xa0] ss:$8 sps:$4 sm:$0xff]  }
 0x36b   :  { %v5082_v29 = vpack.c.bf16 %v5055_v1, %v5054_v47 }
 0x36d   :  { %v4238_v33 = vpop.f32.mrb[12].mxu0  ;;  %5249 = vmatmul.mubr.bf16.vlgmr.msra.gmra.mrb[112].mxu1 %v5082_v29 }
 0x36e   :  { %v8661_v35 = vadd.f32 %v4238_v33, %v10646_v38  ;;  %v4240_v34 = vpop.f32.mrb[13].mxu0  ;;  %5258 = vmatprep.mubr.bf16.mxu1 %v11641_v4  ;;  %5498 = vmatpush1.bf16.msra.mxu1 %v9514_v62 }
 0x36f   :  { %v8662_v57 = vadd.f32 %v4240_v34, %v10649_v39  ;;  %v4242_v14 = vpop.f32.mrb[14].mxu0  ;;  %5499 = vmatprep.subr.bf16.mxu1 %v9519_v20  ;;  %v9525_v20 = vld [vmem:[%s11606_s3 + $0xb4] ss:$8 sps:$4 sm:$0xff]  }
 0x370   :  { %v4939_v47 = vmax.f32 %v8657_v26, %v8661_v35  ;;  %v8663_v1 = vadd.f32 %v4242_v14, %v10651_v40  ;;  %v4244_v38 = vpop.f32.mrb[15].mxu0 }
 0x371   :  { %v4940_v29 = vmax.f32 %v8658_v18, %v8662_v57  ;;  %v8664_v33 = vadd.f32 %v4244_v38, %v10653_v41  ;;  %v10898_v18 = vpop.f32.mrb[80].mxu1 }
 0x372   :  { %v4941_v62 = vmax.f32 %v8659_v42, %v8663_v1  ;;  %5500 = vmatpush1.bf16.msra.mxu1 %v9517_v11  ;;  %v9523_v11 = vld [vmem:[%s11606_s3 + $0xb0] ss:$8 sps:$4 sm:$0xff]  }
 0x373   :  { %v4993_v39 = vmax.f32 %v4939_v47, %v4940_v29  ;;  %v4942_v34 = vmax.f32 %v8660_v16, %v8664_v33  ;;  %5501 = vmatprep.subr.bf16.mxu1 %v9522_v36  ;;  %v10904_v16 = vpop.f32.mrb[81].mxu1  ;;  %v9528_v47 = vld [vmem:[%s11606_s3 + $0xc4] ss:$8 sps:$4 sm:$0xff]  }
 0x374   :  { %v10911_v1 = vpop.f32.mrb[82].mxu1 }
 0x375   :  { %v4994_v26 = vmax.f32 %v4941_v62, %v4942_v34  ;;  %v4248_v35 = vpop.f32.mrb[16].mxu0  ;;  %v5028_v40 = vadd.f32 %v10850_v10, %v4993_v39  ;;  %v10914_v38 = vpop.f32.mrb[83].mxu1  ;;  %v9531_v34 = vld [vmem:[%s11606_s3 + $0xd4] ss:$8 sps:$4 sm:$0xff]  }
 0x376   :  { %v8665_v41 = vadd.f32 %v4248_v35, %v10659_v43  ;;  %v4250_v42 = vpop.f32.mrb[17].mxu0  ;;  %5502 = vmatpush1.bf16.msra.mxu1 %v9520_v24  ;;  %v9529_v35 = vld [vmem:[%s11606_s3 + $0xd0] ss:$8 sps:$4 sm:$0xff]  }
 0x377   :  { %v8666_v57 = vadd.f32 %v4250_v42, %v10662_v44  ;;  %v4252_v14 = vpop.f32.mrb[18].mxu0  ;;  %v5029_v36 = vadd.f32 %v10850_v10, %v4994_v26  ;;  %5503 = vmatprep.subr.bf16.mxu1 %v9525_v20  ;;  %v5056_v33 = vmax.f32 %v5028_v40, 0.0  ;;  %v9526_v44 = vld [vmem:[%s11606_s3 + $0xc0] ss:$8 sps:$4 sm:$0xff]   ;;  %v10926_v20 = vpop.f32.mrb[84].mxu1 }
 0x378   :  { %v8667_v43 = vadd.f32 %v4252_v14, %v10664_v45  ;;  %v4254_v24 = vpop.f32.mrb[19].mxu0  ;;  %v10933_v40 = vpop.f32.mrb[85].mxu1  ;;  %v9534_v14 = vld [vmem:[%s11606_s3 + $0xe4] ss:$8 sps:$4 sm:$0xff]  }
 0x379   :  { %v8668_v29 = vadd.f32 %v4254_v24, %v10666_v46  ;;  %v5057_v62 = vmax.f32 %v5029_v36, 0.0  ;;  %v10939_v36 = vpop.f32.mrb[86].mxu1 }
 0x37a   :  { %5504 = vmatpush1.bf16.msra.mxu1 %v9523_v11 }
 0x37b   :  { %v10920_v39 = vpack.c.bf16 %v5057_v62, %v5056_v33  ;;  %5505 = vmatprep.subr.bf16.mxu1 %v9528_v47  ;;  %v10942_v33 = vpop.f32.mrb[87].mxu1 }
 0x37d   :  { %v4258_v45 = vpop.f32.mrb[20].mxu0  ;;  %5259 = vmatmul.mubr.bf16.gmra.mrb[116].mxu1 %v10920_v39 }
 0x37e   :  { %v8669_v46 = vadd.f32 %v4258_v45, %v10671_v48  ;;  %v4260_v26 = vpop.f32.mrb[21].mxu0  ;;  %5268 = vmatprep.mubr.bf16.mxu1 %v11641_v4  ;;  %5506 = vmatpush1.bf16.msra.mxu1 %v9526_v44 }
 0x37f   :  { %v8670_v42 = vadd.f32 %v4260_v26, %v10674_v49  ;;  %v4262_v11 = vpop.f32.mrb[22].mxu0  ;;  %5507 = vmatprep.subr.bf16.mxu1 %v9531_v34  ;;  %v9532_v49 = vld [vmem:[%s11606_s3 + $0xe0] ss:$8 sps:$4 sm:$0xff]  }
 0x380   :  { %v4943_v48 = vmax.f32 %v8665_v41, %v8669_v46  ;;  %v8671_v47 = vadd.f32 %v4262_v11, %v10677_v50  ;;  %v4264_v24 = vpop.f32.mrb[23].mxu0  ;;  %v9537_v41 = vld [vmem:[%s11606_s3 + $0xf4] ss:$8 sps:$4 sm:$0xff]  }
 0x381   :  { %v4944_v62 = vmax.f32 %v8666_v57, %v8670_v42  ;;  %v8672_v44 = vadd.f32 %v4264_v24, %v10679_v51  ;;  %v10952_v57 = vpop.f32.mrb[88].mxu1 }
 0x382   :  { %v4945_v45 = vmax.f32 %v8667_v43, %v8671_v47  ;;  %5508 = vmatpush1.bf16.msra.mxu1 %v9529_v35  ;;  %v9535_v35 = vld [vmem:[%s11606_s3 + $0xf0] ss:$8 sps:$4 sm:$0xff]  }
 0x383   :  { %v4995_v34 = vmax.f32 %v4943_v48, %v4944_v62  ;;  %v4946_v26 = vmax.f32 %v8668_v29, %v8672_v44  ;;  %5509 = vmatprep.subr.bf16.mxu1 %v9534_v14  ;;  %v10958_v29 = vpop.f32.mrb[89].mxu1 }
 0x384   :  { %v10962_v47 = vpop.f32.mrb[90].mxu1 }
 0x385   :  { %v4996_v50 = vmax.f32 %v4945_v45, %v4946_v26  ;;  %v4268_v46 = vpop.f32.mrb[24].mxu0  ;;  %v5030_v11 = vadd.f32 %v10850_v10, %v4995_v34  ;;  %v9540_v34 = vld [vmem:[%s11606_s3 + $0x104] ss:$8 sps:$4 sm:$0xff]  }
 0x386   :  { %v8673_v51 = vadd.f32 %v4268_v46, %v10685_v53  ;;  %v4270_v43 = vpop.f32.mrb[25].mxu0  ;;  %5510 = vmatpush1.bf16.msra.mxu1 %v9532_v49  ;;  %v10965_v53 = vpop.f32.mrb[91].mxu1 }
 0x387   :  { %v8674_v42 = vadd.f32 %v4270_v43, %v10688_v54  ;;  %v4272_v14 = vpop.f32.mrb[26].mxu0  ;;  %v5031_v48 = vadd.f32 %v10850_v10, %v4996_v50  ;;  %5511 = vmatprep.subr.bf16.mxu1 %v9537_v41  ;;  %v5058_v45 = vmax.f32 %v5030_v11, 0.0  ;;  %v10974_v41 = vpop.f32.mrb[92].mxu1 }
 0x388   :  { %v8675_v24 = vadd.f32 %v4272_v14, %v10690_v55  ;;  %v4274_v62 = vpop.f32.mrb[27].mxu0  ;;  %11643 = vst [vmem:[#allocation30_spill] sm:$0xff] %v10974_v41 }
 0x389   :  { %v8676_v44 = vadd.f32 %v4274_v62, %v10692_v56  ;;  %v5059_v49 = vmax.f32 %v5031_v48, 0.0  ;;  %v10978_v56 = vpop.f32.mrb[93].mxu1 }
 0x38a   :  { %5512 = vmatpush1.bf16.msra.mxu1 %v9535_v35  ;;  %11644 = vst [vmem:[#allocation31_spill] sm:$0xff] %v10978_v56  ;;  %v10981_v43 = vpop.f32.mrb[94].mxu1 }
 0x38b   :  { %v10971_v54 = vpack.c.bf16 %v5059_v49, %v5058_v45  ;;  %5858 = vmatprep.subr.bf16.mxu1 %v9540_v34  ;;  %v10984_v62 = vpop.f32.mrb[95].mxu1 }
 0x38d   :  { %11642 = vst [vmem:[#allocation29_spill] sm:$0xff] %v10971_v54  ;;  %v4278_v26 = vpop.f32.mrb[28].mxu0  ;;  %5269 = vmatmul.mubr.bf16.gmra.mrb[120].mxu1 %v10971_v54 }
 0x38e   :  { %v8677_v55 = vadd.f32 %v4278_v26, %v10697_v58  ;;  %v4280_v50 = vpop.f32.mrb[29].mxu0  ;;  %5278 = vmatprep.mubr.bf16.mxu1 %v11641_v4 }
 0x38f   :  { %v8678_v46 = vadd.f32 %v4280_v50, %v10700_v59  ;;  %v4282_v11 = vpop.f32.mrb[30].mxu0  ;;  %v10988_v59 = vpop.f32.mrb[96].mxu1 }
 0x390   :  { %v4947_v35 = vmax.f32 %v8673_v51, %v8677_v55  ;;  %v8679_v14 = vadd.f32 %v4282_v11, %v10703_v60  ;;  %v4284_v48 = vpop.f32.mrb[31].mxu0  ;;  %v10991_v55 = vpop.f32.mrb[97].mxu1 }
 0x391   :  { %v4948_v45 = vmax.f32 %v8674_v42, %v8678_v46  ;;  %v8680_v49 = vadd.f32 %v4284_v48, %v10705_v61  ;;  %v10995_v61 = vpop.f32.mrb[98].mxu1 }
 0x392   :  { %v4949_v58 = vmax.f32 %v8675_v24, %v8679_v14  ;;  %v10998_v11 = vpop.f32.mrb[99].mxu1 }
 0x393   :  { %v4997_v34 = vmax.f32 %v4947_v35, %v4948_v45  ;;  %v4950_v26 = vmax.f32 %v8676_v44, %v8680_v49 }
 0x395   :  { %v5032_v41 = vadd.f32 %v10850_v10, %v4997_v34  ;;  %v4998_v56 = vmax.f32 %v4949_v58, %v4950_v26  ;;  %v4288_v54 = vpop.f32.mrb[32].mxu0 }
 0x396   :  { %v8681_v50 = vadd.f32 %v4288_v54, %v10711_v63  ;;  %v4290_v51 = vpop.f32.mrb[33].mxu0 }
 0x397   :  { %v5033_v60 = vadd.f32 %v10850_v10, %v4998_v56  ;;  %v8682_v42 = vadd.f32 %v4290_v51, %v10714_v0  ;;  %v4292_v46 = vpop.f32.mrb[34].mxu0  ;;  %v5060_v35 = vmax.f32 %v5032_v41, 0.0  ;;  %v11004_v56 = vpop.f32.mrb[100].mxu1 }
 0x398   :  { %v8683_v24 = vadd.f32 %v4292_v46, %v10716_v2  ;;  %v4294_v44 = vpop.f32.mrb[35].mxu0  ;;  %v11008_v2 = vpop.f32.mrb[101].mxu1 }
 0x399   :  { %v5061_v14 = vmax.f32 %v5033_v60, 0.0  ;;  %v8684_v48 = vadd.f32 %v4294_v44, %v10718_v3  ;;  %11645 = vst [vmem:[#allocation32_spill] sm:$0xff] %v11008_v2  ;;  %v11011_v58 = vpop.f32.mrb[102].mxu1 }
 0x39a   :  { %v11014_v51 = vpop.f32.mrb[103].mxu1 }
 0x39b   :  { %v11001_v63 = vpack.c.bf16 %v5061_v14, %v5060_v35 }
 0x39d   :  { %v4298_v54 = vpop.f32.mrb[36].mxu0  ;;  %5279 = vmatmul.mubr.bf16.gmra.mrb[124].mxu1 %v11001_v63 }
 0x39e   :  { %v8685_v0 = vadd.f32 %v4298_v54, %v10723_v5  ;;  %v4300_v45 = vpop.f32.mrb[37].mxu0  ;;  %5288 = vmatprep.mubr.bf16.mxu1 %v11641_v4 }
 0x39f   :  { %v8686_v49 = vadd.f32 %v4300_v45, %v10726_v6  ;;  %v4302_v41 = vpop.f32.mrb[38].mxu0  ;;  %v11018_v6 = vpop.f32.mrb[104].mxu1 }
 0x3a0   :  { %v4951_v3 = vmax.f32 %v8681_v50, %v8685_v0  ;;  %v8687_v34 = vadd.f32 %v4302_v41, %v10729_v7  ;;  %v4304_v26 = vpop.f32.mrb[39].mxu0  ;;  %v11021_v0 = vpop.f32.mrb[105].mxu1 }
 0x3a1   :  { %v4952_v60 = vmax.f32 %v8682_v42, %v8686_v49  ;;  %v8688_v46 = vadd.f32 %v4304_v26, %v10731_v8  ;;  %v11025_v8 = vpop.f32.mrb[106].mxu1 }
 0x3a2   :  { %v4953_v5 = vmax.f32 %v8683_v24, %v8687_v34  ;;  %v11028_v41 = vpop.f32.mrb[107].mxu1 }
 0x3a3   :  { %v4999_v44 = vmax.f32 %v4951_v3, %v4952_v60  ;;  %v4954_v35 = vmax.f32 %v8684_v48, %v8688_v46  ;;  %v11034_v60 = vpop.f32.mrb[108].mxu1 }
 0x3a4   :  { %11646 = vst [vmem:[#allocation33_spill] sm:$0xff] %v11034_v60 }
 0x3a5   :  { %v5034_v14 = vadd.f32 %v10850_v10, %v4999_v44  ;;  %v5000_v54 = vmax.f32 %v4953_v5, %v4954_v35  ;;  %v4308_v2 = vpop.f32.mrb[40].mxu0 }
 0x3a6   :  { %v8689_v45 = vadd.f32 %v4308_v2, %v10737_v12  ;;  %v4310_v50 = vpop.f32.mrb[41].mxu0 }
 0x3a7   :  { %v5035_v7 = vadd.f32 %v10850_v10, %v5000_v54  ;;  %v8690_v42 = vadd.f32 %v4310_v50, %v10740_v13  ;;  %v4312_v49 = vpop.f32.mrb[42].mxu0  ;;  %v5062_v3 = vmax.f32 %v5034_v14, 0.0 }
 0x3a8   :  { %v8691_v24 = vadd.f32 %v4312_v49, %v10742_v15  ;;  %v4314_v48 = vpop.f32.mrb[43].mxu0  ;;  %v11038_v15 = vpop.f32.mrb[109].mxu1 }
 0x3a9   :  { %v5063_v34 = vmax.f32 %v5035_v7, 0.0  ;;  %v8692_v26 = vadd.f32 %v4314_v48, %v10744_v17  ;;  %11647 = vst [vmem:[#allocation34_spill] sm:$0xff] %v11038_v15  ;;  %v11041_v35 = vpop.f32.mrb[110].mxu1 }
 0x3aa   :  { %11648 = vst [vmem:[#allocation35_spill] sm:$0xff] %v11041_v35  ;;  %v11044_v50 = vpop.f32.mrb[111].mxu1 }
 0x3ab   :  { %v11031_v12 = vpack.c.bf16 %v5063_v34, %v5062_v3  ;;  %11649 = vst [vmem:[#allocation36_spill] sm:$0xff] %v11044_v50 }
 0x3ad   :  { %v4318_v2 = vpop.f32.mrb[44].mxu0  ;;  %5289 = vmatmul.mubr.bf16.gmra.mrb[128].mxu1 %v11031_v12 }
 0x3ae   :  { %v8693_v13 = vadd.f32 %v4318_v2, %v10750_v19  ;;  %v4320_v46 = vpop.f32.mrb[45].mxu0  ;;  %5298 = vmatprep.mubr.bf16.mxu1 %v11641_v4 }
 0x3af   :  { %v8694_v5 = vadd.f32 %v4320_v46, %v10753_v22  ;;  %v4322_v44 = vpop.f32.mrb[46].mxu0 }
 0x3b0   :  { %v4955_v17 = vmax.f32 %v8689_v45, %v8693_v13  ;;  %v8695_v14 = vadd.f32 %v4322_v44, %v10755_v23  ;;  %v4324_v54 = vpop.f32.mrb[47].mxu0  ;;  %v11650_v44 = vld [vmem:[#allocation6_spill] sm:$0xff] }
 0x3b1   :  { %v4956_v7 = vmax.f32 %v8690_v42, %v8694_v5  ;;  %v8696_v49 = vadd.f32 %v4324_v54, %v10757_v25  ;;  %v11652_v54 = vld [vmem:[#allocation8_spill] sm:$0xff] }
 0x3b2   :  { %v4957_v19 = vmax.f32 %v8691_v24, %v8695_v14  ;;  %v11651_v24 = vld [vmem:[#allocation7_spill] sm:$0xff] }
 0x3b3   :  { %v5001_v48 = vmax.f32 %v4955_v17, %v4956_v7  ;;  %v4958_v3 = vmax.f32 %v8692_v26, %v8696_v49  ;;  %v11653_v7 = vld [vmem:[#allocation9_spill] sm:$0xff] }
 0x3b5   :  { %v5036_v34 = vadd.f32 %v10850_v10, %v5001_v48  ;;  %v5002_v2 = vmax.f32 %v4957_v19, %v4958_v3  ;;  %v4328_v15 = vpop.f32.mrb[48].mxu0  ;;  %v11654_v48 = vld [vmem:[#allocation10_spill] sm:$0xff] }
 0x3b6   :  { %v8697_v22 = vadd.f32 %v4328_v15, %v10763_v28  ;;  %v4330_v46 = vpop.f32.mrb[49].mxu0 }
 0x3b7   :  { %v5037_v45 = vadd.f32 %v10850_v10, %v5002_v2  ;;  %v8698_v23 = vadd.f32 %v4330_v46, %v10766_v31  ;;  %v4332_v13 = vpop.f32.mrb[50].mxu0  ;;  %v5064_v5 = vmax.f32 %v5036_v34, 0.0  ;;  %v11655_v46 = vld [vmem:[#allocation11_spill] sm:$0xff] }
 0x3b8   :  { %v8699_v50 = vadd.f32 %v4332_v13, %v11650_v44  ;;  %v4334_v42 = vpop.f32.mrb[51].mxu0 }
 0x3b9   :  { %v5065_v25 = vmax.f32 %v5037_v45, 0.0  ;;  %v8700_v17 = vadd.f32 %v4334_v42, %v11651_v24 }
 0x3bb   :  { %v11053_v26 = vpack.c.bf16 %v5065_v25, %v5064_v5 }
 0x3bd   :  { %v4338_v14 = vpop.f32.mrb[52].mxu0  ;;  %5299 = vmatmul.mubr.bf16.gmra.mrb[132].mxu1 %v11053_v26 }
 0x3be   :  { %v8701_v28 = vadd.f32 %v4338_v14, %v11652_v54  ;;  %v4340_v15 = vpop.f32.mrb[53].mxu0  ;;  %5308 = vmatprep.mubr.bf16.mxu1 %v11641_v4  ;;  %v11656_v14 = vld [vmem:[#allocation12_spill] sm:$0xff] }
 0x3bf   :  { %v8702_v31 = vadd.f32 %v4340_v15, %v11653_v7  ;;  %v4342_v49 = vpop.f32.mrb[54].mxu0  ;;  %v11657_v7 = vld [vmem:[#allocation13_spill] sm:$0xff] }
 0x3c0   :  { %v4959_v19 = vmax.f32 %v8697_v22, %v8701_v28  ;;  %v8703_v3 = vadd.f32 %v4342_v49, %v11654_v48  ;;  %v4344_v34 = vpop.f32.mrb[55].mxu0  ;;  %v11658_v49 = vld [vmem:[#allocation14_spill] sm:$0xff] }
 0x3c1   :  { %v4960_v2 = vmax.f32 %v8698_v23, %v8702_v31  ;;  %v8704_v45 = vadd.f32 %v4344_v34, %v11655_v46 }
 0x3c2   :  { %v4961_v13 = vmax.f32 %v8699_v50, %v8703_v3  ;;  %v11659_v50 = vld [vmem:[#allocation15_spill] sm:$0xff] }
 0x3c3   :  { %v5003_v44 = vmax.f32 %v4959_v19, %v4960_v2  ;;  %v4962_v42 = vmax.f32 %v8700_v17, %v8704_v45  ;;  %v11660_v2 = vld [vmem:[#allocation16_spill] sm:$0xff] }
 0x3c5   :  { %v5038_v5 = vadd.f32 %v10850_v10, %v5003_v44  ;;  %v5004_v25 = vmax.f32 %v4961_v13, %v4962_v42  ;;  %v4348_v24 = vpop.f32.mrb[56].mxu0  ;;  %v11661_v13 = vld [vmem:[#allocation17_spill] sm:$0xff] }
 0x3c6   :  { %v8705_v54 = vadd.f32 %v4348_v24, %v11656_v14  ;;  %v4350_v35 = vpop.f32.mrb[57].mxu0 }
 0x3c7   :  { %v5039_v15 = vadd.f32 %v10850_v10, %v5004_v25  ;;  %v8706_v22 = vadd.f32 %v4350_v35, %v11657_v7  ;;  %v4352_v28 = vpop.f32.mrb[58].mxu0  ;;  %v5066_v31 = vmax.f32 %v5038_v5, 0.0  ;;  %v11662_v25 = vld [vmem:[#allocation18_spill] sm:$0xff] }
 0x3c8   :  { %v8707_v48 = vadd.f32 %v4352_v28, %v11658_v49  ;;  %v4354_v23 = vpop.f32.mrb[59].mxu0 }
 0x3c9   :  { %v5067_v34 = vmax.f32 %v5039_v15, 0.0  ;;  %v8708_v19 = vadd.f32 %v4354_v23, %v11659_v50  ;;  %v11663_v15 = vld [vmem:[#allocation19_spill] sm:$0xff] }
 0x3cb   :  { %v11067_v17 = vpack.c.bf16 %v5067_v34, %v5066_v31 }
 0x3cd   :  { %v4358_v3 = vpop.f32.mrb[60].mxu0  ;;  %5309 = vmatmul.mubr.bf16.gmra.mrb[136].mxu1 %v11067_v17 }
 0x3ce   :  { %v8709_v46 = vadd.f32 %v4358_v3, %v11660_v2  ;;  %v4360_v45 = vpop.f32.mrb[61].mxu0  ;;  %5318 = vmatprep.mubr.bf16.mxu1 %v11641_v4  ;;  %v11664_v3 = vld [vmem:[#allocation20_spill] sm:$0xff] }
 0x3cf   :  { %v8710_v35 = vadd.f32 %v4360_v45, %v11661_v13  ;;  %v4362_v44 = vpop.f32.mrb[62].mxu0  ;;  %v11665_v13 = vld [vmem:[#allocation21_spill] sm:$0xff] }
 0x3d0   :  { %v4963_v42 = vmax.f32 %v8705_v54, %v8709_v46  ;;  %v8711_v24 = vadd.f32 %v4362_v44, %v11662_v25  ;;  %v4364_v5 = vpop.f32.mrb[63].mxu0  ;;  %v11666_v44 = vld [vmem:[#allocation22_spill] sm:$0xff] }
 0x3d1   :  { %v4964_v14 = vmax.f32 %v8706_v22, %v8710_v35  ;;  %v8712_v7 = vadd.f32 %v4364_v5, %v11663_v15 }
 0x3d2   :  { %v4965_v28 = vmax.f32 %v8707_v48, %v8711_v24  ;;  %v11667_v48 = vld [vmem:[#allocation23_spill] sm:$0xff] }
 0x3d3   :  { %v5005_v49 = vmax.f32 %v4963_v42, %v4964_v14  ;;  %v4966_v23 = vmax.f32 %v8708_v19, %v8712_v7  ;;  %v11668_v14 = vld [vmem:[#allocation24_spill] sm:$0xff] }
 0x3d5   :  { %v5040_v31 = vadd.f32 %v10850_v10, %v5005_v49  ;;  %v5006_v34 = vmax.f32 %v4965_v28, %v4966_v23  ;;  %v4368_v50 = vpop.f32.mrb[64].mxu0  ;;  %v11669_v28 = vld [vmem:[#allocation25_spill] sm:$0xff] }
 0x3d6   :  { %v8713_v2 = vadd.f32 %v4368_v50, %v11664_v3  ;;  %v4370_v60 = vpop.f32.mrb[65].mxu0 }
 0x3d7   :  { %v5041_v45 = vadd.f32 %v10850_v10, %v5006_v34  ;;  %v8714_v54 = vadd.f32 %v4370_v60, %v11665_v13  ;;  %v4372_v46 = vpop.f32.mrb[66].mxu0  ;;  %v5068_v35 = vmax.f32 %v5040_v31, 0.0  ;;  %v11670_v34 = vld [vmem:[#allocation26_spill] sm:$0xff] }
 0x3d8   :  { %v8715_v25 = vadd.f32 %v4372_v46, %v11666_v44  ;;  %v4374_v22 = vpop.f32.mrb[67].mxu0 }
 0x3d9   :  { %v5069_v5 = vmax.f32 %v5041_v45, 0.0  ;;  %v8716_v42 = vadd.f32 %v4374_v22, %v11667_v48  ;;  %v11671_v45 = vld [vmem:[#allocation27_spill] sm:$0xff] }
 0x3db   :  { %v11081_v19 = vpack.c.bf16 %v5069_v5, %v5068_v35 }
 0x3dd   :  { %v4378_v24 = vpop.f32.mrb[68].mxu0  ;;  %5319 = vmatmul.mubr.bf16.gmra.mrb[140].mxu1 %v11081_v19 }
 0x3de   :  { %v8717_v15 = vadd.f32 %v4378_v24, %v11668_v14  ;;  %v4380_v7 = vpop.f32.mrb[69].mxu0  ;;  %5328 = vmatprep.mubr.bf16.mxu1 %v11641_v4 }
 0x3df   :  { %v8718_v60 = vadd.f32 %v4380_v7, %v11669_v28  ;;  %v4382_v49 = vpop.f32.mrb[70].mxu0 }
 0x3e0   :  { %v4967_v23 = vmax.f32 %v8713_v2, %v8717_v15  ;;  %v8719_v50 = vadd.f32 %v4382_v49, %v11670_v34  ;;  %v4384_v31 = vpop.f32.mrb[71].mxu0 }
 0x3e1   :  { %v4968_v3 = vmax.f32 %v8714_v54, %v8718_v60  ;;  %v8720_v13 = vadd.f32 %v4384_v31, %v11671_v45 }
 0x3e2   :  { %v4969_v46 = vmax.f32 %v8715_v25, %v8719_v50 }
 0x3e3   :  { %v5007_v44 = vmax.f32 %v4967_v23, %v4968_v3  ;;  %v4970_v22 = vmax.f32 %v8716_v42, %v8720_v13  ;;  %v11672_v13 = vld [vmem:[#allocation28_spill] sm:$0xff] }
 0x3e5   :  { %v5042_v35 = vadd.f32 %v10850_v10, %v5007_v44  ;;  %v5008_v5 = vmax.f32 %v4969_v46, %v4970_v22  ;;  %v4388_v48 = vpop.f32.mrb[72].mxu0 }
 0x3e6   :  { %v8721_v24 = vadd.f32 %v4388_v48, %v10852_v37  ;;  %v4390_v14 = vpop.f32.mrb[73].mxu0 }
 0x3e7   :  { %v5043_v7 = vadd.f32 %v10850_v10, %v5008_v5  ;;  %v8722_v2 = vadd.f32 %v4390_v14, %v10854_v32  ;;  %v4392_v15 = vpop.f32.mrb[74].mxu0  ;;  %v5070_v60 = vmax.f32 %v5042_v35, 0.0 }
 0x3e8   :  { %v8723_v28 = vadd.f32 %v4392_v15, %v10856_v21  ;;  %v4394_v54 = vpop.f32.mrb[75].mxu0 }
 0x3e9   :  { %v5071_v49 = vmax.f32 %v5043_v7, 0.0  ;;  %v8724_v25 = vadd.f32 %v4394_v54, %v10859_v27 }
 0x3eb   :  { %v11095_v42 = vpack.c.bf16 %v5071_v49, %v5070_v60 }
 0x3ed   :  { %v4398_v23 = vpop.f32.mrb[76].mxu0  ;;  %5329 = vmatmul.mubr.bf16.gmra.mrb[144].mxu1 %v11095_v42 }
 0x3ee   :  { %v8725_v37 = vadd.f32 %v4398_v23, %v10869_v52  ;;  %v4400_v34 = vpop.f32.mrb[77].mxu0  ;;  %5338 = vmatprep.mubr.bf16.mxu1 %v11641_v4 }
 0x3ef   :  { %v8726_v32 = vadd.f32 %v4400_v34, %v10874_v30  ;;  %v4402_v50 = vpop.f32.mrb[78].mxu0 }
 0x3f0   :  { %v4971_v31 = vmax.f32 %v8721_v24, %v8725_v37  ;;  %v8727_v21 = vadd.f32 %v4402_v50, %v10876_v9  ;;  %v4404_v3 = vpop.f32.mrb[79].mxu0 }
 0x3f1   :  { %v4972_v45 = vmax.f32 %v8722_v2, %v8726_v32  ;;  %v8728_v27 = vadd.f32 %v4404_v3, %v11672_v13  ;;  %v9543_v3 = vld [vmem:[%s11606_s3 + $0x114] ss:$8 sps:$4 sm:$0xff]  }
 0x3f2   :  { %v4973_v46 = vmax.f32 %v8723_v28, %v8727_v21 }
 0x3f3   :  { %v5009_v44 = vmax.f32 %v4971_v31, %v4972_v45  ;;  %v4974_v22 = vmax.f32 %v8724_v25, %v8728_v27  ;;  %v9538_v31 = vld [vmem:[%s11606_s3 + $0x100] ss:$8 sps:$4 sm:$0xff]   ;;  %v9541_v27 = vld [vmem:[%s11606_s3 + $0x110] ss:$8 sps:$4 sm:$0xff]  }
 0x3f5   :  { %v5044_v35 = vadd.f32 %v10850_v10, %v5009_v44  ;;  %v5010_v5 = vmax.f32 %v4973_v46, %v4974_v22  ;;  %v4408_v52 = vpop.f32.mrb[80].mxu0 }
 0x3f6   :  { %v8729_v48 = vadd.f32 %v4408_v52, %v10898_v18  ;;  %v4410_v14 = vpop.f32.mrb[81].mxu0 }
 0x3f7   :  { %v5045_v30 = vadd.f32 %v10850_v10, %v5010_v5  ;;  %v8730_v24 = vadd.f32 %v4410_v14, %v10904_v16  ;;  %v4412_v7 = vpop.f32.mrb[82].mxu0  ;;  %v5072_v15 = vmax.f32 %v5044_v35, 0.0  ;;  %v9544_v14 = vld [vmem:[%s11606_s3 + $0x120] ss:$8 sps:$4 sm:$0xff]  }
 0x3f8   :  { %v8731_v9 = vadd.f32 %v4412_v7, %v10911_v1  ;;  %v4414_v2 = vpop.f32.mrb[83].mxu0  ;;  %v11673_v7 = vld [vmem:[#allocation29_spill] sm:$0xff] }
 0x3f9   :  { %v5073_v54 = vmax.f32 %v5045_v30, 0.0  ;;  %v8732_v28 = vadd.f32 %v4414_v2, %v10914_v38 }
 0x3fb   :  { %v11109_v60 = vpack.c.bf16 %v5073_v54, %v5072_v15  ;;  %v11675_v15 = vld [vmem:[#allocation31_spill] sm:$0xff] }
 0x3fd   :  { %v4418_v49 = vpop.f32.mrb[84].mxu0  ;;  %5339 = vmatmul.mubr.bf16.gmra.mrb[148].mxu1 %v11109_v60 }
 0x3fe   :  { %v8733_v18 = vadd.f32 %v4418_v49, %v10926_v20  ;;  %v4420_v25 = vpop.f32.mrb[85].mxu0  ;;  %5529 = vmatprep.mubr.bf16.mxu1 %v11641_v4  ;;  %v9552_v49 = vld [vmem:[%s11606_s3 + $0x144] ss:$8 sps:$4 sm:$0xff]  }
 0x3ff   :  { %v8734_v16 = vadd.f32 %v4420_v25, %v10933_v40  ;;  %v4422_v23 = vpop.f32.mrb[86].mxu0 }
 0x400   :  { %v4975_v37 = vmax.f32 %v8729_v48, %v8733_v18  ;;  %v8735_v1 = vadd.f32 %v4422_v23, %v10939_v36  ;;  %v4424_v34 = vpop.f32.mrb[87].mxu0 }
 0x401   :  { %v4976_v32 = vmax.f32 %v8730_v24, %v8734_v16  ;;  %v8736_v38 = vadd.f32 %v4424_v34, %v10942_v33  ;;  %v9550_v34 = vld [vmem:[%s11606_s3 + $0x140] ss:$8 sps:$4 sm:$0xff]  }
 0x402   :  { %v4977_v50 = vmax.f32 %v8731_v9, %v8735_v1 }
 0x403   :  { %v5011_v21 = vmax.f32 %v4975_v37, %v4976_v32  ;;  %v4978_v20 = vmax.f32 %v8732_v28, %v8736_v38 }
 0x405   :  { %v5046_v40 = vadd.f32 %v10850_v10, %v5011_v21  ;;  %v5012_v45 = vmax.f32 %v4977_v50, %v4978_v20  ;;  %v4428_v13 = vpop.f32.mrb[88].mxu0  ;;  %5530 = vmatmul.mubr.bf16.vlgmr.msra.gmra.mrb[112].mxu1 %v10920_v39  ;;  %v9546_v39 = vld [vmem:[%s11606_s3 + $0x124] ss:$8 sps:$4 sm:$0xff]   ;;  %v9555_v50 = vld [vmem:[%s11606_s3 + $0x154] ss:$8 sps:$4 sm:$0xff]  }
 0x406   :  { %v8737_v36 = vadd.f32 %v4428_v13, %v10952_v57  ;;  %v4430_v33 = vpop.f32.mrb[89].mxu0  ;;  %5859 = vmatpush1.bf16.msra.mxu1 %v9538_v31  ;;  %5539 = vmatprep.mubr.bf16.mxu1 %v11641_v4  ;;  %v9558_v13 = vld [vmem:[%s11606_s3 + $0x164] ss:$8 sps:$4 sm:$0xff]  }
 0x407   :  { %v5047_v46 = vadd.f32 %v10850_v10, %v5012_v45  ;;  %v8738_v44 = vadd.f32 %v4430_v33, %v10958_v29  ;;  %v4432_v22 = vpop.f32.mrb[90].mxu0  ;;  %5860 = vmatprep.subr.bf16.mxu1 %v9543_v3  ;;  %v5074_v5 = vmax.f32 %v5046_v40, 0.0  ;;  %v9549_v29 = vld [vmem:[%s11606_s3 + $0x134] ss:$8 sps:$4 sm:$0xff]   ;;  %v9553_v3 = vld [vmem:[%s11606_s3 + $0x150] ss:$8 sps:$4 sm:$0xff]  }
 0x408   :  { %v8739_v57 = vadd.f32 %v4432_v22, %v10962_v47  ;;  %v4434_v35 = vpop.f32.mrb[91].mxu0  ;;  %v11674_v47 = vld [vmem:[#allocation30_spill] sm:$0xff]  ;;  %v9561_v22 = vld [vmem:[%s11606_s3 + $0x174] ss:$8 sps:$4 sm:$0xff]  }
 0x409   :  { %v5075_v52 = vmax.f32 %v5047_v46, 0.0  ;;  %v8740_v48 = vadd.f32 %v4434_v35, %v10965_v53  ;;  %v9547_v53 = vld [vmem:[%s11606_s3 + $0x130] ss:$8 sps:$4 sm:$0xff]  }
 0x40a   :  { %5861 = vmatpush1.bf16.msra.mxu1 %v9541_v27  ;;  %v9559_v35 = vld [vmem:[%s11606_s3 + $0x170] ss:$8 sps:$4 sm:$0xff]  }
 0x40b   :  { %5862 = vmatprep.subr.bf16.mxu1 %v9546_v39  ;;  %v11143_v30 = vpack.c.bf16 %v5075_v52, %v5074_v5  ;;  %v11676_v5 = vld [vmem:[#allocation32_spill] sm:$0xff] }
 0x40d   :  { %v4438_v24 = vpop.f32.mrb[92].mxu0  ;;  %5540 = vmatmul.mubr.bf16.gmra.mrb[116].mxu1 %v11673_v7 }
 0x40e   :  { %v8741_v9 = vadd.f32 %v4438_v24, %v11674_v47  ;;  %v4440_v2 = vpop.f32.mrb[93].mxu0  ;;  %5549 = vmatprep.mubr.bf16.mxu1 %v11641_v4  ;;  %5863 = vmatpush1.bf16.msra.mxu1 %v9544_v14  ;;  %v9564_v14 = vld [vmem:[%s11606_s3 + $0x184] ss:$8 sps:$4 sm:$0xff]  }
 0x40f   :  { %v8742_v54 = vadd.f32 %v4440_v2, %v11675_v15  ;;  %v4442_v28 = vpop.f32.mrb[94].mxu0  ;;  %5864 = vmatprep.subr.bf16.mxu1 %v9549_v29 }
 0x410   :  { %v4979_v18 = vmax.f32 %v8737_v36, %v8741_v9  ;;  %v8743_v25 = vadd.f32 %v4442_v28, %v10981_v43  ;;  %v4444_v16 = vpop.f32.mrb[95].mxu0 }
 0x411   :  { %v4980_v23 = vmax.f32 %v8738_v44, %v8742_v54  ;;  %v8744_v37 = vadd.f32 %v4444_v16, %v10984_v62 }
 0x412   :  { %v4981_v1 = vmax.f32 %v8739_v57, %v8743_v25  ;;  %5865 = vmatpush1.bf16.msra.mxu1 %v9547_v53 }
 0x413   :  { %v5013_v32 = vmax.f32 %v4979_v18, %v4980_v23  ;;  %v4982_v38 = vmax.f32 %v8740_v48, %v8744_v37  ;;  %5866 = vmatprep.subr.bf16.mxu1 %v9552_v49 }
 0x415   :  { %v5014_v31 = vmax.f32 %v4981_v1, %v4982_v38  ;;  %v4448_v21 = vpop.f32.mrb[96].mxu0  ;;  %5550 = vmatmul.mubr.bf16.gmra.mrb[120].mxu1 %v11001_v63  ;;  %v5048_v43 = vadd.f32 %v10850_v10, %v5013_v32 }
 0x416   :  { %v8745_v62 = vadd.f32 %v4448_v21, %v10988_v59  ;;  %v4450_v20 = vpop.f32.mrb[97].mxu0  ;;  %5559 = vmatprep.mubr.bf16.mxu1 %v11641_v4  ;;  %5867 = vmatpush1.bf16.msra.mxu1 %v9550_v34 }
 0x417   :  { %v8746_v40 = vadd.f32 %v4450_v20, %v10991_v55  ;;  %v4452_v45 = vpop.f32.mrb[98].mxu0  ;;  %5868 = vmatprep.subr.bf16.mxu1 %v9555_v50  ;;  %v5049_v36 = vadd.f32 %v10850_v10, %v5014_v31  ;;  %v5076_v46 = vmax.f32 %v5048_v43, 0.0  ;;  %v9556_v55 = vld [vmem:[%s11606_s3 + $0x160] ss:$8 sps:$4 sm:$0xff]  }
 0x418   :  { %v8747_v59 = vadd.f32 %v4452_v45, %v10995_v61  ;;  %v4454_v33 = vpop.f32.mrb[99].mxu0  ;;  %v11680_v45 = vld [vmem:[#allocation36_spill] sm:$0xff] }
 0x419   :  { %v8748_v27 = vadd.f32 %v4454_v33, %v10998_v11  ;;  %v5077_v44 = vmax.f32 %v5049_v36, 0.0 }
 0x41a   :  { %5869 = vmatpush1.bf16.msra.mxu1 %v9553_v3 }
 0x41b   :  { %5870 = vmatprep.subr.bf16.mxu1 %v9558_v13  ;;  %v11183_v39 = vpack.c.bf16 %v5077_v44, %v5076_v46 }
 0x41d   :  { %v4458_v57 = vpop.f32.mrb[100].mxu0  ;;  %5560 = vmatmul.mubr.bf16.gmra.mrb[124].mxu1 %v11031_v12 }
 0x41e   :  { %v8749_v61 = vadd.f32 %v4458_v57, %v11004_v56  ;;  %v4460_v11 = vpop.f32.mrb[101].mxu0  ;;  %5569 = vmatprep.mubr.bf16.mxu1 %v11641_v4  ;;  %5871 = vmatpush1.bf16.msra.mxu1 %v9556_v55 }
 0x41f   :  { %v8750_v52 = vadd.f32 %v4460_v11, %v11676_v5  ;;  %v4462_v48 = vpop.f32.mrb[102].mxu0  ;;  %5872 = vmatprep.subr.bf16.mxu1 %v9561_v22  ;;  %v9565_v11 = vld [vmem:[%s11606_s3 + $0x190] ss:$8 sps:$4 sm:$0xff]   ;;  %v9568_v5 = vld [vmem:[%s11606_s3 + $0x1a0] ss:$8 sps:$4 sm:$0xff]  }
 0x420   :  { %v4983_v29 = vmax.f32 %v8745_v62, %v8749_v61  ;;  %v8751_v24 = vadd.f32 %v4462_v48, %v11011_v58  ;;  %v4464_v56 = vpop.f32.mrb[103].mxu0  ;;  %v9567_v61 = vld [vmem:[%s11606_s3 + $0x194] ss:$8 sps:$4 sm:$0xff]   ;;  %v9576_v48 = vld [vmem:[%s11606_s3 + $0x1c4] ss:$8 sps:$4 sm:$0xff]  }
 0x421   :  { %v4984_v47 = vmax.f32 %v8746_v40, %v8750_v52  ;;  %v8752_v9 = vadd.f32 %v4464_v56, %v11014_v51  ;;  %v9571_v52 = vld [vmem:[%s11606_s3 + $0x1b0] ss:$8 sps:$4 sm:$0xff]   ;;  %v9582_v56 = vld [vmem:[%s11606_s3 + $0x1e4] ss:$8 sps:$4 sm:$0xff]  }
 0x422   :  { %v4985_v2 = vmax.f32 %v8747_v59, %v8751_v24  ;;  %5873 = vmatpush1.bf16.msra.mxu1 %v9559_v35  ;;  %v9570_v35 = vld [vmem:[%s11606_s3 + $0x1a4] ss:$8 sps:$4 sm:$0xff]   ;;  %v9577_v24 = vld [vmem:[%s11606_s3 + $0x1d0] ss:$8 sps:$4 sm:$0xff]  }
 0x423   :  { %v5015_v53 = vmax.f32 %v4983_v29, %v4984_v47  ;;  %v4986_v15 = vmax.f32 %v8748_v27, %v8752_v9  ;;  %6219 = vmatprep.subr.bf16.mxu1 %v9564_v14  ;;  %v9574_v14 = vld [vmem:[%s11606_s3 + $0x1c0] ss:$8 sps:$4 sm:$0xff]   ;;  %v9579_v29 = vld [vmem:[%s11606_s3 + $0x1d4] ss:$8 sps:$4 sm:$0xff]  }
 0x424   :  { %v9580_v47 = vld [vmem:[%s11606_s3 + $0x1e0] ss:$8 sps:$4 sm:$0xff]   ;;  %v9585_v9 = vld [vmem:[%s11606_s3 + $0x1f4] ss:$8 sps:$4 sm:$0xff]  }
 0x425   :  { %v5016_v54 = vmax.f32 %v4985_v2, %v4986_v15  ;;  %v4468_v28 = vpop.f32.mrb[104].mxu0  ;;  %5570 = vmatmul.mubr.bf16.gmra.mrb[128].mxu1 %v11053_v26  ;;  %v5050_v49 = vadd.f32 %v10850_v10, %v5015_v53  ;;  %v9583_v2 = vld [vmem:[%s11606_s3 + $0x1f0] ss:$8 sps:$4 sm:$0xff]   ;;  %v9588_v53 = vld [vmem:[%s11606_s3 + $0x204] ss:$8 sps:$4 sm:$0xff]  }
 0x426   :  { %v8753_v18 = vadd.f32 %v4468_v28, %v11018_v6  ;;  %v4470_v25 = vpop.f32.mrb[105].mxu0  ;;  %5579 = vmatprep.mubr.bf16.mxu1 %v11641_v4  ;;  %v11677_v6 = vld [vmem:[#allocation33_spill] sm:$0xff]  ;;  %v9586_v15 = vld [vmem:[%s11606_s3 + $0x200] ss:$8 sps:$4 sm:$0xff]  }
 0x427   :  { %v8754_v58 = vadd.f32 %v4470_v25, %v11021_v0  ;;  %v4472_v16 = vpop.f32.mrb[106].mxu0  ;;  %v5051_v51 = vadd.f32 %v10850_v10, %v5016_v54  ;;  %v5078_v34 = vmax.f32 %v5050_v49, 0.0  ;;  %v11678_v0 = vld [vmem:[#allocation34_spill] sm:$0xff]  ;;  %v9591_v54 = vld [vmem:[%s11606_s3 + $0x214] ss:$8 sps:$4 sm:$0xff]  }
 0x428   :  { %v8755_v23 = vadd.f32 %v4472_v16, %v11025_v8  ;;  %v4474_v37 = vpop.f32.mrb[107].mxu0  ;;  %v11679_v8 = vld [vmem:[#allocation35_spill] sm:$0xff]  ;;  %v9589_v28 = vld [vmem:[%s11606_s3 + $0x210] ss:$8 sps:$4 sm:$0xff]  }
 0x429   :  { %v8756_v1 = vadd.f32 %v4474_v37, %v11028_v41  ;;  %v5079_v32 = vmax.f32 %v5051_v51, 0.0  ;;  %v9594_v49 = vld [vmem:[%s11606_s3 + $0x224] ss:$8 sps:$4 sm:$0xff]   ;;  %v9595_v25 = vld [vmem:[%s11606_s3 + $0x230] ss:$8 sps:$4 sm:$0xff]  }
 0x42a   :  { %v9598_v16 = vld [vmem:[%s11606_s3 + $0x240] ss:$8 sps:$4 sm:$0xff]   ;;  %v9603_v51 = vld [vmem:[%s11606_s3 + $0x254] ss:$8 sps:$4 sm:$0xff]   ;;  %v9606_v37 = vld [vmem:[%s11606_s3 + $0x264] ss:$8 sps:$4 sm:$0xff]  }
 0x42b   :  { %v11205_v38 = vpack.c.bf16 %v5079_v32, %v5078_v34  ;;  %v9609_v34 = vld [vmem:[%s11606_s3 + $0x274] ss:$8 sps:$4 sm:$0xff]   ;;  %v9607_v32 = vld [vmem:[%s11606_s3 + $0x270] ss:$8 sps:$4 sm:$0xff]  }
 0x42d   :  { %v4478_v50 = vpop.f32.mrb[108].mxu0  ;;  %5580 = vmatmul.mubr.bf16.gmra.mrb[132].mxu1 %v11067_v17 }
 0x42e   :  { %v8757_v31 = vadd.f32 %v4478_v50, %v11677_v6  ;;  %v4480_v21 = vpop.f32.mrb[109].mxu0  ;;  %5589 = vmatprep.mubr.bf16.mxu1 %v11641_v4  ;;  %v9675_v50 = vmov 0.0   ;;  %v9610_v6 = vld [vmem:[%s11608_s5 + $0x40] sm:$0xff]  }
 0x42f   :  { %v8758_v43 = vadd.f32 %v4480_v21, %v11678_v0  ;;  %v4482_v62 = vpop.f32.mrb[110].mxu0  ;;  %v9612_v21 = vld [vmem:[%s11608_s5 + $0x50] sm:$0xff]   ;;  %v9614_v0 = vld [vmem:[%s11608_s5 + $0x60] sm:$0xff]  }
 0x430   :  { %v4987_v20 = vmax.f32 %v8753_v18, %v8757_v31  ;;  %v8759_v3 = vadd.f32 %v4482_v62, %v11679_v8  ;;  %v4484_v40 = vpop.f32.mrb[111].mxu0  ;;  %v9592_v18 = vld [vmem:[%s11606_s3 + $0x220] ss:$8 sps:$4 sm:$0xff]  }
 0x431   :  { %v4988_v41 = vmax.f32 %v8754_v58, %v8758_v43  ;;  %v8760_v13 = vadd.f32 %v4484_v40, %v11680_v45  ;;  %v9600_v58 = vld [vmem:[%s11606_s3 + $0x244] ss:$8 sps:$4 sm:$0xff]   ;;  %v11415_v8 = vld [vmem:[%s11609_s4] ss:$0 sm:$0xff] }
 0x432   :  { %v4989_v36 = vmax.f32 %v8755_v23, %v8759_v3  ;;  %v9601_v23 = vld [vmem:[%s11606_s3 + $0x250] ss:$8 sps:$4 sm:$0xff]   ;;  %v9611_v31 = vld [vmem:[%s11608_s5 + $0x48] sm:$0xff]  }
 0x433   :  { %v5017_v59 = vmax.f32 %v4987_v20, %v4988_v41  ;;  %v4990_v33 = vmax.f32 %v8756_v1, %v8760_v13  ;;  %v9604_v1 = vld [vmem:[%s11606_s3 + $0x260] ss:$8 sps:$4 sm:$0xff]  }
 0x435   :  { %v5018_v27 = vmax.f32 %v4989_v36, %v4990_v33  ;;  %5590 = vmatmul.mubr.bf16.gmra.mrb[136].mxu1 %v11081_v19  ;;  %v5052_v46 = vadd.f32 %v10850_v10, %v5017_v59 }
 0x436   :  { %5599 = vmatprep.mubr.bf16.mxu1 %v11641_v4 }
 0x437   :  { %v5053_v44 = vadd.f32 %v10850_v10, %v5018_v27  ;;  %v5080_v55 = vmax.f32 %v5052_v46, 0.0  ;;  %v9562_v10 = vld [vmem:[%s11606_s3 + $0x180] ss:$8 sps:$4 sm:$0xff]  }
 0x439   :  { %v5081_v22 = vmax.f32 %v5053_v44, 0.0 }
 0x43b   :  { %v11217_v57 = vpack.c.bf16 %v5081_v22, %v5080_v55 }
 0x43d   :  { %5600 = vmatmul.mubr.bf16.gmra.mrb[140].mxu1 %v11095_v42 }
 0x43e   :  { %5609 = vmatprep.mubr.bf16.mxu1 %v11641_v4 }
 0x445   :  { %5610 = vmatmul.mubr.bf16.gmra.mrb[144].mxu1 %v11109_v60 }
 0x446   :  { %5619 = vmatprep.mubr.bf16.mxu1 %v11641_v4 }
 0x44d   :  { %5620 = vmatmul.mubr.bf16.gmra.mrb[148].mxu1 %v11143_v30 }
 0x44e   :  { %5890 = vmatprep.mubr.bf16.mxu1 %v11641_v4 }
 0x455   :  { %5891 = vmatmul.mubr.bf16.vlgmr.msra.gmra.mrb[112].mxu1 %v11673_v7  ;;  %v9573_v7 = vld [vmem:[%s11606_s3 + $0x1b4] ss:$8 sps:$4 sm:$0xff]  }
 0x456   :  { %6220 = vmatpush1.bf16.msra.mxu1 %v9562_v10  ;;  %5900 = vmatprep.mubr.bf16.mxu1 %v11641_v4 }
 0x457   :  { %6221 = vmatprep.subr.bf16.mxu1 %v9567_v61 }
 0x45a   :  { %6222 = vmatpush1.bf16.msra.mxu1 %v9565_v11 }
 0x45b   :  { %6223 = vmatprep.subr.bf16.mxu1 %v9570_v35 }
 0x45d   :  { %5901 = vmatmul.mubr.bf16.gmra.mrb[116].mxu1 %v11001_v63 }
 0x45e   :  { %5910 = vmatprep.mubr.bf16.mxu1 %v11641_v4  ;;  %6224 = vmatpush1.bf16.msra.mxu1 %v9568_v5 }
 0x45f   :  { %6225 = vmatprep.subr.bf16.mxu1 %v9573_v7 }
 0x462   :  { %6226 = vmatpush1.bf16.msra.mxu1 %v9571_v52 }
 0x463   :  { %6227 = vmatprep.subr.bf16.mxu1 %v9576_v48 }
 0x465   :  { %5911 = vmatmul.mubr.bf16.gmra.mrb[120].mxu1 %v11031_v12 }
 0x466   :  { %5920 = vmatprep.mubr.bf16.mxu1 %v11641_v4  ;;  %6228 = vmatpush1.bf16.msra.mxu1 %v9574_v14 }
 0x467   :  { %6229 = vmatprep.subr.bf16.mxu1 %v9579_v29 }
 0x46a   :  { %6230 = vmatpush1.bf16.msra.mxu1 %v9577_v24 }
 0x46b   :  { %6231 = vmatprep.subr.bf16.mxu1 %v9582_v56 }
 0x46d   :  { %5921 = vmatmul.mubr.bf16.gmra.mrb[124].mxu1 %v11053_v26 }
 0x46e   :  { %5930 = vmatprep.mubr.bf16.mxu1 %v11641_v4  ;;  %6232 = vmatpush1.bf16.msra.mxu1 %v9580_v47 }
 0x46f   :  { %6233 = vmatprep.subr.bf16.mxu1 %v9585_v9 }
 0x472   :  { %6234 = vmatpush1.bf16.msra.mxu1 %v9583_v2 }
 0x473   :  { %6580 = vmatprep.subr.bf16.mxu1 %v9588_v53 }
 0x475   :  { %5931 = vmatmul.mubr.bf16.gmra.mrb[128].mxu1 %v11067_v17 }
 0x476   :  { %5940 = vmatprep.mubr.bf16.mxu1 %v11641_v4 }
 0x47d   :  { %5941 = vmatmul.mubr.bf16.gmra.mrb[132].mxu1 %v11081_v19 }
 0x47e   :  { %5950 = vmatprep.mubr.bf16.mxu1 %v11641_v4 }
 0x485   :  { %5951 = vmatmul.mubr.bf16.gmra.mrb[136].mxu1 %v11095_v42 }
 0x486   :  { %5960 = vmatprep.mubr.bf16.mxu1 %v11641_v4 }
 0x48d   :  { %5961 = vmatmul.mubr.bf16.gmra.mrb[140].mxu1 %v11109_v60 }
 0x48e   :  { %5970 = vmatprep.mubr.bf16.mxu1 %v11641_v4 }
 0x495   :  { %5971 = vmatmul.mubr.bf16.gmra.mrb[144].mxu1 %v11143_v30 }
 0x496   :  { %5980 = vmatprep.mubr.bf16.mxu1 %v11641_v4 }
 0x49d   :  { %5981 = vmatmul.mubr.bf16.gmra.mrb[148].mxu1 %v11183_v39 }
 0x49e   :  { %6251 = vmatprep.mubr.bf16.mxu1 %v11641_v4 }
 0x4a5   :  { %6252 = vmatmul.mubr.bf16.vlgmr.msra.gmra.mrb[112].mxu1 %v11001_v63  ;;  %v9597_v63 = vld [vmem:[%s11606_s3 + $0x234] ss:$8 sps:$4 sm:$0xff]  }
 0x4a6   :  { %6581 = vmatpush1.bf16.msra.mxu1 %v9586_v15  ;;  %6261 = vmatprep.mubr.bf16.mxu1 %v11641_v4 }
 0x4a7   :  { %6582 = vmatprep.subr.bf16.mxu1 %v9591_v54 }
 0x4aa   :  { %6583 = vmatpush1.bf16.msra.mxu1 %v9589_v28  ;;  %v9618_v28 = vld [vmem:[%s11608_s5] sm:$0xff]  }
 0x4ab   :  { %6584 = vmatprep.subr.bf16.mxu1 %v9594_v49 }
 0x4ad   :  { %6262 = vmatmul.mubr.bf16.gmra.mrb[116].mxu1 %v11031_v12 }
 0x4ae   :  { %6271 = vmatprep.mubr.bf16.mxu1 %v11641_v4  ;;  %6585 = vmatpush1.bf16.msra.mxu1 %v9592_v18  ;;  %v9619_v18 = vld [vmem:[%s11608_s5 + $0x8] sm:$0xff]  }
 0x4af   :  { %6586 = vmatprep.subr.bf16.mxu1 %v9597_v63 }
 0x4b2   :  { %6587 = vmatpush1.bf16.msra.mxu1 %v9595_v25 }
 0x4b3   :  { %6588 = vmatprep.subr.bf16.mxu1 %v9600_v58 }
 0x4b5   :  { %6272 = vmatmul.mubr.bf16.gmra.mrb[120].mxu1 %v11053_v26 }
 0x4b6   :  { %6281 = vmatprep.mubr.bf16.mxu1 %v11641_v4  ;;  %6589 = vmatpush1.bf16.msra.mxu1 %v9598_v16 }
 0x4b7   :  { %6590 = vmatprep.subr.bf16.mxu1 %v9603_v51 }
 0x4ba   :  { %6591 = vmatpush1.bf16.msra.mxu1 %v9601_v23 }
 0x4bb   :  { %6592 = vmatprep.subr.bf16.mxu1 %v9606_v37 }
 0x4bd   :  { %6282 = vmatmul.mubr.bf16.gmra.mrb[124].mxu1 %v11067_v17 }
 0x4be   :  { %6291 = vmatprep.mubr.bf16.mxu1 %v11641_v4  ;;  %6593 = vmatpush1.bf16.msra.mxu1 %v9604_v1  ;;  %v9620_v1 = vld [vmem:[%s11608_s5 + $0x10] sm:$0xff]  }
 0x4bf   :  { %6594 = vmatprep.subr.bf16.mxu1 %v9609_v34 }
 0x4c2   :  { %6595 = vmatpush1.bf16.msra.mxu1 %v9607_v32 }
 0x4c3   :  { %8525 = vmatprep.subr.bf16.mxu1 %v9675_v50 }
 0x4c5   :  { %6292 = vmatmul.mubr.bf16.gmra.mrb[128].mxu1 %v11081_v19 }
 0x4c6   :  { %6301 = vmatprep.mubr.bf16.mxu1 %v11641_v4 }
 0x4cd   :  { %6302 = vmatmul.mubr.bf16.gmra.mrb[132].mxu1 %v11095_v42 }
 0x4ce   :  { %6311 = vmatprep.mubr.bf16.mxu1 %v11641_v4 }
 0x4d5   :  { %6312 = vmatmul.mubr.bf16.gmra.mrb[136].mxu1 %v11109_v60 }
 0x4d6   :  { %6321 = vmatprep.mubr.bf16.mxu1 %v11641_v4 }
 0x4dd   :  { %6322 = vmatmul.mubr.bf16.gmra.mrb[140].mxu1 %v11143_v30 }
 0x4de   :  { %6331 = vmatprep.mubr.bf16.mxu1 %v11641_v4 }
 0x4e5   :  { %6332 = vmatmul.mubr.bf16.gmra.mrb[144].mxu1 %v11183_v39 }
 0x4e6   :  { %6341 = vmatprep.mubr.bf16.mxu1 %v11641_v4 }
 0x4ed   :  { %6342 = vmatmul.mubr.bf16.gmra.mrb[148].mxu1 %v11205_v38 }
 0x4ee   :  { %6612 = vmatprep.mubr.bf16.mxu1 %v11641_v4 }
 0x4f5   :  { %6613 = vmatmul.mubr.bf16.vlgmr.msra.gmra.mrb[112].mxu1 %v11031_v12  ;;  %v9613_v12 = vld [vmem:[%s11608_s5 + $0x58] sm:$0xff]  }
 0x4f6   :  { %6622 = vmatprep.mubr.bf16.mxu1 %v11641_v4  ;;  %8526 = vmatpush3.bf16.msra.mxu1 %v9610_v6 }
 0x4f7   :  { %8527 = vmatprep.subr.bf16.mxu1 %v9675_v50 }
 0x4fa   :  { %8528 = vmatpush3.bf16.msra.mxu1 %v9611_v31 }
 0x4fb   :  { %8529 = vmatprep.subr.bf16.mxu1 %v9675_v50 }
 0x4fd   :  { %6623 = vmatmul.mubr.bf16.gmra.mrb[116].mxu1 %v11053_v26  ;;  %v9615_v26 = vld [vmem:[%s11608_s5 + $0x68] sm:$0xff]  }
 0x4fe   :  { %6632 = vmatprep.mubr.bf16.mxu1 %v11641_v4  ;;  %8530 = vmatpush3.bf16.msra.mxu1 %v9612_v21  ;;  %v9621_v21 = vld [vmem:[%s11608_s5 + $0x18] sm:$0xff]  }
 0x4ff   :  { %8531 = vmatprep.subr.bf16.mxu1 %v9675_v50 }
 0x502   :  { %8532 = vmatpush3.bf16.msra.mxu1 %v9613_v12 }
 0x503   :  { %8533 = vmatprep.subr.bf16.mxu1 %v9675_v50 }
 0x505   :  { %6633 = vmatmul.mubr.bf16.gmra.mrb[120].mxu1 %v11067_v17  ;;  %v9616_v17 = vld [vmem:[%s11608_s5 + $0x70] sm:$0xff]  }
 0x506   :  { %6642 = vmatprep.mubr.bf16.mxu1 %v11641_v4  ;;  %8534 = vmatpush3.bf16.msra.mxu1 %v9614_v0 }
 0x507   :  { %8535 = vmatprep.subr.bf16.mxu1 %v9675_v50 }
 0x50a   :  { %8536 = vmatpush3.bf16.msra.mxu1 %v9615_v26 }
 0x50b   :  { %8537 = vmatprep.subr.bf16.mxu1 %v9675_v50 }
 0x50d   :  { %6643 = vmatmul.mubr.bf16.gmra.mrb[124].mxu1 %v11081_v19 }
 0x50e   :  { %6652 = vmatprep.mubr.bf16.mxu1 %v11641_v4  ;;  %8538 = vmatpush3.bf16.msra.mxu1 %v9616_v17 }
 0x50f   :  { %8539 = vmatprep.subr.bf16.mxu1 %v9675_v50 }
 0x515   :  { %6653 = vmatmul.mubr.bf16.gmra.mrb[128].mxu1 %v11095_v42 }
 0x516   :  { %6662 = vmatprep.mubr.bf16.mxu1 %v11641_v4 }
 0x51d   :  { %6663 = vmatmul.mubr.bf16.gmra.mrb[132].mxu1 %v11109_v60 }
 0x51e   :  { %6672 = vmatprep.mubr.bf16.mxu1 %v11641_v4 }
 0x525   :  { %6673 = vmatmul.mubr.bf16.gmra.mrb[136].mxu1 %v11143_v30 }
 0x526   :  { %6682 = vmatprep.mubr.bf16.mxu1 %v11641_v4 }
 0x52d   :  { %6683 = vmatmul.mubr.bf16.gmra.mrb[140].mxu1 %v11183_v39 }
 0x52e   :  { %6692 = vmatprep.mubr.bf16.mxu1 %v11641_v4 }
 0x535   :  { %6693 = vmatmul.mubr.bf16.gmra.mrb[144].mxu1 %v11205_v38 }
 0x536   :  { %6702 = vmatprep.mubr.bf16.mxu1 %v11641_v4  ;;  %v9617_v4 = vld [vmem:[%s11608_s5 + $0x78] sm:$0xff]  }
 0x537   :  { %8540 = vmatpush3.bf16.msra.mxu1 %v9617_v4 }
 0x538   :  { %8545 = vmatprep.subr.bf16.mxu1 %v9675_v50 }
 0x53d   :  { %6703 = vmatmul.mubr.bf16.gmra.mrb[148].mxu1 %v11217_v57 }
 0x53e   :  { %8541 = vmatprep.mubr.msk.bf16.mxu1 %vm9676_vm1, %v9675_v50 }
 0x5c8   :  { %v6614_v19 = vpop.f32.mrb[112].mxu1 }
 0x5c9   :  { %v6616_v42 = vpop.f32.mrb[113].mxu1 }
 0x5ca   :  { %v6618_v60 = vpop.f32.mrb[114].mxu1 }
 0x5cb   :  { %v6620_v30 = vpop.f32.mrb[115].mxu1 }
 0x5d0   :  { %v6624_v39 = vpop.f32.mrb[116].mxu1 }
 0x5d1   :  { %v6873_v38 = vmax.f32 %v6614_v19, %v6624_v39  ;;  %v6626_v43 = vpop.f32.mrb[117].mxu1  ;;  %v9623_v39 = vld [vmem:[%s11608_s5 + $0x28] sm:$0xff]  }
 0x5d2   :  { %v6874_v62 = vmax.f32 %v6616_v42, %v6626_v43  ;;  %v6628_v20 = vpop.f32.mrb[118].mxu1 }
 0x5d3   :  { %v6875_v3 = vmax.f32 %v6618_v60, %v6628_v20  ;;  %v6630_v40 = vpop.f32.mrb[119].mxu1  ;;  %v9622_v60 = vld [vmem:[%s11608_s5 + $0x20] sm:$0xff]  }
 0x5d4   :  { %v6893_v41 = vmax.f32 %v6873_v38, %v6874_v62  ;;  %v6876_v45 = vmax.f32 %v6620_v30, %v6630_v40 }
 0x5d6   :  { %v6910_v13 = vadd.f32 %v11415_v8, %v6893_v41  ;;  %v6894_v36 = vmax.f32 %v6875_v3, %v6876_v45  ;;  %v9624_v45 = vld [vmem:[%s11608_s5 + $0x30] sm:$0xff]  }
 0x5d8   :  { %v6911_v59 = vadd.f32 %v11415_v8, %v6894_v36  ;;  %v6634_v33 = vpop.f32.mrb[120].mxu1  ;;  %v6920_v46 = vmax.f32 %v6910_v13, 0.0 }
 0x5d9   :  { %v6636_v27 = vpop.f32.mrb[121].mxu1 }
 0x5da   :  { %v6921_v44 = vmax.f32 %v6911_v59, 0.0  ;;  %v6638_v55 = vpop.f32.mrb[122].mxu1 }
 0x5db   :  { %v6640_v22 = vpop.f32.mrb[123].mxu1 }
 0x5dc   :  { %v11419_v57 = vpack.c.bf16 %v6921_v44, %v6920_v46 }
 0x5e0   :  { %v6644_v10 = vpop.f32.mrb[124].mxu1 }
 0x5e1   :  { %v6877_v61 = vmax.f32 %v6634_v33, %v6644_v10  ;;  %v6646_v11 = vpop.f32.mrb[125].mxu1 }
 0x5e2   :  { %v6878_v35 = vmax.f32 %v6636_v27, %v6646_v11  ;;  %v6648_v5 = vpop.f32.mrb[126].mxu1  ;;  %v9625_v27 = vld [vmem:[%s11608_s5 + $0x38] sm:$0xff]  }
 0x5e3   :  { %v6879_v7 = vmax.f32 %v6638_v55, %v6648_v5  ;;  %v6650_v52 = vpop.f32.mrb[127].mxu1 }
 0x5e4   :  { %v6895_v48 = vmax.f32 %v6877_v61, %v6878_v35  ;;  %v6880_v14 = vmax.f32 %v6640_v22, %v6650_v52  ;;  %v9626_v35 = vld [vmem:[%s11608_s5 + $0x80] sm:$0xff]  }
 0x5e6   :  { %v6912_v29 = vadd.f32 %v11415_v8, %v6895_v48  ;;  %v6896_v24 = vmax.f32 %v6879_v7, %v6880_v14  ;;  %v9627_v7 = vld [vmem:[%s11608_s5 + $0x88] sm:$0xff]  }
 0x5e8   :  { %v6913_v56 = vadd.f32 %v11415_v8, %v6896_v24  ;;  %v6654_v47 = vpop.f32.mrb[128].mxu1  ;;  %v6922_v2 = vmax.f32 %v6912_v29, 0.0 }
 0x5e9   :  { %v6656_v9 = vpop.f32.mrb[129].mxu1 }
 0x5ea   :  { %v6923_v53 = vmax.f32 %v6913_v56, 0.0  ;;  %v6658_v15 = vpop.f32.mrb[130].mxu1 }
 0x5eb   :  { %v6660_v54 = vpop.f32.mrb[131].mxu1 }
 0x5ec   :  { %v6931_v49 = vpack.c.bf16 %v6923_v53, %v6922_v2 }
 0x5ee   :  { %8542 = vmatmul.mubr.bf16.vlgmr.msra.gmra.mrb[152].mxu1 %v6931_v49 }
 0x5ef   :  { %8546 = vmatpush3.bf16.msra.mxu1 %v9618_v28  ;;  %8561 = vmatprep.mubr.msk.bf16.mxu1 %vm9676_vm1, %v9675_v50 }
 0x5f0   :  { %v6664_v63 = vpop.f32.mrb[132].mxu1  ;;  %8547 = vmatprep.subr.bf16.mxu1 %v9675_v50 }
 0x5f1   :  { %v6881_v25 = vmax.f32 %v6654_v47, %v6664_v63  ;;  %v6666_v58 = vpop.f32.mrb[133].mxu1  ;;  %v9630_v63 = vld [vmem:[%s11608_s5 + $0xa0] sm:$0xff]  }
 0x5f2   :  { %v6882_v16 = vmax.f32 %v6656_v9, %v6666_v58  ;;  %v6668_v51 = vpop.f32.mrb[134].mxu1  ;;  %v9631_v58 = vld [vmem:[%s11608_s5 + $0xa8] sm:$0xff]  }
 0x5f3   :  { %v6883_v23 = vmax.f32 %v6658_v15, %v6668_v51  ;;  %8548 = vmatpush3.bf16.msra.mxu1 %v9619_v18  ;;  %v6670_v37 = vpop.f32.mrb[135].mxu1  ;;  %v9634_v51 = vld [vmem:[%s11608_s5 + $0xc0] sm:$0xff]  }
 0x5f4   :  { %v6897_v34 = vmax.f32 %v6881_v25, %v6882_v16  ;;  %v6884_v32 = vmax.f32 %v6660_v54, %v6670_v37  ;;  %8549 = vmatprep.subr.bf16.mxu1 %v9675_v50  ;;  %v9629_v54 = vld [vmem:[%s11608_s5 + $0x98] sm:$0xff]   ;;  %v9636_v37 = vld [vmem:[%s11608_s5 + $0xd0] sm:$0xff]  }
 0x5f5   :  { %v9633_v16 = vld [vmem:[%s11608_s5 + $0xb8] sm:$0xff]  }
 0x5f6   :  { %v6914_v6 = vadd.f32 %v11415_v8, %v6897_v34  ;;  %v6898_v31 = vmax.f32 %v6883_v23, %v6884_v32  ;;  %v9635_v23 = vld [vmem:[%s11608_s5 + $0xc8] sm:$0xff]   ;;  %v9638_v34 = vld [vmem:[%s11608_s5 + $0xe0] sm:$0xff]  }
 0x5f7   :  { %8550 = vmatpush3.bf16.msra.mxu1 %v9620_v1  ;;  %v9637_v1 = vld [vmem:[%s11608_s5 + $0xd8] sm:$0xff]   ;;  %v9639_v32 = vld [vmem:[%s11608_s5 + $0xe8] sm:$0xff]  }
 0x5f8   :  { %v6915_v12 = vadd.f32 %v11415_v8, %v6898_v31  ;;  %v6674_v0 = vpop.f32.mrb[136].mxu1  ;;  %8551 = vmatprep.subr.bf16.mxu1 %v9675_v50  ;;  %v6924_v17 = vmax.f32 %v6914_v6, 0.0  ;;  %v9640_v6 = vld [vmem:[%s11608_s5 + $0xf0] sm:$0xff]   ;;  %v9641_v31 = vld [vmem:[%s11608_s5 + $0xf8] sm:$0xff]  }
 0x5f9   :  { %v6676_v26 = vpop.f32.mrb[137].mxu1 }
 0x5fa   :  { %v6925_v4 = vmax.f32 %v6915_v12, 0.0  ;;  %v6678_v19 = vpop.f32.mrb[138].mxu1  ;;  %v9643_v12 = vld [vmem:[%s11608_s5 + $0x108] sm:$0xff]  }
 0x5fb   :  { %8552 = vmatpush3.bf16.msra.mxu1 %v9621_v21  ;;  %v6680_v42 = vpop.f32.mrb[139].mxu1  ;;  %v9642_v21 = vld [vmem:[%s11608_s5 + $0x100] sm:$0xff]  }
 0x5fc   :  { %v11445_v30 = vpack.c.bf16 %v6925_v4, %v6924_v17  ;;  %8553 = vmatprep.subr.bf16.mxu1 %v9675_v50  ;;  %v9646_v17 = vld [vmem:[%s11608_s5 + $0x120] sm:$0xff]   ;;  %v9647_v4 = vld [vmem:[%s11608_s5 + $0x128] sm:$0xff]  }
 0x5ff   :  { %8554 = vmatpush3.bf16.msra.mxu1 %v9622_v60  ;;  %v9650_v60 = vld [vmem:[%s11610_s7] sm:$0xff]  }
 0x600   :  { %v6684_v38 = vpop.f32.mrb[140].mxu1  ;;  %8555 = vmatprep.subr.bf16.mxu1 %v9675_v50 }
 0x601   :  { %v6885_v43 = vmax.f32 %v6674_v0, %v6684_v38  ;;  %v6686_v62 = vpop.f32.mrb[141].mxu1  ;;  %v9644_v0 = vld [vmem:[%s11608_s5 + $0x110] sm:$0xff]  }
 0x602   :  { %v6886_v20 = vmax.f32 %v6676_v26, %v6686_v62  ;;  %v6688_v3 = vpop.f32.mrb[142].mxu1  ;;  %v9645_v26 = vld [vmem:[%s11608_s5 + $0x118] sm:$0xff]   ;;  %v9652_v62 = vld [vmem:[%s11610_s7 + $0x10] sm:$0xff]  }
 0x603   :  { %v6887_v40 = vmax.f32 %v6678_v19, %v6688_v3  ;;  %8556 = vmatpush3.bf16.msra.mxu1 %v9623_v39  ;;  %v6690_v41 = vpop.f32.mrb[143].mxu1  ;;  %v9648_v19 = vld [vmem:[%s11608_s5 + $0x130] sm:$0xff]   ;;  %v9653_v3 = vld [vmem:[%s11610_s7 + $0x18] sm:$0xff]  }
 0x604   :  { %v6899_v13 = vmax.f32 %v6885_v43, %v6886_v20  ;;  %v6888_v36 = vmax.f32 %v6680_v42, %v6690_v41  ;;  %8557 = vmatprep.subr.bf16.mxu1 %v9675_v50  ;;  %v9649_v42 = vld [vmem:[%s11608_s5 + $0x138] sm:$0xff]  }
 0x606   :  { %v6916_v59 = vadd.f32 %v11415_v8, %v6899_v13  ;;  %v6900_v33 = vmax.f32 %v6887_v40, %v6888_v36 }
 0x607   :  { %8558 = vmatpush3.bf16.msra.mxu1 %v9624_v45 }
 0x608   :  { %v6917_v46 = vadd.f32 %v11415_v8, %v6900_v33  ;;  %v6694_v44 = vpop.f32.mrb[144].mxu1  ;;  %8559 = vmatprep.subr.bf16.mxu1 %v9675_v50  ;;  %v6926_v22 = vmax.f32 %v6916_v59, 0.0 }
 0x609   :  { %v6696_v55 = vpop.f32.mrb[145].mxu1 }
 0x60a   :  { %v6927_v10 = vmax.f32 %v6917_v46, 0.0  ;;  %v6698_v61 = vpop.f32.mrb[146].mxu1 }
 0x60b   :  { %8560 = vmatpush3.bf16.msra.mxu1 %v9625_v27  ;;  %v6700_v11 = vpop.f32.mrb[147].mxu1 }
 0x60c   :  { %v11465_v5 = vpack.c.bf16 %v6927_v10, %v6926_v22  ;;  %8565 = vmatprep.subr.bf16.mxu1 %v9675_v50 }
 0x60e   :  { %8562 = vmatmul.mubr.bf16.vlgmr.msra.gmra.mrb[156].mxu1 %v11419_v57  ;;  %v9628_v57 = vld [vmem:[%s11608_s5 + $0x90] sm:$0xff]  }
 0x60f   :  { %8566 = vmatpush3.bf16.msra.mxu1 %v9626_v35  ;;  %8581 = vmatprep.mubr.msk.bf16.mxu1 %vm9676_vm1, %v9675_v50 }
 0x610   :  { %v6704_v52 = vpop.f32.mrb[148].mxu1  ;;  %8567 = vmatprep.subr.bf16.mxu1 %v9675_v50 }
 0x611   :  { %v6889_v48 = vmax.f32 %v6694_v44, %v6704_v52  ;;  %v6706_v14 = vpop.f32.mrb[149].mxu1  ;;  %v8468_v52 = vld [vmem:[%s11611_s6] ss:$0 sm:$0xff] }
 0x612   :  { %v6890_v29 = vmax.f32 %v6696_v55, %v6706_v14  ;;  %v6708_v24 = vpop.f32.mrb[150].mxu1 }
 0x613   :  { %v6891_v56 = vmax.f32 %v6698_v61, %v6708_v24  ;;  %8568 = vmatpush3.bf16.msra.mxu1 %v9627_v7  ;;  %v6710_v47 = vpop.f32.mrb[151].mxu1 }
 0x614   :  { %v6901_v9 = vmax.f32 %v6889_v48, %v6890_v29  ;;  %v6892_v2 = vmax.f32 %v6700_v11, %v6710_v47  ;;  %8569 = vmatprep.subr.bf16.mxu1 %v9675_v50 }
 0x616   :  { %v6918_v53 = vadd.f32 %v11415_v8, %v6901_v9  ;;  %v6902_v15 = vmax.f32 %v6891_v56, %v6892_v2 }
 0x617   :  { %8570 = vmatpush3.bf16.msra.mxu1 %v9628_v57 }
 0x618   :  { %v6919_v28 = vadd.f32 %v11415_v8, %v6902_v15  ;;  %8571 = vmatprep.subr.bf16.mxu1 %v9675_v50  ;;  %v6928_v49 = vmax.f32 %v6918_v53, 0.0  ;;  %v9632_v8 = vld [vmem:[%s11608_s5 + $0xb0] sm:$0xff]   ;;  %v8469_v15 = vld [vmem:[%s11612_s8] ss:$0 sm:$0xff] }
 0x61a   :  { %v6929_v18 = vmax.f32 %v6919_v28, 0.0 }
 0x61b   :  { %8572 = vmatpush3.bf16.msra.mxu1 %v9629_v54 }
 0x61c   :  { %v11488_v25 = vpack.c.bf16 %v6929_v18, %v6928_v49  ;;  %8573 = vmatprep.subr.bf16.mxu1 %v9675_v50 }
 0x61f   :  { %8574 = vmatpush3.bf16.msra.mxu1 %v9630_v63 }
 0x620   :  { %8575 = vmatprep.subr.bf16.mxu1 %v9675_v50 }
 0x623   :  { %8576 = vmatpush3.bf16.msra.mxu1 %v9631_v58 }
 0x624   :  { %8577 = vmatprep.subr.bf16.mxu1 %v9675_v50 }
 0x627   :  { %8578 = vmatpush3.bf16.msra.mxu1 %v9632_v8 }
 0x628   :  { %8579 = vmatprep.subr.bf16.mxu1 %v9675_v50 }
 0x62b   :  { %8580 = vmatpush3.bf16.msra.mxu1 %v9633_v16 }
 0x62c   :  { %8585 = vmatprep.subr.bf16.mxu1 %v9675_v50 }
 0x62e   :  { %8582 = vmatmul.mubr.bf16.vlgmr.msra.gmra.mrb[160].mxu1 %v11445_v30  ;;  %v9651_v30 = vld [vmem:[%s11610_s7 + $0x8] sm:$0xff]  }
 0x62f   :  { %8586 = vmatpush3.bf16.msra.mxu1 %v9634_v51  ;;  %8601 = vmatprep.mubr.msk.bf16.mxu1 %vm9676_vm1, %v9675_v50 }
 0x630   :  { %8587 = vmatprep.subr.bf16.mxu1 %v9675_v50 }
 0x633   :  { %8588 = vmatpush3.bf16.msra.mxu1 %v9635_v23 }
 0x634   :  { %8589 = vmatprep.subr.bf16.mxu1 %v9675_v50 }
 0x637   :  { %8590 = vmatpush3.bf16.msra.mxu1 %v9636_v37 }
 0x638   :  { %8591 = vmatprep.subr.bf16.mxu1 %v9675_v50 }
 0x63b   :  { %8592 = vmatpush3.bf16.msra.mxu1 %v9637_v1 }
 0x63c   :  { %8593 = vmatprep.subr.bf16.mxu1 %v9675_v50 }
 0x63f   :  { %8594 = vmatpush3.bf16.msra.mxu1 %v9638_v34 }
 0x640   :  { %8595 = vmatprep.subr.bf16.mxu1 %v9675_v50 }
 0x643   :  { %8596 = vmatpush3.bf16.msra.mxu1 %v9639_v32 }
 0x644   :  { %8597 = vmatprep.subr.bf16.mxu1 %v9675_v50 }
 0x647   :  { %8598 = vmatpush3.bf16.msra.mxu1 %v9640_v6 }
 0x648   :  { %8599 = vmatprep.subr.bf16.mxu1 %v9675_v50 }
 0x64b   :  { %8600 = vmatpush3.bf16.msra.mxu1 %v9641_v31 }
 0x64c   :  { %8605 = vmatprep.subr.bf16.mxu1 %v9675_v50 }
 0x64e   :  { %8602 = vmatmul.mubr.bf16.vlgmr.msra.gmra.mrb[164].mxu1 %v11465_v5 }
 0x64f   :  { %8606 = vmatpush3.bf16.msra.mxu1 %v9642_v21  ;;  %8621 = vmatprep.mubr.msk.bf16.mxu1 %vm9676_vm1, %v9675_v50 }
 0x650   :  { %8607 = vmatprep.subr.bf16.mxu1 %v9675_v50 }
 0x653   :  { %8608 = vmatpush3.bf16.msra.mxu1 %v9643_v12 }
 0x654   :  { %8609 = vmatprep.subr.bf16.mxu1 %v9675_v50 }
 0x657   :  { %8610 = vmatpush3.bf16.msra.mxu1 %v9644_v0 }
 0x658   :  { %8611 = vmatprep.subr.bf16.mxu1 %v9675_v50 }
 0x65b   :  { %8612 = vmatpush3.bf16.msra.mxu1 %v9645_v26 }
 0x65c   :  { %8613 = vmatprep.subr.bf16.mxu1 %v9675_v50 }
 0x65f   :  { %8614 = vmatpush3.bf16.msra.mxu1 %v9646_v17 }
 0x660   :  { %8615 = vmatprep.subr.bf16.mxu1 %v9675_v50 }
 0x663   :  { %8616 = vmatpush3.bf16.msra.mxu1 %v9647_v4 }
 0x664   :  { %8617 = vmatprep.subr.bf16.mxu1 %v9675_v50 }
 0x667   :  { %8618 = vmatpush3.bf16.msra.mxu1 %v9648_v19 }
 0x668   :  { %8619 = vmatprep.subr.bf16.mxu1 %v9675_v50 }
 0x66b   :  { %8620 = vmatpush3.bf16.msra.mxu1 %v9649_v42 }
 0x66c   :  { %8625 = vmatprep.subr.bf16.mxu1 %v9675_v50 }
 0x66e   :  { %8622 = vmatmul.mubr.bf16.vlgmr.msra.gmra.mrb[168].mxu1 %v11488_v25 }
 0x66f   :  { %8633 = vmatprep.mubr.msk.bf16.mxu1 %vm9676_vm1, %v9675_v50  ;;  %8626 = vmatpush3.bf16.msra.mxu1 %v9650_v60 }
 0x670   :  { %8627 = vmatprep.subr.bf16.mxu1 %v9675_v50 }
 0x673   :  { %8628 = vmatpush3.bf16.msra.mxu1 %v9651_v30 }
 0x674   :  { %8629 = vmatprep.subr.bf16.mxu1 %v9675_v50 }
 0x677   :  { %8630 = vmatpush3.bf16.msra.mxu1 %v9652_v62 }
 0x678   :  { %8631 = vmatprep.subr.bf16.mxu1 %v9675_v50 }
 0x67b   :  { %8632 = vmatpush3.bf16.msra.mxu1 %v9653_v3 }
 0x6c1   :  { %v7058_v39 = vpop.f32.mrb[152].mxu1 }
 0x6c2   :  { %v8543_v38 = vpop.f32.mrb[153].mxu1 }
 0x6c3   :  { %v7061_v43 = vpop.f32.mrb[154].mxu1 }
 0x6c4   :  { %v8544_v20 = vpop.f32.mrb[155].mxu1 }
 0x6e1   :  { %v7147_v40 = vpop.f32.mrb[156].mxu1 }
 0x6e2   :  { %v7148_v41 = vadd.f32 %v7147_v40, %v7058_v39  ;;  %v8563_v45 = vpop.f32.mrb[157].mxu1 }
 0x6e3   :  { %v7150_v13 = vpop.f32.mrb[158].mxu1 }
 0x6e4   :  { %v7151_v36 = vadd.f32 %v7150_v13, %v7061_v43  ;;  %v8564_v59 = vpop.f32.mrb[159].mxu1 }
 0x701   :  { %v7255_v33 = vpop.f32.mrb[160].mxu1 }
 0x702   :  { %v7262_v27 = vadd.f32 %v7255_v33, %v7148_v41  ;;  %v8583_v46 = vpop.f32.mrb[161].mxu1 }
 0x703   :  { %v7258_v44 = vpop.f32.mrb[162].mxu1 }
 0x704   :  { %v7263_v55 = vadd.f32 %v7258_v44, %v7151_v36  ;;  %v8584_v22 = vpop.f32.mrb[163].mxu1 }
 0x721   :  { %v7365_v10 = vpop.f32.mrb[164].mxu1 }
 0x722   :  { %v7372_v61 = vadd.f32 %v7365_v10, %v7262_v27  ;;  %v8603_v50 = vpop.f32.mrb[165].mxu1 }
 0x723   :  { %v7368_v11 = vpop.f32.mrb[166].mxu1 }
 0x724   :  { %v7373_v35 = vadd.f32 %v7368_v11, %v7263_v55  ;;  %v8604_v5 = vpop.f32.mrb[167].mxu1 }
 0x741   :  { %v7475_v7 = vpop.f32.mrb[168].mxu1 }
 0x742   :  { %v7482_v48 = vadd.f32 %v7475_v7, %v7372_v61  ;;  %v8623_v14 = vpop.f32.mrb[169].mxu1 }
 0x743   :  { %v7478_v29 = vpop.f32.mrb[170].mxu1 }
 0x744   :  { %v7491_v24 = vadd.f32 %v8468_v52, %v7482_v48  ;;  %v7483_v56 = vadd.f32 %v7478_v29, %v7373_v35  ;;  %v8624_v47 = vpop.f32.mrb[171].mxu1 }
 0x746   :  { %v7492_v57 = vadd.f32 %v8468_v52, %v7483_v56  ;;  %v7493_v9 = vmax.f32 %v7491_v24, 0.0 }
 0x748   :  { %v7494_v2 = vmax.f32 %v7492_v57, 0.0 }
 0x74a   :  { %v7495_v53 = vpack.c.bf16 %v7494_v2, %v7493_v9 }
 0x74c   :  { %8634 = vmatmul.mubr.msk.bf16.vlgmr.msra.gmra.mrb[172].mxu1 %vm7535_vm2, %v7495_v53 }
 0x81f   :  { %v7573_v54 = vpop.f32.mrb[172].mxu1 }
 0x820   :  { %v7574_v28 = vadd.f32 %v8469_v15, %v7573_v54  ;;  %v8635_v49 = vpop.f32.mrb[173].mxu1 }
 0x821   :  { %v7576_v18 = vpop.f32.mrb[174].mxu1 }
 0x822   :  { %7580 = vmax.xlane.f32.xlu0 %v7574_v28  ;;  %v8636_v63 = vpop.f32.mrb[175].mxu1  ;;  %v7577_v25 = vadd.f32 %v8469_v15, %v7576_v18 }
 0x826   :  { %7582 = vmax.xlane.f32.xlu0 %v7577_v25 }
 0x8af   :  { %v7581_v58 = vpop.xlane.xlu0 %7580 }
 0x8b0   :  { %v7584_v8 = vsub.f32 %v7574_v28, %v7581_v58 }
 0x8b2   :  { %v7586_v16 = vmul.f32 1.442695, %v7584_v8 }
 0x8b3   :  { %v7583_v51 = vpop.xlane.xlu0 %7582 }
 0x8b4   :  { %v7585_v23 = vsub.f32 %v7577_v25, %v7583_v51  ;;  %9654 = vpow2.f32 %v7586_v16 }
 0x8b6   :  { %v7588_v37 = vmul.f32 1.442695, %v7585_v23 }
 0x8b8   :  { %9656 = vpow2.f32 %v7588_v37 }
 0x8be   :  { %v9655_v1 = vpop.eup %9654 }
 0x8bf   :  { %7590 = vadd.xlane.f32.xlu1 %v9655_v1 }
 0x8c2   :  { %v9657_v34 = vpop.eup %9656 }
 0x8c3   :  { %7592 = vadd.xlane.f32.xlu1 %v9657_v34 }
 0x94c   :  { %v7591_v32 = vpop.xlane.xlu1 %7590 }
 0x94d   :  { %9658 = vlog2.f32 %v7591_v32 }
 0x950   :  { %v7593_v6 = vpop.xlane.xlu1 %7592 }
 0x951   :  { %9660 = vlog2.f32 %v7593_v6 }
 0x957   :  { %v9659_v31 = vpop.eup %9658 }
 0x958   :  { %v7595_v21 = vmul.f32 0.6931472, %v9659_v31 }
 0x95a   :  { %v7598_v12 = vsub.f32 %v7584_v8, %v7595_v21 }
 0x95b   :  { %v9661_v0 = vpop.eup %9660 }
 0x95c   :  { %7600 = vst [vmem:[%s11613_s9] sm:$0xff] %v7598_v12  ;;  %v7597_v26 = vmul.f32 0.6931472, %v9661_v0 }
 0x95e   :  { %v7599_v17 = vsub.f32 %v7585_v23, %v7597_v26 }
 0x960   :  { %7601 = vst [vmem:[%s11613_s9 + $0x8] sm:$0xff] %v7599_v17 }

</bundles_post_ra>
